<compile_context>
chip_gen: v7x
topology: tpu7x:2x2x1
jax: 0.10.0
libtpu: 0.0.40
codegen_flags: <defaults>
</compile_context>

<pallas_src>
import jax
import jax.numpy as jnp
from jax.experimental import pallas as pl
from jax.experimental.pallas import tpu as pltpu


def _round_up(x, m):
    return ((x + m - 1) // m) * m


def _row_tile(r):
    # 512-row tiles for large problems (good HBM-roofline utilisation); a single
    # 16-aligned tile when everything fits in one block (bf16 sublane packing = 16).
    if r >= 512:
        return 512
    return _round_up(max(r, 1), 16)


# ----------------------------------------------------------------------------
# Pallas kernels
# ----------------------------------------------------------------------------
def _gemm_stats_kernel(p_ref, w_ref, y_ref, s_ref, q_ref):
    """Row-tiled GEMM (bf16 x bf16 -> f32) + per-tile column sum / sum-of-squares."""
    acc = jnp.dot(p_ref[...], w_ref[...], preferred_element_type=jnp.float32)
    y_ref[...] = acc
    s_ref[...] = jnp.sum(acc, axis=0, keepdims=True)[None]          # (1, 1, Cp)
    q_ref[...] = jnp.sum(acc * acc, axis=0, keepdims=True)[None]    # (1, 1, Cp)


def _scale_shift_relu_kernel(y_ref, s_ref, b_ref, o_ref):
    """Row-tiled y * scale + shift -> ReLU (train-mode BatchNorm affine application)."""
    o_ref[...] = jnp.maximum(y_ref[...] * s_ref[...] + b_ref[...], 0.0).astype(o_ref.dtype)


def _gemm_bias_tanh_kernel(p_ref, w_ref, b_ref, o_ref):
    acc = jnp.dot(p_ref[...], w_ref[...], preferred_element_type=jnp.float32)
    o_ref[...] = jnp.tanh(acc + b_ref[...])


# ----------------------------------------------------------------------------
# pallas_call wrappers
# ----------------------------------------------------------------------------
def _gemm_with_stats(patches, wmat, rt):
    rp, kp = patches.shape
    cp = wmat.shape[1]
    t = rp // rt
    return pl.pallas_call(
        _gemm_stats_kernel,
        out_shape=(
            jax.ShapeDtypeStruct((rp, cp), jnp.float32),
            jax.ShapeDtypeStruct((t, 1, cp), jnp.float32),
            jax.ShapeDtypeStruct((t, 1, cp), jnp.float32),
        ),
        grid=(t,),
        in_specs=[
            pl.BlockSpec((rt, kp), lambda i: (i, 0)),     # row tile, pipelined
            pl.BlockSpec((kp, cp), lambda i: (0, 0)),     # weight stays resident
        ],
        out_specs=(
            pl.BlockSpec((rt, cp), lambda i: (i, 0)),
            pl.BlockSpec((1, 1, cp), lambda i: (i, 0, 0)),
            pl.BlockSpec((1, 1, cp), lambda i: (i, 0, 0)),
        ),
        compiler_params=pltpu.CompilerParams(dimension_semantics=("parallel",)),
    )(patches, wmat)


def _scale_shift_relu(y, scale_cols, shift_cols, rt):
    rp, cp = y.shape
    t = rp // rt
    return pl.pallas_call(
        _scale_shift_relu_kernel,
        out_shape=jax.ShapeDtypeStruct((rp, cp), jnp.bfloat16),
        grid=(t,),
        in_specs=[
            pl.BlockSpec((rt, cp), lambda i: (i, 0)),
            pl.BlockSpec((1, cp), lambda i: (0, 0)),
            pl.BlockSpec((1, cp), lambda i: (0, 0)),
        ],
        out_specs=pl.BlockSpec((rt, cp), lambda i: (i, 0)),
        compiler_params=pltpu.CompilerParams(dimension_semantics=("parallel",)),
    )(y, scale_cols, shift_cols)


def _gemm_bn_relu_block(patches, wmat, gamma, beta, *, groups, eps=1e-5):
    """patches: (R, K); wmat: (Kp, Cp) bf16 with valid columns = groups * Cout.
    Returns bf16 (R, groups*Cout): BN(batch stats) + ReLU of the GEMM output."""
    r, k = patches.shape
    kp, cp = wmat.shape
    cout = gamma.shape[0]
    cols = groups * cout
    rt = _row_tile(r)
    rp = _round_up(r, rt)
    p = jnp.pad(patches, ((0, rp - r), (0, kp - k))).astype(jnp.bfloat16)

    y, psum, psq = _gemm_with_stats(p, wmat, rt)

    # Finalize BatchNorm statistics (per channel, over rows and phase/spatial groups).
    cnt = jnp.float32(r * groups)                         # = N * OH * OW
    ch_sum = psum.sum(axis=(0, 1))[:cols].reshape(groups, cout).sum(axis=0)
    ch_sq = psq.sum(axis=(0, 1))[:cols].reshape(groups, cout).sum(axis=0)
    mean = ch_sum / cnt
    var = ch_sq / cnt - mean * mean                       # biased (train-mode) variance
    scale = gamma * jax.lax.rsqrt(var + eps)
    shift = beta - mean * scale
    scale_cols = jnp.pad(jnp.tile(scale, groups), (0, cp - cols)).reshape(1, cp)
    shift_cols = jnp.pad(jnp.tile(shift, groups), (0, cp - cols)).reshape(1, cp)

    ynorm = _scale_shift_relu(y, scale_cols, shift_cols, rt)
    return ynorm[:r, :cols]


def _gemm_bias_tanh_block(patches, wmat, bias_cols, n_cols):
    r, k = patches.shape
    kp, cp = wmat.shape
    rt = _row_tile(r)
    rp = _round_up(r, rt)
    p = jnp.pad(patches, ((0, rp - r), (0, kp - k))).astype(jnp.bfloat16)
    t = rp // rt
    y = pl.pallas_call(
        _gemm_bias_tanh_kernel,
        out_shape=jax.ShapeDtypeStruct((rp, cp), jnp.float32),
        grid=(t,),
        in_specs=[
            pl.BlockSpec((rt, kp), lambda i: (i, 0)),
            pl.BlockSpec((kp, cp), lambda i: (0, 0)),
            pl.BlockSpec((1, cp), lambda i: (0, 0)),
        ],
        out_specs=pl.BlockSpec((rt, cp), lambda i: (i, 0)),
        compiler_params=pltpu.CompilerParams(dimension_semantics=("parallel",)),
    )(p, wmat, bias_cols)
    return y[:r, :n_cols]


# ----------------------------------------------------------------------------
# Glue: 3x3 window extraction (NHWC) and 2x pixel shuffle
# ----------------------------------------------------------------------------
def _extract_patches3(x_nhwc):
    # (N, H, W, C) -> (N*H*W, 9*C), K ordered (th, tw, c); pads H, W by 1 each side.
    n, h, w, c = x_nhwc.shape
    xp = jnp.pad(x_nhwc, ((0, 0), (1, 1), (1, 1), (0, 0)))
    cols = [xp[:, th:th + h, tw:tw + w, :] for th in range(3) for tw in range(3)]
    p = jnp.stack(cols, axis=3)                           # (N, H, W, 9, C)
    # TODO(synk): form these windows inside the GEMM kernel via manual DMA of input row
    # bands to avoid materializing the 9x-inflated patch matrix in HBM at huge batch.
    return p.reshape(n * h * w, 9 * c)


def _pixel_shuffle2(y, n, h, w, cout):
    # y: (N*H*W, 4*Cout) with columns ordered (phase_h, phase_w, co) -> (N, 2H, 2W, Cout)
    t = y.reshape(n, h, w, 2, 2, cout)
    t = jnp.transpose(t, (0, 1, 3, 2, 4, 5))
    return t.reshape(n, 2 * h, 2 * w, cout)


# ----------------------------------------------------------------------------
# Weight packing (done once, outside jit)
# ----------------------------------------------------------------------------
# For ConvTranspose2d(k=4, s=2, p=1):
#   out[2m]   = x[m-1]*w[3] + x[m]*w[1]     (even output phase)
#   out[2m+1] = x[m]*w[2]   + x[m+1]*w[0]   (odd  output phase)
# With the input padded by 1, both phases read the 3-wide window xp[m:m+3]; the
# per-(phase, tap) kernel-index selection is:
_PHASE_TAPS = [
    [[0, 0, 0, 1], [0, 1, 0, 0], [0, 0, 0, 0]],   # even phase: taps (w3, w1, -)
    [[0, 0, 0, 0], [0, 0, 1, 0], [1, 0, 0, 0]],   # odd  phase: taps (-,  w2, w0)
]


def _pack_convt_k4s2p1(w):
    """(Cin, Cout, 4, 4) -> (Kp, Cp) bf16 GEMM matrix; rows ordered (th, tw, ci),
    cols ordered (phase_h, phase_w, co)."""
    cin, cout = w.shape[0], w.shape[1]
    s = jnp.asarray(_PHASE_TAPS, jnp.float32)                      # (2, 3, 4)
    wp = jnp.einsum("pak,qbl,iokl->abipqo", s, s, w)               # (3,3,Cin,2,2,Cout)
    wmat = wp.reshape(9 * cin, 4 * cout)
    kp, cp = _round_up(9 * cin, 128), _round_up(4 * cout, 128)
    return jnp.pad(wmat, ((0, kp - 9 * cin), (0, cp - 4 * cout))).astype(jnp.bfloat16)


def _pack_convt_k5s2p1_on_1x1(w):
    """ConvTranspose2d(k=5, s=2, p=1) on a 1x1 input is exactly the centre 3x3 taps:
    out[n, oh, ow, co] = sum_ci x[n, ci] * w[ci, co, oh+1, ow+1].
    Returns (Kp, Cp) bf16, cols ordered (oh, ow, co)."""
    cin, cout = w.shape[0], w.shape[1]
    wmat = jnp.transpose(w[:, :, 1:4, 1:4], (0, 2, 3, 1)).reshape(cin, 9 * cout)
    kp, cp = _round_up(cin, 128), _round_up(9 * cout, 128)
    return jnp.pad(wmat, ((0, kp - cin), (0, cp - 9 * cout))).astype(jnp.bfloat16)


# ----------------------------------------------------------------------------
# Generator: parameters + forward
# ----------------------------------------------------------------------------
def init_generator_params(key, channels_noise, channels_img, features_g,
                          num_classes, embed_size):
    ks = jax.random.split(key, 12)
    fg = features_g

    def w_conv_t(k, cin, cout, ksz):
        return 0.05 * jax.random.normal(k, (cin, cout, ksz, ksz), jnp.float32)

    return {
        "embed": 0.1 * jax.random.normal(ks[0], (num_classes, embed_size), jnp.float32),
        "w1": w_conv_t(ks[1], channels_noise + embed_size, fg * 16, 5),
        "g1": 1.0 + 0.05 * jax.random.normal(ks[2], (fg * 16,), jnp.float32),
        "b1": 0.05 * jax.random.normal(ks[3], (fg * 16,), jnp.float32),
        "w2": w_conv_t(ks[4], fg * 16, fg * 8, 4),
        "g2": 1.0 + 0.05 * jax.random.normal(ks[5], (fg * 8,), jnp.float32),
        "b2": 0.05 * jax.random.normal(ks[6], (fg * 8,), jnp.float32),
        "w3": w_conv_t(ks[7], fg * 8, fg * 4, 4),
        "g3": 1.0 + 0.05 * jax.random.normal(ks[8], (fg * 4,), jnp.float32),
        "b3": 0.05 * jax.random.normal(ks[9], (fg * 4,), jnp.float32),
        "w4": w_conv_t(ks[10], fg * 4, channels_img, 4),
        "bias4": 0.05 * jax.random.normal(ks[11], (channels_img,), jnp.float32),
    }


def pack_generator_params(raw):
    """Precompute GEMM-ready (padded, bf16) weight matrices once, outside jit."""
    return {
        "embed": raw["embed"],
        "w1m": _pack_convt_k5s2p1_on_1x1(raw["w1"]), "g1": raw["g1"], "b1": raw["b1"],
        "w2m": _pack_convt_k4s2p1(raw["w2"]), "g2": raw["g2"], "b2": raw["b2"],
        "w3m": _pack_convt_k4s2p1(raw["w3"]), "g3": raw["g3"], "b3": raw["b3"],
        "w4m": _pack_convt_k4s2p1(raw["w4"]), "bias4": raw["bias4"],
    }


def generator_forward(packed, z, labels):
    """z: (N, channels_noise, 1, 1) f32, labels: (N,) int32 -> NCHW image (N, C, 24, 24)."""
    n = z.shape[0]
    emb = packed["embed"][labels]                              # (N, embed_size)
    x0 = jnp.concatenate([z.reshape(n, -1), emb], axis=1)      # (N, Cn + E)

    # block 1: ConvT(k=5, s=2, p=1) on 1x1 + BN + ReLU -> (N, 3, 3, fg*16)
    c1 = packed["g1"].shape[0]
    y1 = _gemm_bn_relu_block(x0, packed["w1m"], packed["g1"], packed["b1"], groups=9)
    x1 = y1.reshape(n, 3, 3, c1)

    # block 2: ConvT(k=4, s=2, p=1) + BN + ReLU -> (N, 6, 6, fg*8)
    c2 = packed["g2"].shape[0]
    y2 = _gemm_bn_relu_block(_extract_patches3(x1), packed["w2m"],
                             packed["g2"], packed["b2"], groups=4)
    x2 = _pixel_shuffle2(y2, n, 3, 3, c2)

    # block 3: ConvT(k=4, s=2, p=1) + BN + ReLU -> (N, 12, 12, fg*4)
    c3 = packed["g3"].shape[0]
    y3 = _gemm_bn_relu_block(_extract_patches3(x2), packed["w3m"],
                             packed["g3"], packed["b3"], groups=4)
    x3 = _pixel_shuffle2(y3, n, 6, 6, c3)

    # final: ConvT(k=4, s=2, p=1) + bias + Tanh -> (N, 24, 24, channels_img)
    c4 = packed["bias4"].shape[0]
    cp4 = packed["w4m"].shape[1]
    bias_cols = jnp.pad(jnp.tile(packed["bias4"], 4), (0, cp4 - 4 * c4)).reshape(1, cp4)
    y4 = _gemm_bias_tanh_block(_extract_patches3(x3), packed["w4m"], bias_cols, 4 * c4)
    x4 = _pixel_shuffle2(y4, n, 12, 12, c4)

    return jnp.transpose(x4, (0, 3, 1, 2))                     # NCHW, matches PyTorch


# ----------------------------------------------------------------------------
# Plain-JAX reference (independent formulation) for a sanity cross-check
# ----------------------------------------------------------------------------
def _ref_conv_transpose(x, w, stride, padding):
    k = w.shape[2]
    wc = jnp.transpose(w[:, :, ::-1, ::-1], (1, 0, 2, 3))      # (Cout, Cin, k, k)
    pad = k - 1 - padding
    return jax.lax.conv_general_dilated(
        x, wc, window_strides=(1, 1), padding=[(pad, pad), (pad, pad)],
        lhs_dilation=(stride, stride),
        dimension_numbers=("NCHW", "OIHW", "NCHW"),
        precision=jax.lax.Precision.HIGHEST)


def _ref_forward(raw, z, labels, eps=1e-5):
    emb = raw["embed"][labels][:, :, None, None]
    x = jnp.concatenate([z, emb], axis=1)

    def bn_relu(y, g, b):
        mean = y.mean(axis=(0, 2, 3), keepdims=True)
        var = jnp.square(y - mean).mean(axis=(0, 2, 3), keepdims=True)
        yh = (y - mean) * jax.lax.rsqrt(var + eps)
        return jnp.maximum(yh * g[None, :, None, None] + b[None, :, None, None], 0.0)

    x = bn_relu(_ref_conv_transpose(x, raw["w1"], 2, 1), raw["g1"], raw["b1"])
    x = bn_relu(_ref_conv_transpose(x, raw["w2"], 2, 1), raw["g2"], raw["b2"])
    x = bn_relu(_ref_conv_transpose(x, raw["w3"], 2, 1), raw["g3"], raw["b3"])
    y = _ref_conv_transpose(x, raw["w4"], 2, 1) + raw["bias4"][None, :, None, None]
    return jnp.tanh(y)


if __name__ == "__main__":
    channels_noise, channels_img = 8, 3
    features_g, num_classes, embed_size = 8, 10, 8
    img_size = 24   # 1 -> 3 -> 6 -> 12 -> 24 with the given kernels/strides/paddings
    n = 2

    key = jax.random.PRNGKey(0)
    kparam, kz, kl = jax.random.split(key, 3)
    raw = init_generator_params(kparam, channels_noise, channels_img, features_g,
                                num_classes, embed_size)
    packed = pack_generator_params(raw)

    z = jax.random.normal(kz, (n, channels_noise, 1, 1), jnp.float32)
    labels = jax.random.randint(kl, (n,), 0, num_classes, jnp.int32)

    out = jax.jit(generator_forward)(packed, z, labels)
    out = jax.block_until_ready(out)

    assert out.shape == (n, channels_img, img_size, img_size), out.shape
    assert bool(jnp.all(jnp.isfinite(out)))
    assert bool(jnp.all(jnp.abs(out) <= 1.0 + 1e-6))           # tanh range

    ref = _ref_forward(raw, z, labels)
    max_err = float(jnp.max(jnp.abs(out - ref)))
    assert max_err < 0.25, f"max abs error vs reference: {max_err}"

    print("KERNEL_OK")
</pallas_src>

<mosaic_0001>
module attributes {stable_mosaic.version = 11 : i64} {
  func.func @_gemm_stats_kernel(%arg0: i32, %arg1: memref<16x128xbf16, #tpu.memory_space<vmem>>, %arg2: memref<128x1152xbf16, #tpu.memory_space<vmem>>, %arg3: memref<16x1152xf32, #tpu.memory_space<vmem>>, %arg4: memref<1x1x1152xf32, #tpu.memory_space<vmem>>, %arg5: memref<1x1x1152xf32, #tpu.memory_space<vmem>>) attributes {dimension_semantics = [#tpu.dimension_semantics<parallel>], iteration_bounds = array<i64: 1>, scalar_prefetch = 0 : i64, scratch_operands = 0 : i64, tpu.core_type = #tpu.core_type<tc>, window_params = [{transform_indices = @transform_0, window_bounds = array<i64: 16, 128>}, {pipeline_mode = #tpu.pipeline_mode<synchronous>, transform_indices = @transform_1, window_bounds = array<i64: 128, 1152>}, {transform_indices = @transform_2, window_bounds = array<i64: 16, 1152>}, {transform_indices = @transform_3, window_bounds = array<i64: 1, 1, 1152>}, {transform_indices = @transform_4, window_bounds = array<i64: 1, 1, 1152>}]} {
    %c0 = arith.constant 0 : index
    %c0_0 = arith.constant 0 : index
    %0 = vector.load %arg1[%c0, %c0_0] : memref<16x128xbf16, #tpu.memory_space<vmem>>, vector<16x128xbf16>
    %c0_1 = arith.constant 0 : index
    %c0_2 = arith.constant 0 : index
    %1 = vector.load %arg2[%c0_1, %c0_2] : memref<128x1152xbf16, #tpu.memory_space<vmem>>, vector<128x1152xbf16>
    %cst = arith.constant dense<0.000000e+00> : vector<16x1152xf32>
    %2 = tpu.matmul %0, %1, %cst {dimension_numbers = #tpu.dot_dimension_numbers<[1], [0], [0], [1], [0, 0, 1, 1], [], []>} : vector<16x128xbf16>, vector<128x1152xbf16>, vector<16x1152xf32> -> vector<16x1152xf32>
    %c0_3 = arith.constant 0 : index
    %c0_4 = arith.constant 0 : index
    %3 = vector.load %arg3[%c0_3, %c0_4] : memref<16x1152xf32, #tpu.memory_space<vmem>>, vector<16x1152xf32>
    tpu.vector_store %arg3[%c0_3, %c0_4], %2 {strides = array<i32>} : memref<16x1152xf32, #tpu.memory_space<vmem>>, vector<16x1152xf32>,
    %cst_5 = arith.constant dense<0.000000e+00> : vector<1152xf32>
    %4 = vector.multi_reduction <add>, %2, %cst_5 [0] : vector<16x1152xf32> to vector<1152xf32>
    %5 = vector.shape_cast %4 : vector<1152xf32> to vector<1x1152xf32>
    %6 = vector.shape_cast %5 : vector<1x1152xf32> to vector<1x1x1152xf32>
    %c0_6 = arith.constant 0 : index
    %c0_7 = arith.constant 0 : index
    %c0_8 = arith.constant 0 : index
    %7 = vector.load %arg4[%c0_6, %c0_7, %c0_8] : memref<1x1x1152xf32, #tpu.memory_space<vmem>>, vector<1x1x1152xf32>
    tpu.vector_store %arg4[%c0_6, %c0_7, %c0_8], %6 {strides = array<i32>} : memref<1x1x1152xf32, #tpu.memory_space<vmem>>, vector<1x1x1152xf32>,
    %8 = arith.mulf %2, %2 : vector<16x1152xf32>
    %cst_9 = arith.constant dense<0.000000e+00> : vector<1152xf32>
    %9 = vector.multi_reduction <add>, %8, %cst_9 [0] : vector<16x1152xf32> to vector<1152xf32>
    %10 = vector.shape_cast %9 : vector<1152xf32> to vector<1x1152xf32>
    %11 = vector.shape_cast %10 : vector<1x1152xf32> to vector<1x1x1152xf32>
    %c0_10 = arith.constant 0 : index
    %c0_11 = arith.constant 0 : index
    %c0_12 = arith.constant 0 : index
    %12 = vector.load %arg5[%c0_10, %c0_11, %c0_12] : memref<1x1x1152xf32, #tpu.memory_space<vmem>>, vector<1x1x1152xf32>
    tpu.vector_store %arg5[%c0_10, %c0_11, %c0_12], %11 {strides = array<i32>} : memref<1x1x1152xf32, #tpu.memory_space<vmem>>, vector<1x1x1152xf32>,
    return
  }
  func.func @transform_0(%arg0: i32) -> (i32, i32) {
    %c0_i32 = arith.constant 0 : i32
    %c0_i32_0 = arith.constant 0 : i32
    return %arg0, %c0_i32 : i32, i32
  }
  func.func @transform_1(%arg0: i32) -> (i32, i32) {
    %c0_i32 = arith.constant 0 : i32
    %c0_i32_0 = arith.constant 0 : i32
    %c0_i32_1 = arith.constant 0 : i32
    return %c0_i32, %c0_i32_0 : i32, i32
  }
  func.func @transform_2(%arg0: i32) -> (i32, i32) {
    %c0_i32 = arith.constant 0 : i32
    %c0_i32_0 = arith.constant 0 : i32
    return %arg0, %c0_i32 : i32, i32
  }
  func.func @transform_3(%arg0: i32) -> (i32, i32, i32) {
    %c0_i32 = arith.constant 0 : i32
    %c0_i32_0 = arith.constant 0 : i32
    %c0_i32_1 = arith.constant 0 : i32
    return %arg0, %c0_i32, %c0_i32_0 : i32, i32, i32
  }
  func.func @transform_4(%arg0: i32) -> (i32, i32, i32) {
    %c0_i32 = arith.constant 0 : i32
    %c0_i32_0 = arith.constant 0 : i32
    %c0_i32_1 = arith.constant 0 : i32
    return %arg0, %c0_i32, %c0_i32_0 : i32, i32, i32
  }
}

module attributes {stable_mosaic.version = 11 : i64} {
  func.func @_scale_shift_relu_kernel(%arg0: i32, %arg1: memref<16x1152xf32, #tpu.memory_space<vmem>>, %arg2: memref<1x1152xf32, #tpu.memory_space<vmem>>, %arg3: memref<1x1152xf32, #tpu.memory_space<vmem>>, %arg4: memref<16x1152xbf16, #tpu.memory_space<vmem>>) attributes {dimension_semantics = [#tpu.dimension_semantics<parallel>], iteration_bounds = array<i64: 1>, scalar_prefetch = 0 : i64, scratch_operands = 0 : i64, tpu.core_type = #tpu.core_type<tc>, window_params = [{transform_indices = @transform_0, window_bounds = array<i64: 16, 1152>}, {pipeline_mode = #tpu.pipeline_mode<synchronous>, transform_indices = @transform_1, window_bounds = array<i64: 1, 1152>}, {pipeline_mode = #tpu.pipeline_mode<synchronous>, transform_indices = @transform_2, window_bounds = array<i64: 1, 1152>}, {transform_indices = @transform_3, window_bounds = array<i64: 16, 1152>}]} {
    %c0 = arith.constant 0 : index
    %c0_0 = arith.constant 0 : index
    %0 = vector.load %arg1[%c0, %c0_0] : memref<16x1152xf32, #tpu.memory_space<vmem>>, vector<16x1152xf32>
    %c0_1 = arith.constant 0 : index
    %c0_2 = arith.constant 0 : index
    %1 = vector.load %arg2[%c0_1, %c0_2] : memref<1x1152xf32, #tpu.memory_space<vmem>>, vector<1x1152xf32>
    %2 = vector.broadcast %1 : vector<1x1152xf32> to vector<16x1152xf32>
    %3 = arith.mulf %0, %2 : vector<16x1152xf32>
    %c0_3 = arith.constant 0 : index
    %c0_4 = arith.constant 0 : index
    %4 = vector.load %arg3[%c0_3, %c0_4] : memref<1x1152xf32, #tpu.memory_space<vmem>>, vector<1x1152xf32>
    %5 = vector.broadcast %4 : vector<1x1152xf32> to vector<16x1152xf32>
    %6 = arith.addf %3, %5 : vector<16x1152xf32>
    %cst = arith.constant 0.000000e+00 : f32
    %7 = vector.broadcast %cst : f32 to vector<16x1152xf32>
    %8 = arith.maximumf %6, %7 : vector<16x1152xf32>
    %9 = arith.truncf %8 : vector<16x1152xf32> to vector<16x1152xbf16>
    %c0_5 = arith.constant 0 : index
    %c0_6 = arith.constant 0 : index
    %10 = vector.load %arg4[%c0_5, %c0_6] : memref<16x1152xbf16, #tpu.memory_space<vmem>>, vector<16x1152xbf16>
    tpu.vector_store %arg4[%c0_5, %c0_6], %9 {strides = array<i32>} : memref<16x1152xbf16, #tpu.memory_space<vmem>>, vector<16x1152xbf16>,
    return
  }
  func.func @transform_0(%arg0: i32) -> (i32, i32) {
    %c0_i32 = arith.constant 0 : i32
    %c0_i32_0 = arith.constant 0 : i32
    return %arg0, %c0_i32 : i32, i32
  }
  func.func @transform_1(%arg0: i32) -> (i32, i32) {
    %c0_i32 = arith.constant 0 : i32
    %c0_i32_0 = arith.constant 0 : i32
    %c0_i32_1 = arith.constant 0 : i32
    return %c0_i32, %c0_i32_0 : i32, i32
  }
  func.func @transform_2(%arg0: i32) -> (i32, i32) {
    %c0_i32 = arith.constant 0 : i32
    %c0_i32_0 = arith.constant 0 : i32
    %c0_i32_1 = arith.constant 0 : i32
    return %c0_i32, %c0_i32_0 : i32, i32
  }
  func.func @transform_3(%arg0: i32) -> (i32, i32) {
    %c0_i32 = arith.constant 0 : i32
    %c0_i32_0 = arith.constant 0 : i32
    return %arg0, %c0_i32 : i32, i32
  }
}

module attributes {stable_mosaic.version = 11 : i64} {
  func.func @_gemm_stats_kernel(%arg0: i32, %arg1: memref<32x1152xbf16, #tpu.memory_space<vmem>>, %arg2: memref<1152x256xbf16, #tpu.memory_space<vmem>>, %arg3: memref<32x256xf32, #tpu.memory_space<vmem>>, %arg4: memref<1x1x256xf32, #tpu.memory_space<vmem>>, %arg5: memref<1x1x256xf32, #tpu.memory_space<vmem>>) attributes {dimension_semantics = [#tpu.dimension_semantics<parallel>], iteration_bounds = array<i64: 1>, scalar_prefetch = 0 : i64, scratch_operands = 0 : i64, tpu.core_type = #tpu.core_type<tc>, window_params = [{transform_indices = @transform_0, window_bounds = array<i64: 32, 1152>}, {pipeline_mode = #tpu.pipeline_mode<synchronous>, transform_indices = @transform_1, window_bounds = array<i64: 1152, 256>}, {transform_indices = @transform_2, window_bounds = array<i64: 32, 256>}, {transform_indices = @transform_3, window_bounds = array<i64: 1, 1, 256>}, {transform_indices = @transform_4, window_bounds = array<i64: 1, 1, 256>}]} {
    %c0 = arith.constant 0 : index
    %c0_0 = arith.constant 0 : index
    %0 = vector.load %arg1[%c0, %c0_0] : memref<32x1152xbf16, #tpu.memory_space<vmem>>, vector<32x1152xbf16>
    %c0_1 = arith.constant 0 : index
    %c0_2 = arith.constant 0 : index
    %1 = vector.load %arg2[%c0_1, %c0_2] : memref<1152x256xbf16, #tpu.memory_space<vmem>>, vector<1152x256xbf16>
    %cst = arith.constant dense<0.000000e+00> : vector<32x256xf32>
    %2 = tpu.matmul %0, %1, %cst {dimension_numbers = #tpu.dot_dimension_numbers<[1], [0], [0], [1], [0, 0, 1, 1], [], []>} : vector<32x1152xbf16>, vector<1152x256xbf16>, vector<32x256xf32> -> vector<32x256xf32>
    %c0_3 = arith.constant 0 : index
    %c0_4 = arith.constant 0 : index
    %3 = vector.load %arg3[%c0_3, %c0_4] : memref<32x256xf32, #tpu.memory_space<vmem>>, vector<32x256xf32>
    tpu.vector_store %arg3[%c0_3, %c0_4], %2 {strides = array<i32>} : memref<32x256xf32, #tpu.memory_space<vmem>>, vector<32x256xf32>,
    %cst_5 = arith.constant dense<0.000000e+00> : vector<256xf32>
    %4 = vector.multi_reduction <add>, %2, %cst_5 [0] : vector<32x256xf32> to vector<256xf32>
    %5 = vector.shape_cast %4 : vector<256xf32> to vector<1x256xf32>
    %6 = vector.shape_cast %5 : vector<1x256xf32> to vector<1x1x256xf32>
    %c0_6 = arith.constant 0 : index
    %c0_7 = arith.constant 0 : index
    %c0_8 = arith.constant 0 : index
    %7 = vector.load %arg4[%c0_6, %c0_7, %c0_8] : memref<1x1x256xf32, #tpu.memory_space<vmem>>, vector<1x1x256xf32>
    tpu.vector_store %arg4[%c0_6, %c0_7, %c0_8], %6 {strides = array<i32>} : memref<1x1x256xf32, #tpu.memory_space<vmem>>, vector<1x1x256xf32>,
    %8 = arith.mulf %2, %2 : vector<32x256xf32>
    %cst_9 = arith.constant dense<0.000000e+00> : vector<256xf32>
    %9 = vector.multi_reduction <add>, %8, %cst_9 [0] : vector<32x256xf32> to vector<256xf32>
    %10 = vector.shape_cast %9 : vector<256xf32> to vector<1x256xf32>
    %11 = vector.shape_cast %10 : vector<1x256xf32> to vector<1x1x256xf32>
    %c0_10 = arith.constant 0 : index
    %c0_11 = arith.constant 0 : index
    %c0_12 = arith.constant 0 : index
    %12 = vector.load %arg5[%c0_10, %c0_11, %c0_12] : memref<1x1x256xf32, #tpu.memory_space<vmem>>, vector<1x1x256xf32>
    tpu.vector_store %arg5[%c0_10, %c0_11, %c0_12], %11 {strides = array<i32>} : memref<1x1x256xf32, #tpu.memory_space<vmem>>, vector<1x1x256xf32>,
    return
  }
  func.func @transform_0(%arg0: i32) -> (i32, i32) {
    %c0_i32 = arith.constant 0 : i32
    %c0_i32_0 = arith.constant 0 : i32
    return %arg0, %c0_i32 : i32, i32
  }
  func.func @transform_1(%arg0: i32) -> (i32, i32) {
    %c0_i32 = arith.constant 0 : i32
    %c0_i32_0 = arith.constant 0 : i32
    %c0_i32_1 = arith.constant 0 : i32
    return %c0_i32, %c0_i32_0 : i32, i32
  }
  func.func @transform_2(%arg0: i32) -> (i32, i32) {
    %c0_i32 = arith.constant 0 : i32
    %c0_i32_0 = arith.constant 0 : i32
    return %arg0, %c0_i32 : i32, i32
  }
  func.func @transform_3(%arg0: i32) -> (i32, i32, i32) {
    %c0_i32 = arith.constant 0 : i32
    %c0_i32_0 = arith.constant 0 : i32
    %c0_i32_1 = arith.constant 0 : i32
    return %arg0, %c0_i32, %c0_i32_0 : i32, i32, i32
  }
  func.func @transform_4(%arg0: i32) -> (i32, i32, i32) {
    %c0_i32 = arith.constant 0 : i32
    %c0_i32_0 = arith.constant 0 : i32
    %c0_i32_1 = arith.constant 0 : i32
    return %arg0, %c0_i32, %c0_i32_0 : i32, i32, i32
  }
}

module attributes {stable_mosaic.version = 11 : i64} {
  func.func @_scale_shift_relu_kernel(%arg0: i32, %arg1: memref<32x256xf32, #tpu.memory_space<vmem>>, %arg2: memref<1x256xf32, #tpu.memory_space<vmem>>, %arg3: memref<1x256xf32, #tpu.memory_space<vmem>>, %arg4: memref<32x256xbf16, #tpu.memory_space<vmem>>) attributes {dimension_semantics = [#tpu.dimension_semantics<parallel>], iteration_bounds = array<i64: 1>, scalar_prefetch = 0 : i64, scratch_operands = 0 : i64, tpu.core_type = #tpu.core_type<tc>, window_params = [{transform_indices = @transform_0, window_bounds = array<i64: 32, 256>}, {pipeline_mode = #tpu.pipeline_mode<synchronous>, transform_indices = @transform_1, window_bounds = array<i64: 1, 256>}, {pipeline_mode = #tpu.pipeline_mode<synchronous>, transform_indices = @transform_2, window_bounds = array<i64: 1, 256>}, {transform_indices = @transform_3, window_bounds = array<i64: 32, 256>}]} {
    %c0 = arith.constant 0 : index
    %c0_0 = arith.constant 0 : index
    %0 = vector.load %arg1[%c0, %c0_0] : memref<32x256xf32, #tpu.memory_space<vmem>>, vector<32x256xf32>
    %c0_1 = arith.constant 0 : index
    %c0_2 = arith.constant 0 : index
    %1 = vector.load %arg2[%c0_1, %c0_2] : memref<1x256xf32, #tpu.memory_space<vmem>>, vector<1x256xf32>
    %2 = vector.broadcast %1 : vector<1x256xf32> to vector<32x256xf32>
    %3 = arith.mulf %0, %2 : vector<32x256xf32>
    %c0_3 = arith.constant 0 : index
    %c0_4 = arith.constant 0 : index
    %4 = vector.load %arg3[%c0_3, %c0_4] : memref<1x256xf32, #tpu.memory_space<vmem>>, vector<1x256xf32>
    %5 = vector.broadcast %4 : vector<1x256xf32> to vector<32x256xf32>
    %6 = arith.addf %3, %5 : vector<32x256xf32>
    %cst = arith.constant 0.000000e+00 : f32
    %7 = vector.broadcast %cst : f32 to vector<32x256xf32>
    %8 = arith.maximumf %6, %7 : vector<32x256xf32>
    %9 = arith.truncf %8 : vector<32x256xf32> to vector<32x256xbf16>
    %c0_5 = arith.constant 0 : index
    %c0_6 = arith.constant 0 : index
    %10 = vector.load %arg4[%c0_5, %c0_6] : memref<32x256xbf16, #tpu.memory_space<vmem>>, vector<32x256xbf16>
    tpu.vector_store %arg4[%c0_5, %c0_6], %9 {strides = array<i32>} : memref<32x256xbf16, #tpu.memory_space<vmem>>, vector<32x256xbf16>,
    return
  }
  func.func @transform_0(%arg0: i32) -> (i32, i32) {
    %c0_i32 = arith.constant 0 : i32
    %c0_i32_0 = arith.constant 0 : i32
    return %arg0, %c0_i32 : i32, i32
  }
  func.func @transform_1(%arg0: i32) -> (i32, i32) {
    %c0_i32 = arith.constant 0 : i32
    %c0_i32_0 = arith.constant 0 : i32
    %c0_i32_1 = arith.constant 0 : i32
    return %c0_i32, %c0_i32_0 : i32, i32
  }
  func.func @transform_2(%arg0: i32) -> (i32, i32) {
    %c0_i32 = arith.constant 0 : i32
    %c0_i32_0 = arith.constant 0 : i32
    %c0_i32_1 = arith.constant 0 : i32
    return %c0_i32, %c0_i32_0 : i32, i32
  }
  func.func @transform_3(%arg0: i32) -> (i32, i32) {
    %c0_i32 = arith.constant 0 : i32
    %c0_i32_0 = arith.constant 0 : i32
    return %arg0, %c0_i32 : i32, i32
  }
}

module attributes {stable_mosaic.version = 11 : i64} {
  func.func @_gemm_stats_kernel(%arg0: i32, %arg1: memref<80x640xbf16, #tpu.memory_space<vmem>>, %arg2: memref<640x128xbf16, #tpu.memory_space<vmem>>, %arg3: memref<80x128xf32, #tpu.memory_space<vmem>>, %arg4: memref<1x1x128xf32, #tpu.memory_space<vmem>>, %arg5: memref<1x1x128xf32, #tpu.memory_space<vmem>>) attributes {dimension_semantics = [#tpu.dimension_semantics<parallel>], iteration_bounds = array<i64: 1>, scalar_prefetch = 0 : i64, scratch_operands = 0 : i64, tpu.core_type = #tpu.core_type<tc>, window_params = [{transform_indices = @transform_0, window_bounds = array<i64: 80, 640>}, {pipeline_mode = #tpu.pipeline_mode<synchronous>, transform_indices = @transform_1, window_bounds = array<i64: 640, 128>}, {transform_indices = @transform_2, window_bounds = array<i64: 80, 128>}, {transform_indices = @transform_3, window_bounds = array<i64: 1, 1, 128>}, {transform_indices = @transform_4, window_bounds = array<i64: 1, 1, 128>}]} {
    %c0 = arith.constant 0 : index
    %c0_0 = arith.constant 0 : index
    %0 = vector.load %arg1[%c0, %c0_0] : memref<80x640xbf16, #tpu.memory_space<vmem>>, vector<80x640xbf16>
    %c0_1 = arith.constant 0 : index
    %c0_2 = arith.constant 0 : index
    %1 = vector.load %arg2[%c0_1, %c0_2] : memref<640x128xbf16, #tpu.memory_space<vmem>>, vector<640x128xbf16>
    %cst = arith.constant dense<0.000000e+00> : vector<80x128xf32>
    %2 = tpu.matmul %0, %1, %cst {dimension_numbers = #tpu.dot_dimension_numbers<[1], [0], [0], [1], [0, 0, 1, 1], [], []>} : vector<80x640xbf16>, vector<640x128xbf16>, vector<80x128xf32> -> vector<80x128xf32>
    %c0_3 = arith.constant 0 : index
    %c0_4 = arith.constant 0 : index
    %3 = vector.load %arg3[%c0_3, %c0_4] : memref<80x128xf32, #tpu.memory_space<vmem>>, vector<80x128xf32>
    tpu.vector_store %arg3[%c0_3, %c0_4], %2 {strides = array<i32>} : memref<80x128xf32, #tpu.memory_space<vmem>>, vector<80x128xf32>,
    %cst_5 = arith.constant dense<0.000000e+00> : vector<128xf32>
    %4 = vector.multi_reduction <add>, %2, %cst_5 [0] : vector<80x128xf32> to vector<128xf32>
    %5 = vector.shape_cast %4 : vector<128xf32> to vector<1x128xf32>
    %6 = vector.shape_cast %5 : vector<1x128xf32> to vector<1x1x128xf32>
    %c0_6 = arith.constant 0 : index
    %c0_7 = arith.constant 0 : index
    %c0_8 = arith.constant 0 : index
    %7 = vector.load %arg4[%c0_6, %c0_7, %c0_8] : memref<1x1x128xf32, #tpu.memory_space<vmem>>, vector<1x1x128xf32>
    tpu.vector_store %arg4[%c0_6, %c0_7, %c0_8], %6 {strides = array<i32>} : memref<1x1x128xf32, #tpu.memory_space<vmem>>, vector<1x1x128xf32>,
    %8 = arith.mulf %2, %2 : vector<80x128xf32>
    %cst_9 = arith.constant dense<0.000000e+00> : vector<128xf32>
    %9 = vector.multi_reduction <add>, %8, %cst_9 [0] : vector<80x128xf32> to vector<128xf32>
    %10 = vector.shape_cast %9 : vector<128xf32> to vector<1x128xf32>
    %11 = vector.shape_cast %10 : vector<1x128xf32> to vector<1x1x128xf32>
    %c0_10 = arith.constant 0 : index
    %c0_11 = arith.constant 0 : index
    %c0_12 = arith.constant 0 : index
    %12 = vector.load %arg5[%c0_10, %c0_11, %c0_12] : memref<1x1x128xf32, #tpu.memory_space<vmem>>, vector<1x1x128xf32>
    tpu.vector_store %arg5[%c0_10, %c0_11, %c0_12], %11 {strides = array<i32>} : memref<1x1x128xf32, #tpu.memory_space<vmem>>, vector<1x1x128xf32>,
    return
  }
  func.func @transform_0(%arg0: i32) -> (i32, i32) {
    %c0_i32 = arith.constant 0 : i32
    %c0_i32_0 = arith.constant 0 : i32
    return %arg0, %c0_i32 : i32, i32
  }
  func.func @transform_1(%arg0: i32) -> (i32, i32) {
    %c0_i32 = arith.constant 0 : i32
    %c0_i32_0 = arith.constant 0 : i32
    %c0_i32_1 = arith.constant 0 : i32
    return %c0_i32, %c0_i32_0 : i32, i32
  }
  func.func @transform_2(%arg0: i32) -> (i32, i32) {
    %c0_i32 = arith.constant 0 : i32
    %c0_i32_0 = arith.constant 0 : i32
    return %arg0, %c0_i32 : i32, i32
  }
  func.func @transform_3(%arg0: i32) -> (i32, i32, i32) {
    %c0_i32 = arith.constant 0 : i32
    %c0_i32_0 = arith.constant 0 : i32
    %c0_i32_1 = arith.constant 0 : i32
    return %arg0, %c0_i32, %c0_i32_0 : i32, i32, i32
  }
  func.func @transform_4(%arg0: i32) -> (i32, i32, i32) {
    %c0_i32 = arith.constant 0 : i32
    %c0_i32_0 = arith.constant 0 : i32
    %c0_i32_1 = arith.constant 0 : i32
    return %arg0, %c0_i32, %c0_i32_0 : i32, i32, i32
  }
}

module attributes {stable_mosaic.version = 11 : i64} {
  func.func @_scale_shift_relu_kernel(%arg0: i32, %arg1: memref<80x128xf32, #tpu.memory_space<vmem>>, %arg2: memref<1x128xf32, #tpu.memory_space<vmem>>, %arg3: memref<1x128xf32, #tpu.memory_space<vmem>>, %arg4: memref<80x128xbf16, #tpu.memory_space<vmem>>) attributes {dimension_semantics = [#tpu.dimension_semantics<parallel>], iteration_bounds = array<i64: 1>, scalar_prefetch = 0 : i64, scratch_operands = 0 : i64, tpu.core_type = #tpu.core_type<tc>, window_params = [{transform_indices = @transform_0, window_bounds = array<i64: 80, 128>}, {pipeline_mode = #tpu.pipeline_mode<synchronous>, transform_indices = @transform_1, window_bounds = array<i64: 1, 128>}, {pipeline_mode = #tpu.pipeline_mode<synchronous>, transform_indices = @transform_2, window_bounds = array<i64: 1, 128>}, {transform_indices = @transform_3, window_bounds = array<i64: 80, 128>}]} {
    %c0 = arith.constant 0 : index
    %c0_0 = arith.constant 0 : index
    %0 = vector.load %arg1[%c0, %c0_0] : memref<80x128xf32, #tpu.memory_space<vmem>>, vector<80x128xf32>
    %c0_1 = arith.constant 0 : index
    %c0_2 = arith.constant 0 : index
    %1 = vector.load %arg2[%c0_1, %c0_2] : memref<1x128xf32, #tpu.memory_space<vmem>>, vector<1x128xf32>
    %2 = vector.broadcast %1 : vector<1x128xf32> to vector<80x128xf32>
    %3 = arith.mulf %0, %2 : vector<80x128xf32>
    %c0_3 = arith.constant 0 : index
    %c0_4 = arith.constant 0 : index
    %4 = vector.load %arg3[%c0_3, %c0_4] : memref<1x128xf32, #tpu.memory_space<vmem>>, vector<1x128xf32>
    %5 = vector.broadcast %4 : vector<1x128xf32> to vector<80x128xf32>
    %6 = arith.addf %3, %5 : vector<80x128xf32>
    %cst = arith.constant 0.000000e+00 : f32
    %7 = vector.broadcast %cst : f32 to vector<80x128xf32>
    %8 = arith.maximumf %6, %7 : vector<80x128xf32>
    %9 = arith.truncf %8 : vector<80x128xf32> to vector<80x128xbf16>
    %c0_5 = arith.constant 0 : index
    %c0_6 = arith.constant 0 : index
    %10 = vector.load %arg4[%c0_5, %c0_6] : memref<80x128xbf16, #tpu.memory_space<vmem>>, vector<80x128xbf16>
    tpu.vector_store %arg4[%c0_5, %c0_6], %9 {strides = array<i32>} : memref<80x128xbf16, #tpu.memory_space<vmem>>, vector<80x128xbf16>,
    return
  }
  func.func @transform_0(%arg0: i32) -> (i32, i32) {
    %c0_i32 = arith.constant 0 : i32
    %c0_i32_0 = arith.constant 0 : i32
    return %arg0, %c0_i32 : i32, i32
  }
  func.func @transform_1(%arg0: i32) -> (i32, i32) {
    %c0_i32 = arith.constant 0 : i32
    %c0_i32_0 = arith.constant 0 : i32
    %c0_i32_1 = arith.constant 0 : i32
    return %c0_i32, %c0_i32_0 : i32, i32
  }
  func.func @transform_2(%arg0: i32) -> (i32, i32) {
    %c0_i32 = arith.constant 0 : i32
    %c0_i32_0 = arith.constant 0 : i32
    %c0_i32_1 = arith.constant 0 : i32
    return %c0_i32, %c0_i32_0 : i32, i32
  }
  func.func @transform_3(%arg0: i32) -> (i32, i32) {
    %c0_i32 = arith.constant 0 : i32
    %c0_i32_0 = arith.constant 0 : i32
    return %arg0, %c0_i32 : i32, i32
  }
}

module attributes {stable_mosaic.version = 11 : i64} {
  func.func @_gemm_bias_tanh_kernel(%arg0: i32, %arg1: memref<288x384xbf16, #tpu.memory_space<vmem>>, %arg2: memref<384x128xbf16, #tpu.memory_space<vmem>>, %arg3: memref<1x128xf32, #tpu.memory_space<vmem>>, %arg4: memref<288x128xf32, #tpu.memory_space<vmem>>) attributes {dimension_semantics = [#tpu.dimension_semantics<parallel>], iteration_bounds = array<i64: 1>, scalar_prefetch = 0 : i64, scratch_operands = 0 : i64, tpu.core_type = #tpu.core_type<tc>, window_params = [{transform_indices = @transform_0, window_bounds = array<i64: 288, 384>}, {pipeline_mode = #tpu.pipeline_mode<synchronous>, transform_indices = @transform_1, window_bounds = array<i64: 384, 128>}, {pipeline_mode = #tpu.pipeline_mode<synchronous>, transform_indices = @transform_2, window_bounds = array<i64: 1, 128>}, {transform_indices = @transform_3, window_bounds = array<i64: 288, 128>}]} {
    %c0 = arith.constant 0 : index
    %c0_0 = arith.constant 0 : index
    %0 = vector.load %arg1[%c0, %c0_0] : memref<288x384xbf16, #tpu.memory_space<vmem>>, vector<288x384xbf16>
    %c0_1 = arith.constant 0 : index
    %c0_2 = arith.constant 0 : index
    %1 = vector.load %arg2[%c0_1, %c0_2] : memref<384x128xbf16, #tpu.memory_space<vmem>>, vector<384x128xbf16>
    %cst = arith.constant dense<0.000000e+00> : vector<288x128xf32>
    %2 = tpu.matmul %0, %1, %cst {dimension_numbers = #tpu.dot_dimension_numbers<[1], [0], [0], [1], [0, 0, 1, 1], [], []>} : vector<288x384xbf16>, vector<384x128xbf16>, vector<288x128xf32> -> vector<288x128xf32>
    %c0_3 = arith.constant 0 : index
    %c0_4 = arith.constant 0 : index
    %3 = vector.load %arg3[%c0_3, %c0_4] : memref<1x128xf32, #tpu.memory_space<vmem>>, vector<1x128xf32>
    %4 = vector.broadcast %3 : vector<1x128xf32> to vector<288x128xf32>
    %5 = arith.addf %2, %4 : vector<288x128xf32>
    %6 = math.tanh %5 : vector<288x128xf32>
    %c0_5 = arith.constant 0 : index
    %c0_6 = arith.constant 0 : index
    %7 = vector.load %arg4[%c0_5, %c0_6] : memref<288x128xf32, #tpu.memory_space<vmem>>, vector<288x128xf32>
    tpu.vector_store %arg4[%c0_5, %c0_6], %6 {strides = array<i32>} : memref<288x128xf32, #tpu.memory_space<vmem>>, vector<288x128xf32>,
    return
  }
  func.func @transform_0(%arg0: i32) -> (i32, i32) {
    %c0_i32 = arith.constant 0 : i32
    %c0_i32_0 = arith.constant 0 : i32
    return %arg0, %c0_i32 : i32, i32
  }
  func.func @transform_1(%arg0: i32) -> (i32, i32) {
    %c0_i32 = arith.constant 0 : i32
    %c0_i32_0 = arith.constant 0 : i32
    %c0_i32_1 = arith.constant 0 : i32
    return %c0_i32, %c0_i32_0 : i32, i32
  }
  func.func @transform_2(%arg0: i32) -> (i32, i32) {
    %c0_i32 = arith.constant 0 : i32
    %c0_i32_0 = arith.constant 0 : i32
    %c0_i32_1 = arith.constant 0 : i32
    return %c0_i32, %c0_i32_0 : i32, i32
  }
  func.func @transform_3(%arg0: i32) -> (i32, i32) {
    %c0_i32 = arith.constant 0 : i32
    %c0_i32_0 = arith.constant 0 : i32
    return %arg0, %c0_i32 : i32, i32
  }
}

</mosaic_0001>

<bundles_post_ra>
// kernel: tile.48
= control target key start
LH: loop header
LB: loop body
LE: loop exit
PB: predicated region body
PF: predicated region fallthrough
CT: control target
= control target key end

     0   :  { %s22_s0 = inlined_call_operand.vmem [shape: f32[64], index: 0, kind: input, shape index: {}]   ;;  %s23_s1 = inlined_call_operand.vmem [shape: f32[4,64], index: 1, kind: output, shape index: {}]  }
   0x1   :  { %v4_v0 = vld [vmem:[%s22_s0] ss:$0 sm:$0xff] }
   0x2   :  { %5 = vst [vmem:[%s23_s1] sm:$0xf] %v4_v0 }

// kernel: generator_forward.8
= control target key start
LH: loop header
LB: loop body
LE: loop exit
PB: predicated region body
PF: predicated region fallthrough
CT: control target
= control target key end

     0   :  { %v36_v0 = vlaneseq  ;;  %s418_s1 = inlined_call_operand.vmem [shape: f32[1,1152], index: 1, kind: input, shape index: {}]   ;;  %s419_s2 = inlined_call_operand.vmem [shape: f32[1,1152], index: 2, kind: input, shape index: {}]   ;;  %s420_s0 = inlined_call_operand.vmem [shape: f32[16,1152], index: 0, kind: input, shape index: {}]   ;;  %s421_s3 = inlined_call_operand.vmem [shape: bf16[16,1152], index: 3, kind: output, shape index: {}]  }
   0x1   :  { %v32_v2 = vld [vmem:[%s418_s1] sm:$0xff]  ;;  %v15_v9 = vld [vmem:[%s420_s0 + $0x8] sm:$0xff]  ;;  %v16_v18 = vld [vmem:[%s420_s0 + $0x10] sm:$0xff] }
   0x2   :  { %v296_v1 = vshrl.u32 %v36_v0, 7  ;;  %v99_v3 = vld [vmem:[%s419_s2] sm:$0xff]  ;;  %v17_v19 = vld [vmem:[%s420_s0 + $0x18] sm:$0xff]  ;;  %v19_v25 = vld [vmem:[%s420_s0 + $0x28] sm:$0xff] }
   0x3   :  { %v14_v8 = vld [vmem:[%s420_s0] sm:$0xff]  ;;  %v20_v38 = vld [vmem:[%s420_s0 + $0x30] sm:$0xff]  ;;  %v21_v39 = vld [vmem:[%s420_s0 + $0x38] sm:$0xff] }
   0x4   :  { %v38_v4 = vsub.s32 0, %v296_v1  ;;  %v42_v5 = vsub.s32 1, %v296_v1  ;;  %v46_v6 = vsub.s32 2, %v296_v1  ;;  %v50_v7 = vsub.s32 3, %v296_v1  ;;  %v18_v24 = vld [vmem:[%s420_s0 + $0x20] sm:$0xff]  ;;  %v23_v50 = vld [vmem:[%s420_s0 + $0x48] sm:$0xff] }
   0x5   :  { %v54_v10 = vsub.s32 4, %v296_v1  ;;  %v58_v11 = vsub.s32 5, %v296_v1  ;;  %v62_v12 = vsub.s32 6, %v296_v1  ;;  %v66_v13 = vsub.s32 7, %v296_v1  ;;  %v22_v48 = vld [vmem:[%s420_s0 + $0x40] sm:$0xff]  ;;  %v24_v55 = vld [vmem:[%s420_s0 + $0x50] sm:$0xff] }
   0x6   :  { %v39_v14 = vrot.slane %v32_v2, %v38_v4  ;;  %v43_v15 = vrot.slane %v32_v2, %v42_v5  ;;  %v106_v16 = vrot.slane %v99_v3, %v38_v4  ;;  %v318_v17 = vrot.slane %v99_v3, %v42_v5  ;;  %v254_v49 = vld [vmem:[%s418_s1 + $0x8] ss:$0 sm:$0xff]  ;;  %v25_v56 = vld [vmem:[%s420_s0 + $0x58] sm:$0xff]  ;;  %v26_v62 = vld [vmem:[%s420_s0 + $0x60] sm:$0xff] }
   0x7   :  { %v47_v20 = vrot.slane %v32_v2, %v46_v6  ;;  %v51_v21 = vrot.slane %v32_v2, %v50_v7  ;;  %v114_v22 = vrot.slane %v99_v3, %v46_v6  ;;  %v326_v23 = vrot.slane %v99_v3, %v50_v7  ;;  %v255_v61 = vld [vmem:[%s419_s2 + $0x8] ss:$0 sm:$0xff] }
   0x8   :  { %v81_v26 = vmul.f32 %v39_v14, %v14_v8  ;;  %v82_v27 = vmul.f32 %v43_v15, %v15_v9  ;;  %v55_v28 = vrot.slane %v32_v2, %v54_v10  ;;  %v334_v29 = vrot.slane %v32_v2, %v58_v11  ;;  %v27_v4 = vld [vmem:[%s420_s0 + $0x68] sm:$0xff] }
   0x9   :  { %v83_v30 = vmul.f32 %v47_v20, %v16_v18  ;;  %v84_v31 = vmul.f32 %v51_v21, %v17_v19  ;;  %v122_v32 = vrot.slane %v99_v3, %v54_v10  ;;  %v336_v33 = vrot.slane %v99_v3, %v58_v11  ;;  %v29_v19 = vld [vmem:[%s420_s0 + $0x78] sm:$0xff] }
   0xa   :  { %v148_v34 = vadd.f32 %v106_v16, %v81_v26  ;;  %v149_v35 = vadd.f32 %v318_v17, %v82_v27  ;;  %v85_v36 = vmul.f32 %v55_v28, %v18_v24  ;;  %v86_v37 = vmul.f32 %v334_v29, %v19_v25  ;;  %v30_v25 = vld [vmem:[%s420_s0 + $0x80] sm:$0xff] }
   0xb   :  { %v150_v40 = vadd.f32 %v114_v22, %v83_v30  ;;  %v151_v41 = vadd.f32 %v326_v23, %v84_v31  ;;  %v63_v42 = vrot.slane %v32_v2, %v62_v12  ;;  %v67_v43 = vrot.slane %v32_v2, %v66_v13 }
   0xc   :  { %v166_v44 = vmax.f32 %v148_v34, 0.0  ;;  %v167_v45 = vmax.f32 %v149_v35, 0.0  ;;  %v152_v46 = vadd.f32 %v122_v32, %v85_v36  ;;  %v153_v47 = vadd.f32 %v336_v33, %v86_v37 }
   0xd   :  { %v168_v51 = vmax.f32 %v150_v40, 0.0  ;;  %v169_v52 = vmax.f32 %v151_v41, 0.0  ;;  %v87_v53 = vmul.f32 %v63_v42, %v20_v38  ;;  %v88_v54 = vmul.f32 %v67_v43, %v21_v39 }
   0xe   :  { %v266_v57 = vpack.c.bf16 %v167_v45, %v166_v44  ;;  %v170_v58 = vmax.f32 %v152_v46, 0.0  ;;  %v171_v59 = vmax.f32 %v153_v47, 0.0  ;;  %v130_v60 = vrot.slane %v99_v3, %v62_v12  ;;  %v28_v12 = vld [vmem:[%s420_s0 + $0x70] sm:$0xff] }
   0xf   :  { %v267_v63 = vpack.c.bf16 %v169_v52, %v168_v51  ;;  %v134_v0 = vrot.slane %v99_v3, %v66_v13  ;;  %v89_v1 = vmul.f32 %v254_v49, %v22_v48  ;;  %v90_v2 = vmul.f32 %v39_v14, %v23_v50 }
  0x10   :  { %240 = vst [vmem:[%s421_s3] sm:$0xff] %v266_v57  ;;  %v268_v5 = vpack.c.bf16 %v171_v59, %v170_v58  ;;  %v154_v6 = vadd.f32 %v130_v60, %v87_v53  ;;  %v91_v7 = vmul.f32 %v43_v15, %v24_v55  ;;  %v92_v8 = vmul.f32 %v47_v20, %v25_v56 }
  0x11   :  { %241 = vst [vmem:[%s421_s3 + $0x8] sm:$0xff] %v267_v63  ;;  %v155_v9 = vadd.f32 %v134_v0, %v88_v54  ;;  %v156_v3 = vadd.f32 %v255_v61, %v89_v1  ;;  %v157_v10 = vadd.f32 %v106_v16, %v90_v2  ;;  %v93_v11 = vmul.f32 %v51_v21, %v26_v62 }
  0x12   :  { %242 = vst [vmem:[%s421_s3 + $0x10] sm:$0xff] %v268_v5  ;;  %v172_v13 = vmax.f32 %v154_v6, 0.0  ;;  %v158_v14 = vadd.f32 %v318_v17, %v91_v7  ;;  %v159_v15 = vadd.f32 %v114_v22, %v92_v8  ;;  %v94_v18 = vmul.f32 %v55_v28, %v27_v4  ;;  %v31_v22 = vld [vmem:[%s420_s0 + $0x88] sm:$0xff] }
  0x13   :  { %v173_v20 = vmax.f32 %v155_v9, 0.0  ;;  %v174_v16 = vmax.f32 %v156_v3, 0.0  ;;  %v175_v21 = vmax.f32 %v157_v10, 0.0  ;;  %v160_v24 = vadd.f32 %v326_v23, %v93_v11 }
  0x14   :  { %v176_v26 = vmax.f32 %v158_v14, 0.0  ;;  %v177_v27 = vmax.f32 %v159_v15, 0.0  ;;  %v95_v30 = vmul.f32 %v334_v29, %v28_v12  ;;  %v161_v17 = vadd.f32 %v122_v32, %v94_v18 }
  0x15   :  { %v269_v28 = vpack.c.bf16 %v173_v20, %v172_v13  ;;  %v270_v31 = vpack.c.bf16 %v174_v16, %v174_v16  ;;  %v178_v34 = vmax.f32 %v160_v24, 0.0  ;;  %v96_v35 = vmul.f32 %v63_v42, %v29_v19 }
  0x16   :  { %v271_v36 = vpack.c.bf16 %v176_v26, %v175_v21  ;;  %v162_v23 = vadd.f32 %v336_v33, %v95_v30  ;;  %v179_v37 = vmax.f32 %v161_v17, 0.0  ;;  %v97_v38 = vmul.f32 %v67_v43, %v30_v25 }
  0x17   :  { %243 = vst [vmem:[%s421_s3 + $0x18] sm:$0xff] %v269_v28  ;;  %244 = vst [vmem:[%s421_s3 + $0x20] sm:$0xf] %v270_v31  ;;  %v272_v29 = vpack.c.bf16 %v178_v34, %v177_v27  ;;  %v163_v32 = vadd.f32 %v130_v60, %v96_v35  ;;  %v98_v39 = vmul.f32 %v254_v49, %v31_v22 }
  0x18   :  { %245 = vst [vmem:[%s421_s3 + $0x24] sm:$0xff] %v271_v36  ;;  %v180_v40 = vmax.f32 %v162_v23, 0.0  ;;  %v164_v41 = vadd.f32 %v134_v0, %v97_v38 }
  0x19   :  { %246 = vst [vmem:[%s421_s3 + $0x2c] sm:$0xff] %v272_v29  ;;  %v181_v33 = vmax.f32 %v163_v32, 0.0  ;;  %v165_v42 = vadd.f32 %v255_v61, %v98_v39 }
  0x1a   :  { %v273_v43 = vpack.c.bf16 %v180_v40, %v179_v37  ;;  %v182_v44 = vmax.f32 %v164_v41, 0.0 }
  0x1b   :  { %v183_v45 = vmax.f32 %v165_v42, 0.0 }
  0x1c   :  { %247 = vst [vmem:[%s421_s3 + $0x34] sm:$0xff] %v273_v43  ;;  %v274_v46 = vpack.c.bf16 %v182_v44, %v181_v33 }
  0x1d   :  { %v275_v47 = vpack.c.bf16 %v183_v45, %v183_v45 }
  0x1e   :  { %248 = vst [vmem:[%s421_s3 + $0x3c] sm:$0xff] %v274_v46 }
  0x1f   :  { %249 = vst [vmem:[%s421_s3 + $0x44] sm:$0xf] %v275_v47 }

// kernel: generator_forward.7
= control target key start
LH: loop header
LB: loop body
LE: loop exit
PB: predicated region body
PF: predicated region fallthrough
CT: control target
= control target key end

     0   :  { %10 = vsyncpa [#allocation3], 0  ;;  %s1267_s15 = smov [#allocation2]   ;;  %s1429_s0 = inlined_call_operand.vmem [shape: bf16[16,128], index: 0, kind: input, shape index: {}]   ;;  %s1430_s1 = inlined_call_operand.hbm [shape: bf16[128,1152], index: 1, kind: input, shape index: {}]   ;;  %s1431_s2 = inlined_call_operand.vmem [shape: f32[16,1152], index: 2, kind: output, shape index: {0}]   ;;  %s1432_s3 = inlined_call_operand.vmem [shape: f32[1,1,1152], index: 3, kind: output, shape index: {1}]   ;;  %s1433_s4 = inlined_call_operand.vmem [shape: f32[1,1,1152], index: 4, kind: output, shape index: {2}]  }
   0x1   :  { %s18_s16 = sshll.u32 %s1267_s15, 4  ;;  %s1243_s19 = scalar_lea.hbm %s1430_s1, 9216  ;;  %s19_s16 = int_to_ptr.vmem [resolvable:$true] %s18_s16 }
   0x2   :  { %p1244_p0 = scmp.ne.s32.totalorder %s1430_s1, %s1243_s19  ;;  %p1247_p1 = scmp.lt.u32.totalorder %s1243_s19, %s1430_s1 }
   0x4   :  { %p1249_p2 = pnand %p1247_p1, %p1244_p0 }
   0x6   :  { %1252 = shalt.err (!%p1249_p2)
}
   0x7   :  { %s1253_s24 = scalar_lea.vmem %s19_s16, 9216  ;;  %p1258_p4 = scmp.lt.s32.totalorder %s19_s16, %s19_s16 }
   0x8   :  { %p1254_p3 = scmp.ne.s32.totalorder %s19_s16, %s1253_s24  ;;  %p1259_p5 = scmp.lt.s32.totalorder %s1253_s24, %s1253_s24 }
   0xa   :  { %p1260_p6 = por %p1259_p5, %p1258_p4 }
   0xc   :  { %p1261_p7 = pnand %p1260_p6, %p1254_p3 }
   0xe   :  { %1264 = shalt.err (!%p1261_p7)
}
   0xf   :  { %s1268_s25 = smov 576   ;;  %s1269_s26 = smov 36  }
  0x10   :  { %24 = dma.hbm_to_vmem [thread:$0]  %s1430_s1, 9216, %s19_s16, [#allocation3], %s1268_s25, %s1268_s25, %s1269_s26  }
  0x11   :  { %1265 = dma.done.wait [#allocation3], 9216  }
  0x12   :  { %1266 = vsyncadd [#allocation3], 4294958080  ;;  %v1270_v0 = vmov 0   ;;  %v1138_v1 = vld [vmem:[#allocation2 + $0x4] ss:$36 sps:$4 sm:$0xff]   ;;  %vm1272_vm0 = vmmov 0  }
  0x13   :  { %517 = vmatprep.mubr.bf16.mxu0 %v1270_v0  ;;  %560 = vmatprep.mubr.bf16.mxu1 %v1270_v0  ;;  %v1140_v2 = vld [vmem:[#allocation2 + $0xc] ss:$36 sps:$4 sm:$0xff]   ;;  %v1142_v3 = vld [vmem:[#allocation2] ss:$36 sps:$4 sm:$0xff]   ;;  %v1146_v6 = vld [vmem:[#allocation2 + $0x54] ss:$36 sps:$4 sm:$0xff]  }
  0x14   :  { %485 = vmatprep.subr.bf16.mxu0 %v1138_v1  ;;  %v1143_v4 = vld [vmem:[#allocation2 + $0x8] ss:$36 sps:$4 sm:$0xff]   ;;  %528 = vmatprep.subr.bf16.mxu1 %v1140_v2  ;;  %v1149_v8 = vld [vmem:[#allocation2 + $0x50] ss:$36 sps:$4 sm:$0xff]   ;;  %v1152_v10 = vld [vmem:[#allocation2 + $0x9c] ss:$36 sps:$4 sm:$0xff]  }
  0x15   :  { %v1144_v5 = vld [vmem:[#allocation2 + $0x4c] ss:$36 sps:$4 sm:$0xff]   ;;  %486 = vmatpush1.bf16.msra.mxu0 %v1142_v3  ;;  %529 = vmatpush1.bf16.msra.mxu1 %v1143_v4  ;;  %v1150_v9 = vld [vmem:[#allocation2 + $0x94] ss:$36 sps:$4 sm:$0xff]   ;;  %v1156_v13 = vld [vmem:[#allocation2 + $0xdc] ss:$36 sps:$4 sm:$0xff]  }
  0x16   :  { %v1148_v7 = vld [vmem:[#allocation2 + $0x48] ss:$36 sps:$4 sm:$0xff]   ;;  %487 = vmatprep.subr.bf16.mxu0 %v1144_v5  ;;  %530 = vmatprep.subr.bf16.mxu1 %v1146_v6  ;;  %v1154_v11 = vld [vmem:[#allocation2 + $0x90] ss:$36 sps:$4 sm:$0xff]   ;;  %v1155_v12 = vld [vmem:[#allocation2 + $0x98] ss:$36 sps:$4 sm:$0xff]  }
  0x17   :  { %v1158_v14 = vld [vmem:[#allocation2 + $0xe4] ss:$36 sps:$4 sm:$0xff]   ;;  %v1160_v15 = vld [vmem:[#allocation2 + $0xd8] ss:$36 sps:$4 sm:$0xff]   ;;  %v1164_v18 = vld [vmem:[#allocation2 + $0x12c] ss:$36 sps:$4 sm:$0xff]  }
  0x18   :  { %v1161_v16 = vld [vmem:[#allocation2 + $0xe0] ss:$36 sps:$4 sm:$0xff]   ;;  %v1167_v20 = vld [vmem:[#allocation2 + $0x128] ss:$36 sps:$4 sm:$0xff]   ;;  %v1170_v22 = vld [vmem:[#allocation2 + $0x174] ss:$36 sps:$4 sm:$0xff]  }
  0x19   :  { %488 = vmatpush1.bf16.msra.mxu0 %v1148_v7  ;;  %531 = vmatpush1.bf16.msra.mxu1 %v1149_v8  ;;  %v1162_v17 = vld [vmem:[#allocation2 + $0x124] ss:$36 sps:$4 sm:$0xff]   ;;  %v1168_v21 = vld [vmem:[#allocation2 + $0x16c] ss:$36 sps:$4 sm:$0xff]   ;;  %v1174_v25 = vld [vmem:[#allocation2 + $0x1b4] ss:$36 sps:$4 sm:$0xff]  }
  0x1a   :  { %489 = vmatprep.subr.bf16.mxu0 %v1150_v9  ;;  %532 = vmatprep.subr.bf16.mxu1 %v1152_v10  ;;  %v1166_v19 = vld [vmem:[#allocation2 + $0x120] ss:$36 sps:$4 sm:$0xff]   ;;  %v1172_v23 = vld [vmem:[#allocation2 + $0x168] ss:$36 sps:$4 sm:$0xff]   ;;  %v1173_v24 = vld [vmem:[#allocation2 + $0x170] ss:$36 sps:$4 sm:$0xff]  }
  0x1b   :  { %v1176_v26 = vld [vmem:[#allocation2 + $0x1bc] ss:$36 sps:$4 sm:$0xff]   ;;  %v1178_v27 = vld [vmem:[#allocation2 + $0x1b0] ss:$36 sps:$4 sm:$0xff]   ;;  %v1182_v30 = vld [vmem:[#allocation2 + $0x204] ss:$36 sps:$4 sm:$0xff]  }
  0x1c   :  { %v1179_v28 = vld [vmem:[#allocation2 + $0x1b8] ss:$36 sps:$4 sm:$0xff]   ;;  %v1185_v32 = vld [vmem:[#allocation2 + $0x200] ss:$36 sps:$4 sm:$0xff]   ;;  %v1187_v36 = vld [vmem:[#allocation2 + $0x10] ss:$36 sps:$4 sm:$0xff]  }
  0x1d   :  { %490 = vmatpush1.bf16.msra.mxu0 %v1154_v11  ;;  %533 = vmatpush1.bf16.msra.mxu1 %v1155_v12  ;;  %v1180_v29 = vld [vmem:[#allocation2 + $0x1fc] ss:$36 sps:$4 sm:$0xff]   ;;  %v1189_v33 = vld [vmem:[#allocation2 + $0x14] ss:$36 sps:$4 sm:$0xff]   ;;  %v1198_v39 = vld [vmem:[#allocation2 + $0x64] ss:$36 sps:$4 sm:$0xff]  }
  0x1e   :  { %491 = vmatprep.subr.bf16.mxu0 %v1156_v13  ;;  %534 = vmatprep.subr.bf16.mxu1 %v1158_v14  ;;  %v1184_v31 = vld [vmem:[#allocation2 + $0x1f8] ss:$36 sps:$4 sm:$0xff]   ;;  %v1316_v35 = vld [vmem:[%s1429_s0] sm:$0xff]   ;;  %v1204_v43 = vld [vmem:[#allocation2 + $0xac] ss:$36 sps:$4 sm:$0xff]   ;;  %v1271_v3 = vmov 0.0   ;;  %v795_v13 = vlaneseq }
  0x1f   :  { %v1192_v34 = vld [vmem:[#allocation2 + $0x1c] ss:$36 sps:$4 sm:$0xff]   ;;  %v1201_v42 = vld [vmem:[#allocation2 + $0xa4] ss:$36 sps:$4 sm:$0xff]   ;;  %v1207_v46 = vld [vmem:[#allocation2 + $0xec] ss:$36 sps:$4 sm:$0xff]  }
  0x20   :  { %v1190_v37 = vld [vmem:[#allocation2 + $0x18] ss:$36 sps:$4 sm:$0xff]   ;;  %v1196_v41 = vld [vmem:[#allocation2 + $0x60] ss:$36 sps:$4 sm:$0xff]   ;;  %v1202_v45 = vld [vmem:[#allocation2 + $0xa8] ss:$36 sps:$4 sm:$0xff]  }
  0x21   :  { %492 = vmatpush1.bf16.msra.mxu0 %v1160_v15  ;;  %535 = vmatpush1.bf16.msra.mxu1 %v1161_v16  ;;  %v1195_v38 = vld [vmem:[#allocation2 + $0x5c] ss:$36 sps:$4 sm:$0xff]   ;;  %v1210_v47 = vld [vmem:[#allocation2 + $0xf4] ss:$36 sps:$4 sm:$0xff]   ;;  %v1205_v48 = vld [vmem:[#allocation2 + $0xe8] ss:$36 sps:$4 sm:$0xff]  }
  0x22   :  { %493 = vmatprep.subr.bf16.mxu0 %v1162_v17  ;;  %536 = vmatprep.subr.bf16.mxu1 %v1164_v18  ;;  %v1193_v40 = vld [vmem:[#allocation2 + $0x58] ss:$36 sps:$4 sm:$0xff]   ;;  %v1199_v44 = vld [vmem:[#allocation2 + $0xa0] ss:$36 sps:$4 sm:$0xff]   ;;  %v1208_v49 = vld [vmem:[#allocation2 + $0xf0] ss:$36 sps:$4 sm:$0xff]  }
  0x23   :  { %v1213_v50 = vld [vmem:[#allocation2 + $0x134] ss:$36 sps:$4 sm:$0xff]   ;;  %v1216_v51 = vld [vmem:[#allocation2 + $0x13c] ss:$36 sps:$4 sm:$0xff]   ;;  %v1222_v55 = vld [vmem:[#allocation2 + $0x184] ss:$36 sps:$4 sm:$0xff]  }
  0x24   :  { %v1211_v52 = vld [vmem:[#allocation2 + $0x130] ss:$36 sps:$4 sm:$0xff]   ;;  %v1214_v53 = vld [vmem:[#allocation2 + $0x138] ss:$36 sps:$4 sm:$0xff]   ;;  %v1220_v57 = vld [vmem:[#allocation2 + $0x180] ss:$36 sps:$4 sm:$0xff]  }
  0x25   :  { %494 = vmatpush1.bf16.msra.mxu0 %v1166_v19  ;;  %537 = vmatpush1.bf16.msra.mxu1 %v1167_v20  ;;  %v1219_v54 = vld [vmem:[#allocation2 + $0x17c] ss:$36 sps:$4 sm:$0xff]   ;;  %v1225_v58 = vld [vmem:[#allocation2 + $0x1c4] ss:$36 sps:$4 sm:$0xff]   ;;  %v1228_v59 = vld [vmem:[#allocation2 + $0x1cc] ss:$36 sps:$4 sm:$0xff]  }
  0x26   :  { %495 = vmatprep.subr.bf16.mxu0 %v1168_v21  ;;  %538 = vmatprep.subr.bf16.mxu1 %v1170_v22  ;;  %v1217_v56 = vld [vmem:[#allocation2 + $0x178] ss:$36 sps:$4 sm:$0xff]   ;;  %v1223_v60 = vld [vmem:[#allocation2 + $0x1c0] ss:$36 sps:$4 sm:$0xff]   ;;  %v1226_v61 = vld [vmem:[#allocation2 + $0x1c8] ss:$36 sps:$4 sm:$0xff]  }
  0x27   :  { %v1231_v62 = vld [vmem:[#allocation2 + $0x20c] ss:$36 sps:$4 sm:$0xff]   ;;  %v1234_v63 = vld [vmem:[#allocation2 + $0x214] ss:$36 sps:$4 sm:$0xff]   ;;  %v1235_v2 = vld [vmem:[#allocation2 + $0x20] ss:$36 sps:$4 sm:$0xff]  }
  0x28   :  { %v1232_v1 = vld [vmem:[#allocation2 + $0x210] ss:$36 sps:$4 sm:$0xff]   ;;  %v1236_v4 = vld [vmem:[#allocation2 + $0x68] ss:$36 sps:$4 sm:$0xff]   ;;  %v1238_v6 = vld [vmem:[#allocation2 + $0xf8] ss:$36 sps:$4 sm:$0xff]  }
  0x29   :  { %496 = vmatpush1.bf16.msra.mxu0 %v1172_v23  ;;  %539 = vmatpush1.bf16.msra.mxu1 %v1173_v24  ;;  %v1237_v5 = vld [vmem:[#allocation2 + $0xb0] ss:$36 sps:$4 sm:$0xff]   ;;  %v1239_v7 = vld [vmem:[#allocation2 + $0x140] ss:$36 sps:$4 sm:$0xff]   ;;  %v1240_v8 = vld [vmem:[#allocation2 + $0x188] ss:$36 sps:$4 sm:$0xff]  }
  0x2a   :  { %497 = vmatprep.subr.bf16.mxu0 %v1174_v25  ;;  %540 = vmatprep.subr.bf16.mxu1 %v1176_v26  ;;  %v1241_v9 = vld [vmem:[#allocation2 + $0x1d0] ss:$36 sps:$4 sm:$0xff]   ;;  %v1242_v10 = vld [vmem:[#allocation2 + $0x218] ss:$36 sps:$4 sm:$0xff]   ;;  %v1273_v11 = vmov 1966171168  }
  0x2b   :  { %v793_v12 = vunpack.c.l.s4 %v1273_v11  ;;  %v796_v15 = vshrl.u32 %v795_v13, 7  ;;  %vm856_vm1 = vcmp.lt.s32.totalorder %v795_v13, 128 }
  0x2d   :  { %498 = vmatpush1.bf16.msra.mxu0 %v1178_v27  ;;  %541 = vmatpush1.bf16.msra.mxu1 %v1179_v28  ;;  %v794_v14 = vunpack.c.0.s8 %v793_v12 }
  0x2e   :  { %499 = vmatprep.subr.bf16.mxu0 %v1180_v29  ;;  %542 = vmatprep.subr.bf16.mxu1 %v1182_v30 }
  0x2f   :  { %v1338_v26 = vsub.s32 %v794_v14, %v796_v15 }
  0x31   :  { %500 = vmatpush1.bf16.msra.mxu0 %v1184_v31  ;;  %543 = vmatpush1.bf16.msra.mxu1 %v1185_v32 }
  0x32   :  { %571 = vmatprep.subr.bf16.mxu0 %v1189_v33  ;;  %614 = vmatprep.subr.bf16.mxu1 %v1192_v34 }
  0x34   :  { %518 = vmatmul.mubr.bf16.vlgmr.msra.gmra.mrb[0].mxu0 %v1316_v35  ;;  %561 = vmatmul.mubr.bf16.vlgmr.msra.gmra.mrb[0].mxu1 %v1316_v35 }
  0x35   :  { %572 = vmatpush1.bf16.msra.mxu0 %v1187_v36  ;;  %615 = vmatpush1.bf16.msra.mxu1 %v1190_v37 }
  0x36   :  { %573 = vmatprep.subr.bf16.mxu0 %v1195_v38  ;;  %616 = vmatprep.subr.bf16.mxu1 %v1198_v39 }
  0x37   :  { %603 = vmatprep.mubr.bf16.mxu0 %v1270_v0  ;;  %646 = vmatprep.mubr.bf16.mxu1 %v1270_v0  ;;  %v1229_v0 = vld [vmem:[#allocation2 + $0x208] ss:$36 sps:$4 sm:$0xff]  }
  0x39   :  { %574 = vmatpush1.bf16.msra.mxu0 %v1193_v40  ;;  %617 = vmatpush1.bf16.msra.mxu1 %v1196_v41 }
  0x3a   :  { %575 = vmatprep.subr.bf16.mxu0 %v1201_v42  ;;  %618 = vmatprep.subr.bf16.mxu1 %v1204_v43 }
  0x3d   :  { %576 = vmatpush1.bf16.msra.mxu0 %v1199_v44  ;;  %619 = vmatpush1.bf16.msra.mxu1 %v1202_v45 }
  0x3e   :  { %577 = vmatprep.subr.bf16.mxu0 %v1207_v46  ;;  %620 = vmatprep.subr.bf16.mxu1 %v1210_v47 }
  0x41   :  { %578 = vmatpush1.bf16.msra.mxu0 %v1205_v48  ;;  %621 = vmatpush1.bf16.msra.mxu1 %v1208_v49 }
  0x42   :  { %579 = vmatprep.subr.bf16.mxu0 %v1213_v50  ;;  %622 = vmatprep.subr.bf16.mxu1 %v1216_v51 }
  0x45   :  { %580 = vmatpush1.bf16.msra.mxu0 %v1211_v52  ;;  %623 = vmatpush1.bf16.msra.mxu1 %v1214_v53 }
  0x46   :  { %581 = vmatprep.subr.bf16.mxu0 %v1219_v54  ;;  %624 = vmatprep.subr.bf16.mxu1 %v1222_v55 }
  0x49   :  { %582 = vmatpush1.bf16.msra.mxu0 %v1217_v56  ;;  %625 = vmatpush1.bf16.msra.mxu1 %v1220_v57 }
  0x4a   :  { %583 = vmatprep.subr.bf16.mxu0 %v1225_v58  ;;  %626 = vmatprep.subr.bf16.mxu1 %v1228_v59 }
  0x4d   :  { %584 = vmatpush1.bf16.msra.mxu0 %v1223_v60  ;;  %627 = vmatpush1.bf16.msra.mxu1 %v1226_v61 }
  0x4e   :  { %585 = vmatprep.subr.bf16.mxu0 %v1231_v62  ;;  %628 = vmatprep.subr.bf16.mxu1 %v1234_v63 }
  0x51   :  { %586 = vmatpush1.bf16.msra.mxu0 %v1229_v0  ;;  %629 = vmatpush1.bf16.msra.mxu1 %v1232_v1 }
  0x52   :  { %1111 = vmatprep.subr.bf16.mxu0 %v1271_v3 }
  0x54   :  { %604 = vmatmul.mubr.bf16.vlgmr.msra.gmra.mrb[4].mxu0 %v1316_v35  ;;  %647 = vmatmul.mubr.bf16.vlgmr.msra.gmra.mrb[4].mxu1 %v1316_v35 }
  0x55   :  { %1112 = vmatpush3.bf16.msra.mxu0 %v1235_v2  ;;  %1127 = vmatprep.mubr.msk.bf16.mxu0 %vm1272_vm0, %v1271_v3 }
  0x56   :  { %1113 = vmatprep.subr.bf16.mxu0 %v1271_v3 }
  0x59   :  { %1114 = vmatpush3.bf16.msra.mxu0 %v1236_v4 }
  0x5a   :  { %1115 = vmatprep.subr.bf16.mxu0 %v1271_v3 }
  0x5d   :  { %1116 = vmatpush3.bf16.msra.mxu0 %v1237_v5 }
  0x5e   :  { %1117 = vmatprep.subr.bf16.mxu0 %v1271_v3 }
  0x61   :  { %1118 = vmatpush3.bf16.msra.mxu0 %v1238_v6 }
  0x62   :  { %1119 = vmatprep.subr.bf16.mxu0 %v1271_v3 }
  0x65   :  { %1120 = vmatpush3.bf16.msra.mxu0 %v1239_v7 }
  0x66   :  { %1121 = vmatprep.subr.bf16.mxu0 %v1271_v3 }
  0x69   :  { %1122 = vmatpush3.bf16.msra.mxu0 %v1240_v8 }
  0x6a   :  { %1123 = vmatprep.subr.bf16.mxu0 %v1271_v3 }
  0x6d   :  { %1124 = vmatpush3.bf16.msra.mxu0 %v1241_v9 }
  0x6e   :  { %1125 = vmatprep.subr.bf16.mxu0 %v1271_v3 }
  0x71   :  { %1126 = vmatpush3.bf16.msra.mxu0 %v1242_v10 }
  0x74   :  { %1128 = vmatmul.mubr.bf16.vlgmr.msra.gmra.mrb[8].mxu0 %v1316_v35 }
 0x107   :  { %v519_v16 = vpop.f32.mrb[0].mxu0  ;;  %v562_v17 = vpop.f32.mrb[0].mxu1 }
 0x108   :  { %698 = vst [vmem:[%s1431_s2] sm:$0xff] %v519_v16  ;;  %v859_v18 = vmul.f32 %v519_v16, %v519_v16  ;;  %700 = vst [vmem:[%s1431_s2 + $0x10] sm:$0xff] %v562_v17  ;;  %v861_v19 = vmul.f32 %v562_v17, %v562_v17  ;;  %v521_v20 = vpop.f32.mrb[1].mxu0  ;;  %v564_v21 = vpop.f32.mrb[1].mxu1 }
 0x109   :  { %699 = vst [vmem:[%s1431_s2 + $0x8] sm:$0xff] %v521_v20  ;;  %v860_v22 = vmul.f32 %v521_v20, %v521_v20  ;;  %701 = vst [vmem:[%s1431_s2 + $0x18] sm:$0xff] %v564_v21  ;;  %v862_v23 = vmul.f32 %v564_v21, %v564_v21  ;;  %v523_v24 = vpop.f32.mrb[2].mxu0  ;;  %v566_v25 = vpop.f32.mrb[2].mxu1 }
 0x10a   :  { %707 = vst [vmem:[%s1431_s2 + $0x48] sm:$0xff] %v523_v24  ;;  %v716_v27 = vadd.f32 %v523_v24, %v519_v16  ;;  %v868_v28 = vmul.f32 %v523_v24, %v523_v24  ;;  %709 = vst [vmem:[%s1431_s2 + $0x58] sm:$0xff] %v566_v25  ;;  %v730_v29 = vadd.f32 %v566_v25, %v562_v17  ;;  %v525_v31 = vpop.f32.mrb[3].mxu0  ;;  %v568_v32 = vpop.f32.mrb[3].mxu1 }
 0x10b   :  { %v870_v30 = vmul.f32 %v566_v25, %v566_v25  ;;  %708 = vst [vmem:[%s1431_s2 + $0x50] sm:$0xff] %v525_v31  ;;  %v723_v33 = vadd.f32 %v525_v31, %v521_v20  ;;  %v869_v34 = vmul.f32 %v525_v31, %v525_v31  ;;  %710 = vst [vmem:[%s1431_s2 + $0x60] sm:$0xff] %v568_v32 }
 0x10c   :  { %v737_v35 = vadd.f32 %v568_v32, %v564_v21  ;;  %v871_v36 = vmul.f32 %v568_v32, %v568_v32  ;;  %v717_v37 = vrot.slane %v716_v27, 4  ;;  %v877_v38 = vadd.f32 %v868_v28, %v859_v18 }
 0x10d   :  { %v731_v39 = vrot.slane %v730_v29, 4  ;;  %v891_v40 = vadd.f32 %v870_v30, %v861_v19  ;;  %v724_v41 = vrot.slane %v723_v33, 4  ;;  %v884_v42 = vadd.f32 %v869_v34, %v860_v22 }
 0x10e   :  { %v738_v43 = vrot.slane %v737_v35, 4  ;;  %v898_v44 = vadd.f32 %v871_v36, %v862_v23  ;;  %v718_v45 = vadd.f32 %v717_v37, %v716_v27  ;;  %v878_v46 = vrot.slane %v877_v38, 4 }
 0x10f   :  { %v732_v47 = vadd.f32 %v731_v39, %v730_v29  ;;  %v892_v48 = vrot.slane %v891_v40, 4  ;;  %v725_v49 = vadd.f32 %v724_v41, %v723_v33  ;;  %v885_v50 = vrot.slane %v884_v42, 4 }
 0x110   :  { %v739_v51 = vadd.f32 %v738_v43, %v737_v35  ;;  %v899_v52 = vrot.slane %v898_v44, 4  ;;  %v719_v53 = vrot.slane %v718_v45, 2  ;;  %v879_v54 = vadd.f32 %v878_v46, %v877_v38 }
 0x111   :  { %v733_v55 = vrot.slane %v732_v47, 2  ;;  %v893_v56 = vadd.f32 %v892_v48, %v891_v40  ;;  %v726_v57 = vrot.slane %v725_v49, 2  ;;  %v886_v58 = vadd.f32 %v885_v50, %v884_v42 }
 0x112   :  { %v740_v59 = vrot.slane %v739_v51, 2  ;;  %v900_v60 = vadd.f32 %v899_v52, %v898_v44  ;;  %v720_v61 = vadd.f32 %v719_v53, %v718_v45  ;;  %v880_v62 = vrot.slane %v879_v54, 2 }
 0x113   :  { %v734_v63 = vadd.f32 %v733_v55, %v732_v47  ;;  %v894_v0 = vrot.slane %v893_v56, 2  ;;  %v727_v1 = vadd.f32 %v726_v57, %v725_v49  ;;  %v887_v2 = vrot.slane %v886_v58, 2 }
 0x114   :  { %v741_v3 = vadd.f32 %v740_v59, %v739_v51  ;;  %v901_v4 = vrot.slane %v900_v60, 2  ;;  %v721_v5 = vrot.slane %v720_v61, 1  ;;  %v881_v6 = vadd.f32 %v880_v62, %v879_v54 }
 0x115   :  { %v735_v7 = vrot.slane %v734_v63, 1  ;;  %v895_v8 = vadd.f32 %v894_v0, %v893_v56  ;;  %v728_v9 = vrot.slane %v727_v1, 1  ;;  %v888_v10 = vadd.f32 %v887_v2, %v886_v58 }
 0x116   :  { %v742_v11 = vrot.slane %v741_v3, 1  ;;  %v902_v12 = vadd.f32 %v901_v4, %v900_v60  ;;  %v722_v14 = vadd.f32 %v721_v5, %v720_v61  ;;  %v882_v15 = vrot.slane %v881_v6, 1 }
 0x117   :  { %v736_v16 = vadd.f32 %v735_v7, %v734_v63  ;;  %v896_v17 = vrot.slane %v895_v8, 1  ;;  %v729_v18 = vadd.f32 %v728_v9, %v727_v1  ;;  %v889_v19 = vrot.slane %v888_v10, 1 }
 0x118   :  { %v743_v20 = vadd.f32 %v742_v11, %v741_v3  ;;  %v903_v21 = vrot.slane %v902_v12, 1  ;;  %v883_v22 = vadd.f32 %v882_v15, %v881_v6 }
 0x119   :  { %v897_v23 = vadd.f32 %v896_v17, %v895_v8  ;;  %v788_v24 = vcombine.low %v722_v14, %v729_v18  ;;  %v890_v25 = vadd.f32 %v889_v19, %v888_v10 }
 0x11a   :  { %v789_v27 = vcombine.low %v736_v16, %v743_v20  ;;  %v904_v28 = vadd.f32 %v903_v21, %v902_v12 }
 0x11b   :  { %v1353_v29 = vrot.slane %v788_v24, %v1338_v26  ;;  %v949_v30 = vcombine.low %v883_v22, %v890_v25 }
 0x11c   :  { %v1356_v31 = vrot.slane %v789_v27, %v1338_v26  ;;  %v950_v32 = vcombine.low %v897_v23, %v904_v28 }
 0x11d   :  { %v1359_v33 = vrot.slane %v949_v30, %v1338_v26 }
 0x11e   :  { %v820_v34 = vcombine.low %v1353_v29, %v1356_v31  ;;  %v1364_v35 = vrot.slane %v950_v32, %v1338_v26 }
 0x120   :  { %v981_v36 = vcombine.low %v1359_v33, %v1364_v35 }
 0x127   :  { %v605_v37 = vpop.f32.mrb[4].mxu0  ;;  %v648_v38 = vpop.f32.mrb[4].mxu1 }
 0x128   :  { %702 = vst [vmem:[%s1431_s2 + $0x20] sm:$0xff] %v605_v37  ;;  %v863_v39 = vmul.f32 %v605_v37, %v605_v37  ;;  %704 = vst [vmem:[%s1431_s2 + $0x30] sm:$0xff] %v648_v38  ;;  %v865_v40 = vmul.f32 %v648_v38, %v648_v38  ;;  %v607_v41 = vpop.f32.mrb[5].mxu0  ;;  %v650_v42 = vpop.f32.mrb[5].mxu1 }
 0x129   :  { %703 = vst [vmem:[%s1431_s2 + $0x28] sm:$0xff] %v607_v41  ;;  %v864_v43 = vmul.f32 %v607_v41, %v607_v41  ;;  %705 = vst [vmem:[%s1431_s2 + $0x38] sm:$0xff] %v650_v42  ;;  %v866_v44 = vmul.f32 %v650_v42, %v650_v42  ;;  %v609_v45 = vpop.f32.mrb[6].mxu0  ;;  %v652_v46 = vpop.f32.mrb[6].mxu1 }
 0x12a   :  { %711 = vst [vmem:[%s1431_s2 + $0x68] sm:$0xff] %v609_v45  ;;  %v744_v47 = vadd.f32 %v609_v45, %v605_v37  ;;  %v872_v48 = vmul.f32 %v609_v45, %v609_v45  ;;  %713 = vst [vmem:[%s1431_s2 + $0x78] sm:$0xff] %v652_v46  ;;  %v758_v49 = vadd.f32 %v652_v46, %v648_v38  ;;  %v611_v51 = vpop.f32.mrb[7].mxu0  ;;  %v654_v52 = vpop.f32.mrb[7].mxu1 }
 0x12b   :  { %v874_v50 = vmul.f32 %v652_v46, %v652_v46  ;;  %712 = vst [vmem:[%s1431_s2 + $0x70] sm:$0xff] %v611_v51  ;;  %v751_v53 = vadd.f32 %v611_v51, %v607_v41  ;;  %v873_v54 = vmul.f32 %v611_v51, %v611_v51  ;;  %714 = vst [vmem:[%s1431_s2 + $0x80] sm:$0xff] %v654_v52 }
 0x12c   :  { %v765_v55 = vadd.f32 %v654_v52, %v650_v42  ;;  %v875_v56 = vmul.f32 %v654_v52, %v654_v52  ;;  %v745_v57 = vrot.slane %v744_v47, 4  ;;  %v905_v58 = vadd.f32 %v872_v48, %v863_v39 }
 0x12d   :  { %v759_v59 = vrot.slane %v758_v49, 4  ;;  %v919_v60 = vadd.f32 %v874_v50, %v865_v40  ;;  %v752_v61 = vrot.slane %v751_v53, 4  ;;  %v912_v62 = vadd.f32 %v873_v54, %v864_v43 }
 0x12e   :  { %v766_v63 = vrot.slane %v765_v55, 4  ;;  %v926_v0 = vadd.f32 %v875_v56, %v866_v44  ;;  %v746_v1 = vadd.f32 %v745_v57, %v744_v47  ;;  %v906_v2 = vrot.slane %v905_v58, 4 }
 0x12f   :  { %v760_v3 = vadd.f32 %v759_v59, %v758_v49  ;;  %v920_v4 = vrot.slane %v919_v60, 4  ;;  %v753_v5 = vadd.f32 %v752_v61, %v751_v53  ;;  %v913_v6 = vrot.slane %v912_v62, 4 }
 0x130   :  { %v767_v7 = vadd.f32 %v766_v63, %v765_v55  ;;  %v927_v8 = vrot.slane %v926_v0, 4  ;;  %v747_v9 = vrot.slane %v746_v1, 2  ;;  %v907_v10 = vadd.f32 %v906_v2, %v905_v58 }
 0x131   :  { %v761_v11 = vrot.slane %v760_v3, 2  ;;  %v921_v12 = vadd.f32 %v920_v4, %v919_v60  ;;  %v754_v14 = vrot.slane %v753_v5, 2  ;;  %v914_v15 = vadd.f32 %v913_v6, %v912_v62 }
 0x132   :  { %v768_v16 = vrot.slane %v767_v7, 2  ;;  %v928_v17 = vadd.f32 %v927_v8, %v926_v0  ;;  %v748_v18 = vadd.f32 %v747_v9, %v746_v1  ;;  %v908_v19 = vrot.slane %v907_v10, 2 }
 0x133   :  { %v762_v20 = vadd.f32 %v761_v11, %v760_v3  ;;  %v922_v21 = vrot.slane %v921_v12, 2  ;;  %v755_v22 = vadd.f32 %v754_v14, %v753_v5  ;;  %v915_v23 = vrot.slane %v914_v15, 2 }
 0x134   :  { %v769_v24 = vadd.f32 %v768_v16, %v767_v7  ;;  %v929_v25 = vrot.slane %v928_v17, 2  ;;  %v749_v27 = vrot.slane %v748_v18, 1  ;;  %v909_v28 = vadd.f32 %v908_v19, %v907_v10 }
 0x135   :  { %v763_v30 = vrot.slane %v762_v20, 1  ;;  %v923_v32 = vadd.f32 %v922_v21, %v921_v12  ;;  %v756_v37 = vrot.slane %v755_v22, 1  ;;  %v916_v38 = vadd.f32 %v915_v23, %v914_v15 }
 0x136   :  { %v770_v39 = vrot.slane %v769_v24, 1  ;;  %v930_v40 = vadd.f32 %v929_v25, %v928_v17  ;;  %v750_v41 = vadd.f32 %v749_v27, %v748_v18  ;;  %v910_v42 = vrot.slane %v909_v28, 1 }
 0x137   :  { %v764_v43 = vadd.f32 %v763_v30, %v762_v20  ;;  %v924_v44 = vrot.slane %v923_v32, 1  ;;  %v757_v45 = vadd.f32 %v756_v37, %v755_v22  ;;  %v917_v46 = vrot.slane %v916_v38, 1 }
 0x138   :  { %v771_v47 = vadd.f32 %v770_v39, %v769_v24  ;;  %v931_v48 = vrot.slane %v930_v40, 1  ;;  %v911_v49 = vadd.f32 %v910_v42, %v909_v28  ;;  %v828_v62 = vrot.slane %v820_v34, %v1338_v26 }
 0x139   :  { %v925_v50 = vadd.f32 %v924_v44, %v923_v32  ;;  %v790_v51 = vcombine.low %v750_v41, %v757_v45  ;;  %v918_v52 = vadd.f32 %v917_v46, %v916_v38  ;;  %v989_v1 = vrot.slane %v981_v36, %v1338_v26 }
 0x13a   :  { %v791_v53 = vcombine.low %v764_v43, %v771_v47  ;;  %v932_v54 = vadd.f32 %v931_v48, %v930_v40 }
 0x13b   :  { %v812_v55 = vrot.slane %v790_v51, %v1338_v26  ;;  %v951_v56 = vcombine.low %v911_v49, %v918_v52 }
 0x13c   :  { %v819_v57 = vrot.slane %v791_v53, %v1338_v26  ;;  %v952_v58 = vcombine.low %v925_v50, %v932_v54 }
 0x13d   :  { %v973_v59 = vrot.slane %v951_v56, %v1338_v26 }
 0x13e   :  { %v821_v60 = vcombine.low %v812_v55, %v819_v57  ;;  %v980_v61 = vrot.slane %v952_v58, %v1338_v26 }
 0x140   :  { %v835_v63 = vrot.slane %v821_v60, %v1338_v26  ;;  %v982_v0 = vcombine.low %v973_v59, %v980_v61 }
 0x142   :  { %v836_v2 = vcombine.low %v828_v62, %v835_v63  ;;  %v996_v3 = vrot.slane %v982_v0, %v1338_v26 }
 0x144   :  { %853 = vst [vmem:[%s1432_s3] sm:$0xff] %v836_v2  ;;  %v997_v4 = vcombine.low %v989_v1, %v996_v3 }
 0x146   :  { %1014 = vst [vmem:[%s1433_s4] sm:$0xff] %v997_v4 }
 0x147   :  { %v691_v29 = vpop.f32.mrb[8].mxu0 }
 0x148   :  { %706 = vst [vmem:[%s1431_s2 + $0x40] sm:$0xff] %v691_v29  ;;  %v1129_v31 = vpop.f32.mrb[9].mxu0  ;;  %v867_v34 = vmul.f32 %v691_v29, %v691_v29 }
 0x149   :  { %v694_v33 = vpop.f32.mrb[10].mxu0 }
 0x14a   :  { %715 = vst [vmem:[%s1431_s2 + $0x88] sm:$0xff] %v694_v33  ;;  %v772_v35 = vadd.f32 %v694_v33, %v691_v29  ;;  %v876_v36 = vmul.f32 %v694_v33, %v694_v33  ;;  %v1130_v5 = vpop.f32.mrb[11].mxu0 }
 0x14c   :  { %v773_v6 = vrot.slane %v772_v35, 4  ;;  %v933_v7 = vadd.f32 %v876_v36, %v867_v34 }
 0x14e   :  { %v774_v8 = vadd.f32 %v773_v6, %v772_v35  ;;  %v934_v9 = vrot.slane %v933_v7, 4 }
 0x150   :  { %v775_v10 = vrot.slane %v774_v8, 2  ;;  %v935_v11 = vadd.f32 %v934_v9, %v933_v7 }
 0x152   :  { %v776_v12 = vadd.f32 %v775_v10, %v774_v8  ;;  %v936_v14 = vrot.slane %v935_v11, 2 }
 0x154   :  { %v777_v15 = vrot.slane %v776_v12, 1  ;;  %v937_v16 = vadd.f32 %v936_v14, %v935_v11 }
 0x156   :  { %v778_v17 = vadd.f32 %v777_v15, %v776_v12  ;;  %v938_v18 = vrot.slane %v937_v16, 1 }
 0x158   :  { %v843_v19 = vrot.slane %v778_v17, %v1338_v26  ;;  %v939_v20 = vadd.f32 %v938_v18, %v937_v16 }
 0x15a   :  { %v850_v21 = vrot.slane %v843_v19, %v1338_v26  ;;  %v1004_v22 = vrot.slane %v939_v20, %v1338_v26 }
 0x15c   :  { %858 = vst.msk [vmem:[%s1432_s3 + $0x8] sm:$0x1] %vm856_vm1, %v850_v21  ;;  %v1011_v23 = vrot.slane %v1004_v22, %v1338_v26 }
 0x15e   :  { %1015 = vst.msk [vmem:[%s1433_s4 + $0x8] sm:$0x1] %vm856_vm1, %v1011_v23 }
 0x15f   :  { %1028 = vsyncpa [#allocation3], 1 }

// kernel: generator_forward.10
= control target key start
LH: loop header
LB: loop body
LE: loop exit
PB: predicated region body
PF: predicated region fallthrough
CT: control target
= control target key end

     0   :  { %v24_v0 = vlaneseq  ;;  %s172_s1 = inlined_call_operand.vmem [shape: f32[1,256], index: 1, kind: input, shape index: {}]   ;;  %s173_s2 = inlined_call_operand.vmem [shape: f32[1,256], index: 2, kind: input, shape index: {}]   ;;  %s174_s0 = inlined_call_operand.vmem [shape: f32[32,256], index: 0, kind: input, shape index: {}]   ;;  %s175_s3 = inlined_call_operand.vmem [shape: bf16[32,256], index: 3, kind: output, shape index: {}]  }
   0x1   :  { %v22_v2 = vld [vmem:[%s172_s1] sm:$0x3]  ;;  %v15_v5 = vld [vmem:[%s174_s0 + $0x8] sm:$0xff]  ;;  %v16_v8 = vld [vmem:[%s174_s0 + $0x10] sm:$0xff] }
   0x2   :  { %v25_v1 = vshrl.u32 %v24_v0, 7  ;;  %v42_v3 = vld [vmem:[%s173_s2] sm:$0x3]  ;;  %v17_v9 = vld [vmem:[%s174_s0 + $0x18] sm:$0xff]  ;;  %v19_v15 = vld [vmem:[%s174_s0 + $0x28] sm:$0xff] }
   0x3   :  { %v14_v4 = vld [vmem:[%s174_s0] sm:$0xff]  ;;  %v20_v16 = vld [vmem:[%s174_s0 + $0x30] sm:$0xff]  ;;  %v21_v17 = vld [vmem:[%s174_s0 + $0x38] sm:$0xff] }
   0x4   :  { %v26_v6 = vsub.s32 0, %v25_v1  ;;  %v30_v7 = vsub.s32 1, %v25_v1  ;;  %v18_v10 = vld [vmem:[%s174_s0 + $0x20] sm:$0xff] }
   0x6   :  { %v27_v11 = vrot.slane %v22_v2, %v26_v6  ;;  %v31_v12 = vrot.slane %v22_v2, %v30_v7  ;;  %v47_v13 = vrot.slane %v42_v3, %v26_v6  ;;  %v51_v14 = vrot.slane %v42_v3, %v30_v7 }
   0x8   :  { %v34_v18 = vmul.f32 %v27_v11, %v14_v4  ;;  %v35_v19 = vmul.f32 %v31_v12, %v15_v5  ;;  %v36_v20 = vmul.f32 %v27_v11, %v16_v8  ;;  %v37_v21 = vmul.f32 %v31_v12, %v17_v9 }
   0x9   :  { %v38_v22 = vmul.f32 %v27_v11, %v18_v10  ;;  %v39_v23 = vmul.f32 %v31_v12, %v19_v15  ;;  %v40_v24 = vmul.f32 %v27_v11, %v20_v16  ;;  %v41_v25 = vmul.f32 %v31_v12, %v21_v17 }
   0xa   :  { %v54_v26 = vadd.f32 %v47_v13, %v34_v18  ;;  %v55_v27 = vadd.f32 %v51_v14, %v35_v19  ;;  %v56_v28 = vadd.f32 %v47_v13, %v36_v20  ;;  %v57_v29 = vadd.f32 %v51_v14, %v37_v21 }
   0xb   :  { %v58_v30 = vadd.f32 %v47_v13, %v38_v22  ;;  %v59_v31 = vadd.f32 %v51_v14, %v39_v23  ;;  %v60_v32 = vadd.f32 %v47_v13, %v40_v24  ;;  %v61_v33 = vadd.f32 %v51_v14, %v41_v25 }
   0xc   :  { %v62_v34 = vmax.f32 %v54_v26, 0.0  ;;  %v63_v35 = vmax.f32 %v55_v27, 0.0  ;;  %v64_v36 = vmax.f32 %v56_v28, 0.0  ;;  %v65_v37 = vmax.f32 %v57_v29, 0.0 }
   0xd   :  { %v66_v38 = vmax.f32 %v58_v30, 0.0  ;;  %v67_v39 = vmax.f32 %v59_v31, 0.0  ;;  %v68_v40 = vmax.f32 %v60_v32, 0.0  ;;  %v69_v41 = vmax.f32 %v61_v33, 0.0 }
   0xe   :  { %v106_v42 = vpack.c.bf16 %v63_v35, %v62_v34  ;;  %v107_v43 = vpack.c.bf16 %v65_v37, %v64_v36 }
   0xf   :  { %v108_v44 = vpack.c.bf16 %v67_v39, %v66_v38  ;;  %v109_v45 = vpack.c.bf16 %v69_v41, %v68_v40 }
  0x10   :  { %94 = vst [vmem:[%s175_s3] sm:$0xff] %v106_v42  ;;  %95 = vst [vmem:[%s175_s3 + $0x8] sm:$0xff] %v107_v43 }
  0x11   :  { %96 = vst [vmem:[%s175_s3 + $0x10] sm:$0xff] %v108_v44  ;;  %97 = vst [vmem:[%s175_s3 + $0x18] sm:$0xff] %v109_v45 }

// kernel: generator_forward.9
= control target key start
LH: loop header
LB: loop body
LE: loop exit
PB: predicated region body
PF: predicated region fallthrough
CT: control target
= control target key end

     0   :  { %s2359_s1 = inlined_call_operand.vmem [shape: bf16[1152,256], index: 1, kind: input, shape index: {}]   ;;  %s2360_s0 = inlined_call_operand.vmem [shape: bf16[32,1152], index: 0, kind: input, shape index: {}]   ;;  %s2361_s2 = inlined_call_operand.vmem [shape: f32[32,256], index: 2, kind: output, shape index: {0}]   ;;  %s2362_s3 = inlined_call_operand.vmem [shape: f32[1,1,256], index: 3, kind: output, shape index: {1}]   ;;  %s2363_s4 = inlined_call_operand.vmem [shape: f32[1,1,256], index: 4, kind: output, shape index: {2}]  }
   0x1   :  { %v1574_v0 = vld [vmem:[%s2359_s1 + $0x4] ss:$8 sps:$4 sm:$0xff]   ;;  %v1578_v2 = vld [vmem:[%s2359_s1] ss:$8 sps:$4 sm:$0xff]   ;;  %v1580_v4 = vld [vmem:[%s2359_s1 + $0x14] ss:$8 sps:$4 sm:$0xff]  }
   0x2   :  { %v1576_v1 = vld [vmem:[%s2359_s1 + $0x204] ss:$8 sps:$4 sm:$0xff]   ;;  %991 = vmatprep.subr.bf16.mxu1 %v1574_v0  ;;  %v1579_v3 = vld [vmem:[%s2359_s1 + $0x200] ss:$8 sps:$4 sm:$0xff]   ;;  %v1582_v5 = vld [vmem:[%s2359_s1 + $0x214] ss:$8 sps:$4 sm:$0xff]  }
   0x3   :  { %1097 = vmatprep.subr.bf16.mxu0 %v1576_v1  ;;  %992 = vmatpush1.bf16.msra.mxu1 %v1578_v2  ;;  %v1584_v6 = vld [vmem:[%s2359_s1 + $0x10] ss:$8 sps:$4 sm:$0xff]   ;;  %v1586_v8 = vld [vmem:[%s2359_s1 + $0x24] ss:$8 sps:$4 sm:$0xff]   ;;  %v1590_v10 = vld [vmem:[%s2359_s1 + $0x20] ss:$8 sps:$4 sm:$0xff]  }
   0x4   :  { %1098 = vmatpush1.bf16.msra.mxu0 %v1579_v3  ;;  %993 = vmatprep.subr.bf16.mxu1 %v1580_v4  ;;  %v1585_v7 = vld [vmem:[%s2359_s1 + $0x210] ss:$8 sps:$4 sm:$0xff]   ;;  %v1588_v9 = vld [vmem:[%s2359_s1 + $0x224] ss:$8 sps:$4 sm:$0xff]   ;;  %v1591_v11 = vld [vmem:[%s2359_s1 + $0x220] ss:$8 sps:$4 sm:$0xff]  }
   0x5   :  { %1099 = vmatprep.subr.bf16.mxu0 %v1582_v5  ;;  %v1592_v12 = vld [vmem:[%s2359_s1 + $0x34] ss:$8 sps:$4 sm:$0xff]   ;;  %v1596_v14 = vld [vmem:[%s2359_s1 + $0x30] ss:$8 sps:$4 sm:$0xff]   ;;  %v1598_v16 = vld [vmem:[%s2359_s1 + $0x44] ss:$8 sps:$4 sm:$0xff]  }
   0x6   :  { %v1594_v13 = vld [vmem:[%s2359_s1 + $0x234] ss:$8 sps:$4 sm:$0xff]   ;;  %v1597_v15 = vld [vmem:[%s2359_s1 + $0x230] ss:$8 sps:$4 sm:$0xff]   ;;  %v1600_v17 = vld [vmem:[%s2359_s1 + $0x244] ss:$8 sps:$4 sm:$0xff]  }
   0x7   :  { %994 = vmatpush1.bf16.msra.mxu1 %v1584_v6  ;;  %v1602_v18 = vld [vmem:[%s2359_s1 + $0x40] ss:$8 sps:$4 sm:$0xff]   ;;  %v1604_v20 = vld [vmem:[%s2359_s1 + $0x54] ss:$8 sps:$4 sm:$0xff]   ;;  %v1608_v22 = vld [vmem:[%s2359_s1 + $0x50] ss:$8 sps:$4 sm:$0xff]  }
   0x8   :  { %1100 = vmatpush1.bf16.msra.mxu0 %v1585_v7  ;;  %995 = vmatprep.subr.bf16.mxu1 %v1586_v8  ;;  %v1603_v19 = vld [vmem:[%s2359_s1 + $0x240] ss:$8 sps:$4 sm:$0xff]   ;;  %v1606_v21 = vld [vmem:[%s2359_s1 + $0x254] ss:$8 sps:$4 sm:$0xff]   ;;  %v1609_v23 = vld [vmem:[%s2359_s1 + $0x250] ss:$8 sps:$4 sm:$0xff]  }
   0x9   :  { %1101 = vmatprep.subr.bf16.mxu0 %v1588_v9  ;;  %v1610_v24 = vld [vmem:[%s2359_s1 + $0x64] ss:$8 sps:$4 sm:$0xff]   ;;  %v1614_v26 = vld [vmem:[%s2359_s1 + $0x60] ss:$8 sps:$4 sm:$0xff]   ;;  %v1616_v28 = vld [vmem:[%s2359_s1 + $0x74] ss:$8 sps:$4 sm:$0xff]  }
   0xa   :  { %v1612_v25 = vld [vmem:[%s2359_s1 + $0x264] ss:$8 sps:$4 sm:$0xff]   ;;  %v1615_v27 = vld [vmem:[%s2359_s1 + $0x260] ss:$8 sps:$4 sm:$0xff]   ;;  %v1618_v29 = vld [vmem:[%s2359_s1 + $0x274] ss:$8 sps:$4 sm:$0xff]  }
   0xb   :  { %996 = vmatpush1.bf16.msra.mxu1 %v1590_v10  ;;  %v1620_v30 = vld [vmem:[%s2359_s1 + $0x70] ss:$8 sps:$4 sm:$0xff]   ;;  %v1622_v32 = vld [vmem:[%s2359_s1 + $0x84] ss:$8 sps:$4 sm:$0xff]   ;;  %v1626_v34 = vld [vmem:[%s2359_s1 + $0x80] ss:$8 sps:$4 sm:$0xff]  }
   0xc   :  { %1102 = vmatpush1.bf16.msra.mxu0 %v1591_v11  ;;  %997 = vmatprep.subr.bf16.mxu1 %v1592_v12  ;;  %v1621_v31 = vld [vmem:[%s2359_s1 + $0x270] ss:$8 sps:$4 sm:$0xff]   ;;  %v1624_v33 = vld [vmem:[%s2359_s1 + $0x284] ss:$8 sps:$4 sm:$0xff]   ;;  %v1627_v35 = vld [vmem:[%s2359_s1 + $0x280] ss:$8 sps:$4 sm:$0xff]  }
   0xd   :  { %1103 = vmatprep.subr.bf16.mxu0 %v1594_v13  ;;  %v1628_v36 = vld [vmem:[%s2359_s1 + $0x94] ss:$8 sps:$4 sm:$0xff]   ;;  %v1632_v38 = vld [vmem:[%s2359_s1 + $0x90] ss:$8 sps:$4 sm:$0xff]   ;;  %v1634_v40 = vld [vmem:[%s2359_s1 + $0xa4] ss:$8 sps:$4 sm:$0xff]  }
   0xe   :  { %v1630_v37 = vld [vmem:[%s2359_s1 + $0x294] ss:$8 sps:$4 sm:$0xff]   ;;  %v1633_v39 = vld [vmem:[%s2359_s1 + $0x290] ss:$8 sps:$4 sm:$0xff]   ;;  %v1636_v41 = vld [vmem:[%s2359_s1 + $0x2a4] ss:$8 sps:$4 sm:$0xff]  }
   0xf   :  { %998 = vmatpush1.bf16.msra.mxu1 %v1596_v14  ;;  %v1638_v42 = vld [vmem:[%s2359_s1 + $0xa0] ss:$8 sps:$4 sm:$0xff]   ;;  %v1640_v44 = vld [vmem:[%s2359_s1 + $0xb4] ss:$8 sps:$4 sm:$0xff]   ;;  %v1644_v46 = vld [vmem:[%s2359_s1 + $0xb0] ss:$8 sps:$4 sm:$0xff]  }
  0x10   :  { %1104 = vmatpush1.bf16.msra.mxu0 %v1597_v15  ;;  %999 = vmatprep.subr.bf16.mxu1 %v1598_v16  ;;  %v1639_v43 = vld [vmem:[%s2359_s1 + $0x2a0] ss:$8 sps:$4 sm:$0xff]   ;;  %v1642_v45 = vld [vmem:[%s2359_s1 + $0x2b4] ss:$8 sps:$4 sm:$0xff]   ;;  %v1645_v47 = vld [vmem:[%s2359_s1 + $0x2b0] ss:$8 sps:$4 sm:$0xff]  }
  0x11   :  { %1105 = vmatprep.subr.bf16.mxu0 %v1600_v17  ;;  %v1672_v48 = vld [vmem:[%s2360_s0 + $0x4] ss:$36 sps:$4 sm:$0xff]   ;;  %v1678_v51 = vld [vmem:[%s2360_s0 + $0x14] ss:$36 sps:$4 sm:$0xff]  }
  0x12   :  { %v1646_v49 = vld [vmem:[%s2359_s1 + $0xc4] ss:$8 sps:$4 sm:$0xff]   ;;  %1023 = vmatprep.mubr.bf16.mxu1 %v1672_v48  ;;  %v1650_v52 = vld [vmem:[%s2359_s1 + $0xc0] ss:$8 sps:$4 sm:$0xff]   ;;  %v1652_v54 = vld [vmem:[%s2359_s1 + $0xd4] ss:$8 sps:$4 sm:$0xff]   ;;  %1129 = vmatprep.mubr.bf16.mxu0 %v1678_v51 }
  0x13   :  { %1000 = vmatpush1.bf16.msra.mxu1 %v1602_v18  ;;  %v1648_v50 = vld [vmem:[%s2359_s1 + $0x2c4] ss:$8 sps:$4 sm:$0xff]   ;;  %v1651_v53 = vld [vmem:[%s2359_s1 + $0x2c0] ss:$8 sps:$4 sm:$0xff]   ;;  %v1654_v55 = vld [vmem:[%s2359_s1 + $0x2d4] ss:$8 sps:$4 sm:$0xff]  }
  0x14   :  { %1106 = vmatpush1.bf16.msra.mxu0 %v1603_v19  ;;  %1001 = vmatprep.subr.bf16.mxu1 %v1604_v20  ;;  %v1656_v56 = vld [vmem:[%s2359_s1 + $0xd0] ss:$8 sps:$4 sm:$0xff]   ;;  %v1658_v58 = vld [vmem:[%s2359_s1 + $0xe4] ss:$8 sps:$4 sm:$0xff]   ;;  %v1662_v60 = vld [vmem:[%s2359_s1 + $0xe0] ss:$8 sps:$4 sm:$0xff]  }
  0x15   :  { %1107 = vmatprep.subr.bf16.mxu0 %v1606_v21  ;;  %v1657_v57 = vld [vmem:[%s2359_s1 + $0x2d0] ss:$8 sps:$4 sm:$0xff]   ;;  %v1660_v59 = vld [vmem:[%s2359_s1 + $0x2e4] ss:$8 sps:$4 sm:$0xff]   ;;  %v1663_v61 = vld [vmem:[%s2359_s1 + $0x2e0] ss:$8 sps:$4 sm:$0xff]  }
  0x16   :  { %v1664_v62 = vld [vmem:[%s2359_s1 + $0xf4] ss:$8 sps:$4 sm:$0xff]   ;;  %v1668_v0 = vld [vmem:[%s2359_s1 + $0xf0] ss:$8 sps:$4 sm:$0xff]   ;;  %v1675_v2 = vld [vmem:[%s2359_s1 + $0x104] ss:$8 sps:$4 sm:$0xff]  }
  0x17   :  { %1002 = vmatpush1.bf16.msra.mxu1 %v1608_v22  ;;  %v1666_v63 = vld [vmem:[%s2359_s1 + $0x2f4] ss:$8 sps:$4 sm:$0xff]   ;;  %v1669_v1 = vld [vmem:[%s2359_s1 + $0x2f0] ss:$8 sps:$4 sm:$0xff]   ;;  %v1681_v3 = vld [vmem:[%s2359_s1 + $0x304] ss:$8 sps:$4 sm:$0xff]  }
  0x18   :  { %1108 = vmatpush1.bf16.msra.mxu0 %v1609_v23  ;;  %1003 = vmatprep.subr.bf16.mxu1 %v1610_v24  ;;  %v1670_v4 = vld [vmem:[%s2360_s0] ss:$36 sps:$4 sm:$0xff]   ;;  %v1676_v6 = vld [vmem:[%s2360_s0 + $0x10] ss:$36 sps:$4 sm:$0xff]  }
  0x19   :  { %1109 = vmatprep.subr.bf16.mxu0 %v1612_v25  ;;  %v1673_v5 = vld [vmem:[%s2359_s1 + $0x100] ss:$8 sps:$4 sm:$0xff]   ;;  %v1684_v8 = vld [vmem:[%s2359_s1 + $0x114] ss:$8 sps:$4 sm:$0xff]   ;;  %v1682_v10 = vld [vmem:[%s2359_s1 + $0x110] ss:$8 sps:$4 sm:$0xff]  }
  0x1a   :  { %v1679_v7 = vld [vmem:[%s2359_s1 + $0x300] ss:$8 sps:$4 sm:$0xff]   ;;  %v1687_v9 = vld [vmem:[%s2359_s1 + $0x314] ss:$8 sps:$4 sm:$0xff]   ;;  %v1685_v11 = vld [vmem:[%s2359_s1 + $0x310] ss:$8 sps:$4 sm:$0xff]  }
  0x1b   :  { %1004 = vmatpush1.bf16.msra.mxu1 %v1614_v26  ;;  %v1690_v12 = vld [vmem:[%s2359_s1 + $0x124] ss:$8 sps:$4 sm:$0xff]   ;;  %v1688_v14 = vld [vmem:[%s2359_s1 + $0x120] ss:$8 sps:$4 sm:$0xff]   ;;  %v1696_v16 = vld [vmem:[%s2359_s1 + $0x134] ss:$8 sps:$4 sm:$0xff]  }
  0x1c   :  { %1110 = vmatpush1.bf16.msra.mxu0 %v1615_v27  ;;  %1005 = vmatprep.subr.bf16.mxu1 %v1616_v28  ;;  %v1693_v13 = vld [vmem:[%s2359_s1 + $0x324] ss:$8 sps:$4 sm:$0xff]   ;;  %v1691_v15 = vld [vmem:[%s2359_s1 + $0x320] ss:$8 sps:$4 sm:$0xff]   ;;  %v1699_v17 = vld [vmem:[%s2359_s1 + $0x334] ss:$8 sps:$4 sm:$0xff]  }
  0x1d   :  { %1111 = vmatprep.subr.bf16.mxu0 %v1618_v29  ;;  %v1694_v18 = vld [vmem:[%s2359_s1 + $0x130] ss:$8 sps:$4 sm:$0xff]   ;;  %v1702_v20 = vld [vmem:[%s2359_s1 + $0x144] ss:$8 sps:$4 sm:$0xff]   ;;  %v1700_v22 = vld [vmem:[%s2359_s1 + $0x140] ss:$8 sps:$4 sm:$0xff]  }
  0x1e   :  { %v1697_v19 = vld [vmem:[%s2359_s1 + $0x330] ss:$8 sps:$4 sm:$0xff]   ;;  %v1705_v21 = vld [vmem:[%s2359_s1 + $0x344] ss:$8 sps:$4 sm:$0xff]   ;;  %v1703_v23 = vld [vmem:[%s2359_s1 + $0x340] ss:$8 sps:$4 sm:$0xff]  }
  0x1f   :  { %1006 = vmatpush1.bf16.msra.mxu1 %v1620_v30  ;;  %v1708_v24 = vld [vmem:[%s2359_s1 + $0x154] ss:$8 sps:$4 sm:$0xff]   ;;  %v1706_v26 = vld [vmem:[%s2359_s1 + $0x150] ss:$8 sps:$4 sm:$0xff]   ;;  %v1714_v28 = vld [vmem:[%s2359_s1 + $0x164] ss:$8 sps:$4 sm:$0xff]  }
  0x20   :  { %1112 = vmatpush1.bf16.msra.mxu0 %v1621_v31  ;;  %1007 = vmatprep.subr.bf16.mxu1 %v1622_v32  ;;  %v1711_v25 = vld [vmem:[%s2359_s1 + $0x354] ss:$8 sps:$4 sm:$0xff]   ;;  %v1709_v27 = vld [vmem:[%s2359_s1 + $0x350] ss:$8 sps:$4 sm:$0xff]   ;;  %v1764_v31 = vld [vmem:[%s2360_s0 + $0x48] ss:$36 sps:$4 sm:$0xff]  }
  0x21   :  { %1113 = vmatprep.subr.bf16.mxu0 %v1624_v33  ;;  %v1760_v29 = vld [vmem:[%s2360_s0 + $0x4c] ss:$36 sps:$4 sm:$0xff]   ;;  %v1762_v30 = vld [vmem:[%s2360_s0 + $0x5c] ss:$36 sps:$4 sm:$0xff]  }
  0x22   :  { %v1717_v32 = vld [vmem:[%s2359_s1 + $0x364] ss:$8 sps:$4 sm:$0xff]   ;;  %v1768_v33 = vld [vmem:[%s2360_s0 + $0x58] ss:$36 sps:$4 sm:$0xff]  }
  0x23   :  { %1008 = vmatpush1.bf16.msra.mxu1 %v1626_v34  ;;  %v1712_v34 = vld [vmem:[%s2359_s1 + $0x160] ss:$8 sps:$4 sm:$0xff]   ;;  %v1730_v48 = vld [vmem:[%s2359_s1 + $0x190] ss:$8 sps:$4 sm:$0xff]   ;;  %v1741_v51 = vld [vmem:[%s2359_s1 + $0x3a4] ss:$8 sps:$4 sm:$0xff]  }
  0x24   :  { %1114 = vmatpush1.bf16.msra.mxu0 %v1627_v35  ;;  %1009 = vmatprep.subr.bf16.mxu1 %v1628_v36  ;;  %v1715_v35 = vld [vmem:[%s2359_s1 + $0x360] ss:$8 sps:$4 sm:$0xff]   ;;  %v1720_v36 = vld [vmem:[%s2359_s1 + $0x174] ss:$8 sps:$4 sm:$0xff]  }
  0x25   :  { %1115 = vmatprep.subr.bf16.mxu0 %v1630_v37  ;;  %v1723_v37 = vld [vmem:[%s2359_s1 + $0x374] ss:$8 sps:$4 sm:$0xff]  }
  0x27   :  { %1010 = vmatpush1.bf16.msra.mxu1 %v1632_v38  ;;  %v1718_v38 = vld [vmem:[%s2359_s1 + $0x170] ss:$8 sps:$4 sm:$0xff]  }
  0x28   :  { %1116 = vmatpush1.bf16.msra.mxu0 %v1633_v39  ;;  %1011 = vmatprep.subr.bf16.mxu1 %v1634_v40  ;;  %v1721_v39 = vld [vmem:[%s2359_s1 + $0x370] ss:$8 sps:$4 sm:$0xff]   ;;  %v1726_v40 = vld [vmem:[%s2359_s1 + $0x184] ss:$8 sps:$4 sm:$0xff]  }
  0x29   :  { %1117 = vmatprep.subr.bf16.mxu0 %v1636_v41  ;;  %v1780_v41 = vld [vmem:[%s2360_s0 + $0xc] ss:$36 sps:$4 sm:$0xff]  }
  0x2b   :  { %1012 = vmatpush1.bf16.msra.mxu1 %v1638_v42  ;;  %v1729_v42 = vld [vmem:[%s2359_s1 + $0x384] ss:$8 sps:$4 sm:$0xff]  }
  0x2c   :  { %1118 = vmatpush1.bf16.msra.mxu0 %v1639_v43  ;;  %1013 = vmatprep.subr.bf16.mxu1 %v1640_v44  ;;  %v1783_v43 = vld [vmem:[%s2360_s0 + $0x1c] ss:$36 sps:$4 sm:$0xff]  }
  0x2d   :  { %1119 = vmatprep.subr.bf16.mxu0 %v1642_v45  ;;  %v1724_v44 = vld [vmem:[%s2359_s1 + $0x180] ss:$8 sps:$4 sm:$0xff]  }
  0x2e   :  { %v1727_v45 = vld [vmem:[%s2359_s1 + $0x380] ss:$8 sps:$4 sm:$0xff]  }
  0x2f   :  { %1014 = vmatpush1.bf16.msra.mxu1 %v1644_v46  ;;  %v1732_v46 = vld [vmem:[%s2359_s1 + $0x194] ss:$8 sps:$4 sm:$0xff]  }
  0x30   :  { %1120 = vmatpush1.bf16.msra.mxu0 %v1645_v47  ;;  %1015 = vmatprep.subr.bf16.mxu1 %v1646_v49  ;;  %v1735_v47 = vld [vmem:[%s2359_s1 + $0x394] ss:$8 sps:$4 sm:$0xff]   ;;  %v1733_v49 = vld [vmem:[%s2359_s1 + $0x390] ss:$8 sps:$4 sm:$0xff]  }
  0x31   :  { %1121 = vmatprep.subr.bf16.mxu0 %v1648_v50  ;;  %v1738_v50 = vld [vmem:[%s2359_s1 + $0x1a4] ss:$8 sps:$4 sm:$0xff]  }
  0x33   :  { %1016 = vmatpush1.bf16.msra.mxu1 %v1650_v52  ;;  %v1736_v52 = vld [vmem:[%s2359_s1 + $0x1a0] ss:$8 sps:$4 sm:$0xff]  }
  0x34   :  { %1122 = vmatpush1.bf16.msra.mxu0 %v1651_v53  ;;  %1017 = vmatprep.subr.bf16.mxu1 %v1652_v54  ;;  %v1739_v53 = vld [vmem:[%s2359_s1 + $0x3a0] ss:$8 sps:$4 sm:$0xff]   ;;  %v1744_v54 = vld [vmem:[%s2359_s1 + $0x1b4] ss:$8 sps:$4 sm:$0xff]  }
  0x35   :  { %1123 = vmatprep.subr.bf16.mxu0 %v1654_v55  ;;  %v1747_v55 = vld [vmem:[%s2359_s1 + $0x3b4] ss:$8 sps:$4 sm:$0xff]  }
  0x37   :  { %1018 = vmatpush1.bf16.msra.mxu1 %v1656_v56  ;;  %v1742_v56 = vld [vmem:[%s2359_s1 + $0x1b0] ss:$8 sps:$4 sm:$0xff]  }
  0x38   :  { %1124 = vmatpush1.bf16.msra.mxu0 %v1657_v57  ;;  %1019 = vmatprep.subr.bf16.mxu1 %v1658_v58  ;;  %v1745_v57 = vld [vmem:[%s2359_s1 + $0x3b0] ss:$8 sps:$4 sm:$0xff]   ;;  %v1750_v58 = vld [vmem:[%s2359_s1 + $0x1c4] ss:$8 sps:$4 sm:$0xff]  }
  0x39   :  { %1125 = vmatprep.subr.bf16.mxu0 %v1660_v59  ;;  %v1753_v59 = vld [vmem:[%s2359_s1 + $0x3c4] ss:$8 sps:$4 sm:$0xff]  }
  0x3b   :  { %1020 = vmatpush1.bf16.msra.mxu1 %v1662_v60  ;;  %v1748_v60 = vld [vmem:[%s2359_s1 + $0x1c0] ss:$8 sps:$4 sm:$0xff]  }
  0x3c   :  { %1126 = vmatpush1.bf16.msra.mxu0 %v1663_v61  ;;  %1021 = vmatprep.subr.bf16.mxu1 %v1664_v62  ;;  %v1751_v61 = vld [vmem:[%s2359_s1 + $0x3c0] ss:$8 sps:$4 sm:$0xff]   ;;  %v1756_v62 = vld [vmem:[%s2359_s1 + $0x1d4] ss:$8 sps:$4 sm:$0xff]  }
  0x3d   :  { %1127 = vmatprep.subr.bf16.mxu0 %v1666_v63  ;;  %v1759_v63 = vld [vmem:[%s2359_s1 + $0x3d4] ss:$8 sps:$4 sm:$0xff]  }
  0x3f   :  { %1022 = vmatpush1.bf16.msra.mxu1 %v1668_v0  ;;  %v1754_v0 = vld [vmem:[%s2359_s1 + $0x1d0] ss:$8 sps:$4 sm:$0xff]  }
  0x40   :  { %1128 = vmatpush1.bf16.msra.mxu0 %v1669_v1  ;;  %1044 = vmatprep.subr.bf16.mxu1 %v1675_v2  ;;  %v1757_v1 = vld [vmem:[%s2359_s1 + $0x3d0] ss:$8 sps:$4 sm:$0xff]   ;;  %v1767_v2 = vld [vmem:[%s2359_s1 + $0x1e4] ss:$8 sps:$4 sm:$0xff]  }
  0x41   :  { %1150 = vmatprep.subr.bf16.mxu0 %v1681_v3  ;;  %v1771_v3 = vld [vmem:[%s2359_s1 + $0x3e4] ss:$8 sps:$4 sm:$0xff]  }
  0x42   :  { %1024 = vmatmul.mubr.bf16.vlgmr.msra.gmra.mrb[0].mxu1 %v1670_v4  ;;  %v1765_v4 = vld [vmem:[%s2359_s1 + $0x1e0] ss:$8 sps:$4 sm:$0xff]  }
  0x43   :  { %1130 = vmatmul.mubr.bf16.vlgmr.msra.gmra.mrb[0].mxu0 %v1676_v6  ;;  %1045 = vmatpush1.bf16.msra.mxu1 %v1673_v5  ;;  %v1769_v5 = vld [vmem:[%s2359_s1 + $0x3e0] ss:$8 sps:$4 sm:$0xff]   ;;  %v1774_v6 = vld [vmem:[%s2359_s1 + $0x1f4] ss:$8 sps:$4 sm:$0xff]  }
  0x44   :  { %1151 = vmatpush1.bf16.msra.mxu0 %v1679_v7  ;;  %1046 = vmatprep.subr.bf16.mxu1 %v1684_v8  ;;  %v1777_v7 = vld [vmem:[%s2359_s1 + $0x3f4] ss:$8 sps:$4 sm:$0xff]   ;;  %v1772_v8 = vld [vmem:[%s2359_s1 + $0x1f0] ss:$8 sps:$4 sm:$0xff]  }
  0x45   :  { %1152 = vmatprep.subr.bf16.mxu0 %v1687_v9  ;;  %1033 = vmatprep.mubr.bf16.mxu1 %v1760_v29  ;;  %v1775_v9 = vld [vmem:[%s2359_s1 + $0x3f0] ss:$8 sps:$4 sm:$0xff]   ;;  %v1810_v29 = vld [vmem:[%s2359_s1 + $0x464] ss:$8 sps:$4 sm:$0xff]  }
  0x46   :  { %1139 = vmatprep.mubr.bf16.mxu0 %v1762_v30  ;;  %v1808_v30 = vld [vmem:[%s2359_s1 + $0x460] ss:$8 sps:$4 sm:$0xff]  }
  0x47   :  { %1047 = vmatpush1.bf16.msra.mxu1 %v1682_v10  ;;  %v1786_v10 = vld [vmem:[%s2359_s1 + $0x404] ss:$8 sps:$4 sm:$0xff]  }
  0x48   :  { %1153 = vmatpush1.bf16.msra.mxu0 %v1685_v11  ;;  %1048 = vmatprep.subr.bf16.mxu1 %v1690_v12  ;;  %v1778_v11 = vld [vmem:[%s2360_s0 + $0x8] ss:$36 sps:$4 sm:$0xff]   ;;  %v1781_v12 = vld [vmem:[%s2360_s0 + $0x18] ss:$36 sps:$4 sm:$0xff]  }
  0x49   :  { %1154 = vmatprep.subr.bf16.mxu0 %v1693_v13  ;;  %v1784_v13 = vld [vmem:[%s2359_s1 + $0x400] ss:$8 sps:$4 sm:$0xff]  }
  0x4a   :  { %1034 = vmatmul.mubr.bf16.gmra.mrb[4].mxu1 %v1764_v31  ;;  %v1813_v31 = vld [vmem:[%s2359_s1 + $0x474] ss:$8 sps:$4 sm:$0xff]  }
  0x4b   :  { %1049 = vmatpush1.bf16.msra.mxu1 %v1688_v14  ;;  %1140 = vmatmul.mubr.bf16.gmra.mrb[4].mxu0 %v1768_v33  ;;  %v1789_v14 = vld [vmem:[%s2359_s1 + $0x414] ss:$8 sps:$4 sm:$0xff]   ;;  %v1814_v33 = vld [vmem:[%s2360_s0 + $0x20] ss:$36 sps:$4 sm:$0xff]  }
  0x4c   :  { %1155 = vmatpush1.bf16.msra.mxu0 %v1691_v15  ;;  %1050 = vmatprep.subr.bf16.mxu1 %v1696_v16  ;;  %v1790_v15 = vld [vmem:[%s2360_s0 + $0x54] ss:$36 sps:$4 sm:$0xff]   ;;  %v1792_v16 = vld [vmem:[%s2360_s0 + $0x64] ss:$36 sps:$4 sm:$0xff]  }
  0x4d   :  { %1156 = vmatprep.subr.bf16.mxu0 %v1699_v17  ;;  %1076 = vmatprep.mubr.bf16.mxu1 %v1780_v41  ;;  %v1787_v17 = vld [vmem:[%s2359_s1 + $0x410] ss:$8 sps:$4 sm:$0xff]  }
  0x4e   :  { %1182 = vmatprep.mubr.bf16.mxu0 %v1783_v43 }
  0x4f   :  { %1051 = vmatpush1.bf16.msra.mxu1 %v1694_v18  ;;  %v1798_v18 = vld [vmem:[%s2359_s1 + $0x424] ss:$8 sps:$4 sm:$0xff]  }
  0x50   :  { %1157 = vmatpush1.bf16.msra.mxu0 %v1697_v19  ;;  %1052 = vmatprep.subr.bf16.mxu1 %v1702_v20  ;;  %v1794_v19 = vld [vmem:[%s2360_s0 + $0x50] ss:$36 sps:$4 sm:$0xff]   ;;  %v1795_v20 = vld [vmem:[%s2360_s0 + $0x60] ss:$36 sps:$4 sm:$0xff]  }
  0x51   :  { %1158 = vmatprep.subr.bf16.mxu0 %v1705_v21  ;;  %v1796_v21 = vld [vmem:[%s2359_s1 + $0x420] ss:$8 sps:$4 sm:$0xff]  }
  0x53   :  { %1053 = vmatpush1.bf16.msra.mxu1 %v1700_v22  ;;  %v1801_v22 = vld [vmem:[%s2359_s1 + $0x434] ss:$8 sps:$4 sm:$0xff]  }
  0x54   :  { %1159 = vmatpush1.bf16.msra.mxu0 %v1703_v23  ;;  %1054 = vmatprep.subr.bf16.mxu1 %v1708_v24  ;;  %v1799_v23 = vld [vmem:[%s2359_s1 + $0x430] ss:$8 sps:$4 sm:$0xff]   ;;  %v1804_v24 = vld [vmem:[%s2359_s1 + $0x444] ss:$8 sps:$4 sm:$0xff]  }
  0x55   :  { %1160 = vmatprep.subr.bf16.mxu0 %v1711_v25  ;;  %v1816_v25 = vmov 0  }
  0x57   :  { %1055 = vmatpush1.bf16.msra.mxu1 %v1706_v26  ;;  %v1802_v26 = vld [vmem:[%s2359_s1 + $0x440] ss:$8 sps:$4 sm:$0xff]  }
  0x58   :  { %1161 = vmatpush1.bf16.msra.mxu0 %v1709_v27  ;;  %1056 = vmatprep.subr.bf16.mxu1 %v1714_v28  ;;  %v1807_v27 = vld [vmem:[%s2359_s1 + $0x454] ss:$8 sps:$4 sm:$0xff]   ;;  %v1805_v28 = vld [vmem:[%s2359_s1 + $0x450] ss:$8 sps:$4 sm:$0xff]  }
  0x59   :  { %1162 = vmatprep.subr.bf16.mxu0 %v1717_v32  ;;  %v1811_v32 = vld [vmem:[%s2359_s1 + $0x470] ss:$8 sps:$4 sm:$0xff]  }
  0x5b   :  { %1057 = vmatpush1.bf16.msra.mxu1 %v1712_v34  ;;  %v1815_v34 = vld [vmem:[%s2360_s0 + $0x68] ss:$36 sps:$4 sm:$0xff]  }
  0x5c   :  { %1163 = vmatpush1.bf16.msra.mxu0 %v1715_v35  ;;  %1058 = vmatprep.subr.bf16.mxu1 %v1720_v36 }
  0x5d   :  { %1164 = vmatprep.subr.bf16.mxu0 %v1723_v37 }
  0x5f   :  { %1059 = vmatpush1.bf16.msra.mxu1 %v1718_v38 }
  0x60   :  { %1165 = vmatpush1.bf16.msra.mxu0 %v1721_v39  ;;  %1060 = vmatprep.subr.bf16.mxu1 %v1726_v40 }
  0x61   :  { %1166 = vmatprep.subr.bf16.mxu0 %v1729_v42 }
  0x63   :  { %1061 = vmatpush1.bf16.msra.mxu1 %v1724_v44 }
  0x64   :  { %1167 = vmatpush1.bf16.msra.mxu0 %v1727_v45  ;;  %1062 = vmatprep.subr.bf16.mxu1 %v1732_v46 }
  0x65   :  { %1168 = vmatprep.subr.bf16.mxu0 %v1735_v47 }
  0x67   :  { %1063 = vmatpush1.bf16.msra.mxu1 %v1730_v48 }
  0x68   :  { %1169 = vmatpush1.bf16.msra.mxu0 %v1733_v49  ;;  %1064 = vmatprep.subr.bf16.mxu1 %v1738_v50 }
  0x69   :  { %1170 = vmatprep.subr.bf16.mxu0 %v1741_v51 }
  0x6b   :  { %1065 = vmatpush1.bf16.msra.mxu1 %v1736_v52 }
  0x6c   :  { %1171 = vmatpush1.bf16.msra.mxu0 %v1739_v53  ;;  %1066 = vmatprep.subr.bf16.mxu1 %v1744_v54 }
  0x6d   :  { %1172 = vmatprep.subr.bf16.mxu0 %v1747_v55 }
  0x6f   :  { %1067 = vmatpush1.bf16.msra.mxu1 %v1742_v56 }
  0x70   :  { %1173 = vmatpush1.bf16.msra.mxu0 %v1745_v57  ;;  %1068 = vmatprep.subr.bf16.mxu1 %v1750_v58 }
  0x71   :  { %1174 = vmatprep.subr.bf16.mxu0 %v1753_v59 }
  0x73   :  { %1069 = vmatpush1.bf16.msra.mxu1 %v1748_v60 }
  0x74   :  { %1175 = vmatpush1.bf16.msra.mxu0 %v1751_v61  ;;  %1070 = vmatprep.subr.bf16.mxu1 %v1756_v62 }
  0x75   :  { %1176 = vmatprep.subr.bf16.mxu0 %v1759_v63 }
  0x77   :  { %1071 = vmatpush1.bf16.msra.mxu1 %v1754_v0 }
  0x78   :  { %1177 = vmatpush1.bf16.msra.mxu0 %v1757_v1  ;;  %1072 = vmatprep.subr.bf16.mxu1 %v1767_v2 }
  0x79   :  { %1178 = vmatprep.subr.bf16.mxu0 %v1771_v3 }
  0x7b   :  { %1073 = vmatpush1.bf16.msra.mxu1 %v1765_v4 }
  0x7c   :  { %1179 = vmatpush1.bf16.msra.mxu0 %v1769_v5  ;;  %1074 = vmatprep.subr.bf16.mxu1 %v1774_v6 }
  0x7d   :  { %1180 = vmatprep.subr.bf16.mxu0 %v1777_v7 }
  0x7f   :  { %1075 = vmatpush1.bf16.msra.mxu1 %v1772_v8 }
  0x80   :  { %1181 = vmatpush1.bf16.msra.mxu0 %v1775_v9  ;;  %1524 = vmatprep.subr.bf16.mxu1 %v1786_v10 }
  0x81   :  { %1203 = vmatprep.subr.bf16.mxu0 %v1786_v10 }
  0x82   :  { %1077 = vmatmul.mubr.bf16.vlgmr.msra.gmra.mrb[0].mxu1 %v1778_v11 }
  0x83   :  { %1183 = vmatmul.mubr.bf16.vlgmr.msra.gmra.mrb[0].mxu0 %v1781_v12  ;;  %1532 = vmatpush1.bf16.msra.mxu1 %v1784_v13 }
  0x84   :  { %1204 = vmatpush1.bf16.msra.mxu0 %v1784_v13  ;;  %1525 = vmatprep.subr.bf16.mxu1 %v1789_v14 }
  0x85   :  { %1205 = vmatprep.subr.bf16.mxu0 %v1789_v14  ;;  %1086 = vmatprep.mubr.bf16.mxu1 %v1790_v15 }
  0x86   :  { %1192 = vmatprep.mubr.bf16.mxu0 %v1792_v16 }
  0x87   :  { %1533 = vmatpush1.bf16.msra.mxu1 %v1787_v17 }
  0x88   :  { %1206 = vmatpush1.bf16.msra.mxu0 %v1787_v17  ;;  %1526 = vmatprep.subr.bf16.mxu1 %v1798_v18 }
  0x89   :  { %1207 = vmatprep.subr.bf16.mxu0 %v1798_v18 }
  0x8a   :  { %1087 = vmatmul.mubr.bf16.gmra.mrb[4].mxu1 %v1794_v19 }
  0x8b   :  { %1193 = vmatmul.mubr.bf16.gmra.mrb[4].mxu0 %v1795_v20  ;;  %1534 = vmatpush1.bf16.msra.mxu1 %v1796_v21 }
  0x8c   :  { %1208 = vmatpush1.bf16.msra.mxu0 %v1796_v21  ;;  %1527 = vmatprep.subr.bf16.mxu1 %v1801_v22 }
  0x8d   :  { %1209 = vmatprep.subr.bf16.mxu0 %v1801_v22  ;;  %1235 = vmatprep.mubr.bf16.mxu0 %v1816_v25 }
  0x8e   :  { %1245 = vmatprep.mubr.bf16.mxu1 %v1816_v25 }
  0x8f   :  { %1535 = vmatpush1.bf16.msra.mxu1 %v1799_v23 }
  0x90   :  { %1210 = vmatpush1.bf16.msra.mxu0 %v1799_v23  ;;  %1528 = vmatprep.subr.bf16.mxu1 %v1804_v24 }
  0x91   :  { %1211 = vmatprep.subr.bf16.mxu0 %v1804_v24 }
  0x93   :  { %1536 = vmatpush1.bf16.msra.mxu1 %v1802_v26 }
  0x94   :  { %1212 = vmatpush1.bf16.msra.mxu0 %v1802_v26  ;;  %1529 = vmatprep.subr.bf16.mxu1 %v1807_v27 }
  0x95   :  { %1213 = vmatprep.subr.bf16.mxu0 %v1807_v27 }
  0x97   :  { %1537 = vmatpush1.bf16.msra.mxu1 %v1805_v28 }
  0x98   :  { %1214 = vmatpush1.bf16.msra.mxu0 %v1805_v28  ;;  %1530 = vmatprep.subr.bf16.mxu1 %v1810_v29  ;;  %v1817_v28 = vmov 1966171168  }
  0x99   :  { %1215 = vmatprep.subr.bf16.mxu0 %v1810_v29  ;;  %v1286_v29 = vunpack.c.l.s4 %v1817_v28 }
  0x9b   :  { %1538 = vmatpush1.bf16.msra.mxu1 %v1808_v30 }
  0x9c   :  { %1216 = vmatpush1.bf16.msra.mxu0 %v1808_v30  ;;  %1531 = vmatprep.subr.bf16.mxu1 %v1813_v31  ;;  %v1288_v30 = vlaneseq }
  0x9d   :  { %1217 = vmatprep.subr.bf16.mxu0 %v1813_v31 }
  0x9e   :  { %vm1302_vm0 = vcmp.lt.s32.totalorder %v1288_v30, 256 }
  0x9f   :  { %1539 = vmatpush1.bf16.msra.mxu1 %v1811_v32 }
  0xa0   :  { %1218 = vmatpush1.bf16.msra.mxu0 %v1811_v32 }
  0xa2   :  { %1246 = vmatmul.mubr.bf16.vlgmr.msra.gmra.mrb[8].mxu1 %v1815_v34 }
  0xa3   :  { %1236 = vmatmul.mubr.bf16.vlgmr.msra.gmra.mrb[0].mxu0 %v1814_v33 }
 0x155   :  { %v1078_v35 = vpop.f32.mrb[0].mxu1 }
 0x156   :  { %v1080_v36 = vpop.f32.mrb[1].mxu1 }
 0x157   :  { %v1082_v37 = vpop.f32.mrb[2].mxu1 }
 0x158   :  { %v1084_v38 = vpop.f32.mrb[3].mxu1 }
 0x15d   :  { %v1088_v39 = vpop.f32.mrb[4].mxu1 }
 0x15e   :  { %v1194_v40 = vpop.f32.mrb[4].mxu0  ;;  %v1090_v42 = vpop.f32.mrb[5].mxu1 }
 0x15f   :  { %v1544_v41 = vadd.f32 %v1194_v40, %v1088_v39  ;;  %v1196_v43 = vpop.f32.mrb[5].mxu0  ;;  %v1092_v45 = vpop.f32.mrb[6].mxu1  ;;  %v1287_v39 = vunpack.c.0.s8 %v1286_v29  ;;  %v1289_v40 = vshrl.u32 %v1288_v30, 7 }
 0x160   :  { %v1546_v44 = vadd.f32 %v1196_v43, %v1090_v42  ;;  %v1198_v46 = vpop.f32.mrb[6].mxu0  ;;  %v1094_v48 = vpop.f32.mrb[7].mxu1 }
 0x161   :  { %v1548_v47 = vadd.f32 %v1198_v46, %v1092_v45  ;;  %v1200_v49 = vpop.f32.mrb[7].mxu0 }
 0x162   :  { %v1550_v50 = vadd.f32 %v1200_v49, %v1094_v48  ;;  %v1290_v49 = vsub.s32 %v1287_v39, %v1289_v40 }
 0x175   :  { %v1247_v52 = vpop.f32.mrb[8].mxu1 }
 0x176   :  { %v1237_v51 = vpop.f32.mrb[0].mxu0  ;;  %v1545_v54 = vadd.f32 %v1544_v41, %v1247_v52  ;;  %v1249_v56 = vpop.f32.mrb[9].mxu1 }
 0x177   :  { %v1540_v53 = vadd.f32 %v1237_v51, %v1078_v35  ;;  %v1239_v55 = vpop.f32.mrb[1].mxu0  ;;  %v1547_v58 = vadd.f32 %v1546_v44, %v1249_v56  ;;  %v1251_v60 = vpop.f32.mrb[10].mxu1 }
 0x178   :  { %v1541_v57 = vadd.f32 %v1239_v55, %v1080_v36  ;;  %v1241_v59 = vpop.f32.mrb[2].mxu0  ;;  %1260 = vst [vmem:[%s2361_s2 + $0x20] sm:$0xff] %v1545_v54  ;;  %v1549_v62 = vadd.f32 %v1548_v47, %v1251_v60  ;;  %v1253_v0 = vpop.f32.mrb[11].mxu1  ;;  %v1309_v9 = vmul.f32 %v1545_v54, %v1545_v54 }
 0x179   :  { %1256 = vst [vmem:[%s2361_s2] sm:$0xff] %v1540_v53  ;;  %v1542_v61 = vadd.f32 %v1241_v59, %v1082_v37  ;;  %v1243_v63 = vpop.f32.mrb[3].mxu0  ;;  %1261 = vst [vmem:[%s2361_s2 + $0x28] sm:$0xff] %v1547_v58  ;;  %v1551_v2 = vadd.f32 %v1550_v50, %v1253_v0  ;;  %v1305_v3 = vmul.f32 %v1540_v53, %v1540_v53 }
 0x17a   :  { %1257 = vst [vmem:[%s2361_s2 + $0x8] sm:$0xff] %v1541_v57  ;;  %v1543_v1 = vadd.f32 %v1243_v63, %v1084_v38  ;;  %1262 = vst [vmem:[%s2361_s2 + $0x30] sm:$0xff] %v1549_v62  ;;  %v1306_v6 = vmul.f32 %v1541_v57, %v1541_v57  ;;  %v1310_v12 = vmul.f32 %v1547_v58, %v1547_v58 }
 0x17b   :  { %1258 = vst [vmem:[%s2361_s2 + $0x10] sm:$0xff] %v1542_v61  ;;  %v1264_v4 = vadd.f32 %v1542_v61, %v1540_v53  ;;  %v1307_v5 = vmul.f32 %v1542_v61, %v1542_v61  ;;  %1263 = vst [vmem:[%s2361_s2 + $0x38] sm:$0xff] %v1551_v2  ;;  %v1311_v16 = vmul.f32 %v1549_v62, %v1549_v62 }
 0x17c   :  { %1259 = vst [vmem:[%s2361_s2 + $0x18] sm:$0xff] %v1543_v1  ;;  %v1273_v7 = vadd.f32 %v1543_v1, %v1541_v57  ;;  %v1308_v8 = vmul.f32 %v1543_v1, %v1543_v1  ;;  %v1312_v19 = vmul.f32 %v1551_v2, %v1551_v2 }
 0x17d   :  { %v1313_v10 = vadd.f32 %v1307_v5, %v1305_v3  ;;  %v1265_v11 = vadd.f32 %v1545_v54, %v1264_v4 }
 0x17e   :  { %v1322_v13 = vadd.f32 %v1308_v8, %v1306_v6  ;;  %v1274_v14 = vadd.f32 %v1547_v58, %v1273_v7 }
 0x17f   :  { %v1266_v15 = vadd.f32 %v1549_v62, %v1265_v11  ;;  %v1314_v17 = vadd.f32 %v1313_v10, %v1309_v9 }
 0x180   :  { %v1275_v18 = vadd.f32 %v1551_v2, %v1274_v14  ;;  %v1323_v20 = vadd.f32 %v1322_v13, %v1310_v12 }
 0x181   :  { %v1267_v21 = vrot.slane %v1266_v15, 4  ;;  %v1315_v22 = vadd.f32 %v1314_v17, %v1311_v16 }
 0x182   :  { %v1276_v23 = vrot.slane %v1275_v18, 4  ;;  %v1324_v24 = vadd.f32 %v1323_v20, %v1312_v19 }
 0x183   :  { %v1268_v25 = vadd.f32 %v1267_v21, %v1266_v15  ;;  %v1316_v26 = vrot.slane %v1315_v22, 4 }
 0x184   :  { %v1277_v27 = vadd.f32 %v1276_v23, %v1275_v18  ;;  %v1325_v31 = vrot.slane %v1324_v24, 4 }
 0x185   :  { %v1269_v32 = vrot.slane %v1268_v25, 2  ;;  %v1317_v33 = vadd.f32 %v1316_v26, %v1315_v22 }
 0x186   :  { %v1278_v34 = vrot.slane %v1277_v27, 2  ;;  %v1326_v35 = vadd.f32 %v1325_v31, %v1324_v24 }
 0x187   :  { %v1270_v36 = vadd.f32 %v1269_v32, %v1268_v25  ;;  %v1318_v37 = vrot.slane %v1317_v33, 2 }
 0x188   :  { %v1279_v38 = vadd.f32 %v1278_v34, %v1277_v27  ;;  %v1327_v41 = vrot.slane %v1326_v35, 2 }
 0x189   :  { %v1271_v42 = vrot.slane %v1270_v36, 1  ;;  %v1319_v43 = vadd.f32 %v1318_v37, %v1317_v33 }
 0x18a   :  { %v1280_v44 = vrot.slane %v1279_v38, 1  ;;  %v1328_v45 = vadd.f32 %v1327_v41, %v1326_v35 }
 0x18b   :  { %v1272_v46 = vadd.f32 %v1271_v42, %v1270_v36  ;;  %v1320_v47 = vrot.slane %v1319_v43, 1 }
 0x18c   :  { %v1281_v48 = vadd.f32 %v1280_v44, %v1279_v38  ;;  %v1329_v50 = vrot.slane %v1328_v45, 1 }
 0x18d   :  { %v1321_v51 = vadd.f32 %v1320_v47, %v1319_v43 }
 0x18e   :  { %v1284_v52 = vcombine.low %v1272_v46, %v1281_v48  ;;  %v1330_v53 = vadd.f32 %v1329_v50, %v1328_v45 }
 0x190   :  { %v1291_v54 = vrot.slane %v1284_v52, %v1290_v49  ;;  %v1333_v55 = vcombine.low %v1321_v51, %v1330_v53 }
 0x192   :  { %v1298_v56 = vrot.slane %v1291_v54, %v1290_v49  ;;  %v1340_v57 = vrot.slane %v1333_v55, %v1290_v49 }
 0x194   :  { %1304 = vst.msk [vmem:[%s2362_s3] sm:$0x3] %vm1302_vm0, %v1298_v56  ;;  %v1347_v58 = vrot.slane %v1340_v57, %v1290_v49 }
 0x196   :  { %1349 = vst.msk [vmem:[%s2363_s4] sm:$0x3] %vm1302_vm0, %v1347_v58 }

// kernel: tile.58
= control target key start
LH: loop header
LB: loop body
LE: loop exit
PB: predicated region body
PF: predicated region fallthrough
CT: control target
= control target key end

     0   :  { %s22_s0 = inlined_call_operand.vmem [shape: f32[32], index: 0, kind: input, shape index: {}]   ;;  %s23_s1 = inlined_call_operand.vmem [shape: f32[4,32], index: 1, kind: output, shape index: {}]  }
   0x1   :  { %v4_v0 = vld [vmem:[%s22_s0] ss:$0 sm:$0xff] }
   0x2   :  { %5 = vst [vmem:[%s23_s1] sm:$0xf] %v4_v0 }

// kernel: generator_forward.11
= control target key start
LH: loop header
LB: loop body
LE: loop exit
PB: predicated region body
PF: predicated region fallthrough
CT: control target
= control target key end

     0   :  { %v1077_v34 = vmov 0.0   ;;  %vm1078_vm0 = vmmov 0   ;;  %s1371_s1 = inlined_call_operand.vmem [shape: bf16[640,128], index: 1, kind: input, shape index: {}]   ;;  %s1372_s0 = inlined_call_operand.vmem [shape: bf16[80,640], index: 0, kind: input, shape index: {}]   ;;  %s1373_s2 = inlined_call_operand.vmem [shape: f32[80,128], index: 2, kind: output, shape index: {0}]   ;;  %s1374_s3 = inlined_call_operand.vmem [shape: f32[1,1,128], index: 3, kind: output, shape index: {1}]   ;;  %s1375_s4 = inlined_call_operand.vmem [shape: f32[1,1,128], index: 4, kind: output, shape index: {2}]  }
   0x1   :  { %v1002_v0 = vld [vmem:[%s1371_s1 + $0x40] sm:$0xff]   ;;  %v1006_v4 = vld [vmem:[%s1371_s1 + $0x48] sm:$0xff]   ;;  %v1010_v8 = vld [vmem:[%s1371_s1 + $0x50] sm:$0xff]  }
   0x2   :  { %v1003_v1 = vld [vmem:[%s1371_s1 + $0xc0] sm:$0xff]   ;;  %843 = vmatprep.subr.bf16.mxu0 %v1002_v0  ;;  %v1007_v5 = vld [vmem:[%s1371_s1 + $0xc8] sm:$0xff]   ;;  %v1011_v9 = vld [vmem:[%s1371_s1 + $0xd0] sm:$0xff]  }
   0x3   :  { %v1004_v2 = vld [vmem:[%s1371_s1] sm:$0xff]   ;;  %889 = vmatprep.subr.bf16.mxu1 %v1003_v1  ;;  %v1008_v6 = vld [vmem:[%s1371_s1 + $0x8] sm:$0xff]   ;;  %v1012_v10 = vld [vmem:[%s1371_s1 + $0x10] sm:$0xff]  }
   0x4   :  { %v1005_v3 = vld [vmem:[%s1371_s1 + $0x80] sm:$0xff]   ;;  %844 = vmatpush3.bf16.msra.mxu0 %v1004_v2  ;;  %v1009_v7 = vld [vmem:[%s1371_s1 + $0x88] sm:$0xff]   ;;  %v1013_v11 = vld [vmem:[%s1371_s1 + $0x90] sm:$0xff]  }
   0x5   :  { %890 = vmatpush3.bf16.msra.mxu1 %v1005_v3  ;;  %845 = vmatprep.subr.bf16.mxu0 %v1006_v4  ;;  %v1014_v12 = vld [vmem:[%s1371_s1 + $0x58] sm:$0xff]   ;;  %v1018_v16 = vld [vmem:[%s1371_s1 + $0x60] sm:$0xff]   ;;  %v1022_v20 = vld [vmem:[%s1371_s1 + $0x68] sm:$0xff]  }
   0x6   :  { %891 = vmatprep.subr.bf16.mxu1 %v1007_v5  ;;  %v1015_v13 = vld [vmem:[%s1371_s1 + $0xd8] sm:$0xff]   ;;  %v1019_v17 = vld [vmem:[%s1371_s1 + $0xe0] sm:$0xff]   ;;  %v1023_v21 = vld [vmem:[%s1371_s1 + $0xe8] sm:$0xff]  }
   0x7   :  { %v1016_v14 = vld [vmem:[%s1371_s1 + $0x18] sm:$0xff]   ;;  %v1020_v18 = vld [vmem:[%s1371_s1 + $0x20] sm:$0xff]   ;;  %v1024_v22 = vld [vmem:[%s1371_s1 + $0x28] sm:$0xff]  }
   0x8   :  { %846 = vmatpush3.bf16.msra.mxu0 %v1008_v6  ;;  %v1017_v15 = vld [vmem:[%s1371_s1 + $0x98] sm:$0xff]   ;;  %v1021_v19 = vld [vmem:[%s1371_s1 + $0xa0] sm:$0xff]   ;;  %v1025_v23 = vld [vmem:[%s1371_s1 + $0xa8] sm:$0xff]  }
   0x9   :  { %892 = vmatpush3.bf16.msra.mxu1 %v1009_v7  ;;  %847 = vmatprep.subr.bf16.mxu0 %v1010_v8  ;;  %v1026_v24 = vld [vmem:[%s1371_s1 + $0x70] sm:$0xff]   ;;  %v1030_v28 = vld [vmem:[%s1371_s1 + $0x78] sm:$0xff]   ;;  %v1039_v36 = vld [vmem:[%s1372_s0 + $0xc] ss:$20 sps:$4 sm:$0xff]  }
   0xa   :  { %893 = vmatprep.subr.bf16.mxu1 %v1011_v9  ;;  %v1027_v25 = vld [vmem:[%s1371_s1 + $0xf0] sm:$0xff]   ;;  %v1031_v29 = vld [vmem:[%s1371_s1 + $0xf8] sm:$0xff]   ;;  %v1040_v37 = vld [vmem:[%s1371_s1 + $0x100] sm:$0xff]   ;;  %600 = vmatprep.mubr.bf16.mxu1 %v1039_v36 }
   0xb   :  { %v1028_v26 = vld [vmem:[%s1371_s1 + $0x30] sm:$0xff]   ;;  %v1032_v30 = vld [vmem:[%s1371_s1 + $0x38] sm:$0xff]   ;;  %v1041_v38 = vld [vmem:[%s1371_s1 + $0x108] sm:$0xff]  }
   0xc   :  { %848 = vmatpush3.bf16.msra.mxu0 %v1012_v10  ;;  %v1029_v27 = vld [vmem:[%s1371_s1 + $0xb0] sm:$0xff]   ;;  %v1033_v31 = vld [vmem:[%s1371_s1 + $0xb8] sm:$0xff]   ;;  %v1042_v39 = vld [vmem:[%s1372_s0 + $0x2c] ss:$20 sps:$4 sm:$0xff]  }
   0xd   :  { %894 = vmatpush3.bf16.msra.mxu1 %v1013_v11  ;;  %849 = vmatprep.subr.bf16.mxu0 %v1014_v12  ;;  %v1034_v32 = vld [vmem:[%s1372_s0] ss:$20 sps:$4 sm:$0xff]   ;;  %v1036_v33 = vld [vmem:[%s1372_s0 + $0x4] ss:$20 sps:$4 sm:$0xff]   ;;  %v1037_v35 = vld [vmem:[%s1372_s0 + $0x8] ss:$20 sps:$4 sm:$0xff]  }
   0xe   :  { %895 = vmatprep.subr.bf16.mxu1 %v1015_v13  ;;  %527 = vmatprep.mubr.bf16.mxu0 %v1036_v33  ;;  %v1044_v40 = vld [vmem:[%s1372_s0 + $0x34] ss:$20 sps:$4 sm:$0xff]   ;;  %v1047_v42 = vld [vmem:[%s1372_s0 + $0x30] ss:$20 sps:$4 sm:$0xff]   ;;  %v1055_v46 = vld [vmem:[%s1371_s1 + $0x118] sm:$0xff]  }
   0xf   :  { %v1046_v41 = vld [vmem:[%s1372_s0 + $0x28] ss:$20 sps:$4 sm:$0xff]   ;;  %v1048_v43 = vld [vmem:[%s1371_s1 + $0x110] sm:$0xff]   ;;  %v1054_v48 = vld [vmem:[%s1372_s0 + $0x58] ss:$20 sps:$4 sm:$0xff]  }
  0x10   :  { %850 = vmatpush3.bf16.msra.mxu0 %v1016_v14  ;;  %v1049_v44 = vld [vmem:[%s1372_s0 + $0x54] ss:$20 sps:$4 sm:$0xff]   ;;  %v1051_v45 = vld [vmem:[%s1372_s0 + $0x5c] ss:$20 sps:$4 sm:$0xff]   ;;  %v1056_v49 = vld [vmem:[%s1371_s1 + $0x120] sm:$0xff]  }
  0x11   :  { %896 = vmatpush3.bf16.msra.mxu1 %v1017_v15  ;;  %851 = vmatprep.subr.bf16.mxu0 %v1018_v16  ;;  %v1053_v47 = vld [vmem:[%s1372_s0 + $0x50] ss:$20 sps:$4 sm:$0xff]   ;;  %v1063_v52 = vld [vmem:[%s1371_s1 + $0x128] sm:$0xff]   ;;  %v1062_v54 = vld [vmem:[%s1372_s0 + $0x80] ss:$20 sps:$4 sm:$0xff]  }
  0x12   :  { %897 = vmatprep.subr.bf16.mxu1 %v1019_v17  ;;  %v1057_v50 = vld [vmem:[%s1372_s0 + $0x7c] ss:$20 sps:$4 sm:$0xff]   ;;  %v1059_v51 = vld [vmem:[%s1372_s0 + $0x84] ss:$20 sps:$4 sm:$0xff]   ;;  %v1066_v56 = vld [vmem:[%s1372_s0 + $0xac] ss:$20 sps:$4 sm:$0xff]  }
  0x13   :  { %v1061_v53 = vld [vmem:[%s1372_s0 + $0x78] ss:$20 sps:$4 sm:$0xff]   ;;  %v1068_v57 = vld [vmem:[%s1371_s1 + $0x130] sm:$0xff]   ;;  %v1070_v60 = vld [vmem:[%s1372_s0 + $0xa8] ss:$20 sps:$4 sm:$0xff]  }
  0x14   :  { %852 = vmatpush3.bf16.msra.mxu0 %v1020_v18  ;;  %v1064_v55 = vld [vmem:[%s1372_s0 + $0xa4] ss:$20 sps:$4 sm:$0xff]   ;;  %v1069_v59 = vld [vmem:[%s1372_s0 + $0xa0] ss:$20 sps:$4 sm:$0xff]   ;;  %v1073_v62 = vld [vmem:[%s1372_s0 + $0x88] ss:$20 sps:$4 sm:$0xff]  }
  0x15   :  { %898 = vmatpush3.bf16.msra.mxu1 %v1021_v19  ;;  %853 = vmatprep.subr.bf16.mxu0 %v1022_v20  ;;  %v1071_v58 = vld [vmem:[%s1371_s1 + $0x138] sm:$0xff]   ;;  %v1072_v61 = vld [vmem:[%s1372_s0 + $0x10] ss:$20 sps:$4 sm:$0xff]   ;;  %v1076_v1 = vld [vmem:[%s1372_s0 + $0x60] ss:$20 sps:$4 sm:$0xff]  }
  0x16   :  { %899 = vmatprep.subr.bf16.mxu1 %v1023_v21  ;;  %v1074_v63 = vld [vmem:[%s1372_s0 + $0x38] ss:$20 sps:$4 sm:$0xff]   ;;  %v1075_v0 = vld [vmem:[%s1372_s0 + $0xb0] ss:$20 sps:$4 sm:$0xff]  }
  0x18   :  { %854 = vmatpush3.bf16.msra.mxu0 %v1024_v22 }
  0x19   :  { %900 = vmatpush3.bf16.msra.mxu1 %v1025_v23  ;;  %855 = vmatprep.subr.bf16.mxu0 %v1026_v24 }
  0x1a   :  { %901 = vmatprep.subr.bf16.mxu1 %v1027_v25 }
  0x1c   :  { %856 = vmatpush3.bf16.msra.mxu0 %v1028_v26 }
  0x1d   :  { %902 = vmatpush3.bf16.msra.mxu1 %v1029_v27  ;;  %857 = vmatprep.subr.bf16.mxu0 %v1030_v28 }
  0x1e   :  { %903 = vmatprep.subr.bf16.mxu1 %v1031_v29 }
  0x20   :  { %858 = vmatpush3.bf16.msra.mxu0 %v1032_v30 }
  0x21   :  { %904 = vmatpush3.bf16.msra.mxu1 %v1033_v31  ;;  %948 = vmatprep.subr.bf16.mxu0 %v1077_v34 }
  0x22   :  { %984 = vmatprep.subr.bf16.mxu1 %v1077_v34 }
  0x23   :  { %528 = vmatmul.mubr.bf16.vlgmr.msra.gmra.mrb[0].mxu0 %v1034_v32 }
  0x24   :  { %601 = vmatmul.mubr.bf16.vlgmr.msra.gmra.mrb[0].mxu1 %v1037_v35  ;;  %949 = vmatpush3.bf16.msra.mxu0 %v1040_v37 }
  0x25   :  { %950 = vmatprep.subr.bf16.mxu0 %v1077_v34  ;;  %992 = vmatpush3.bf16.msra.mxu1 %v1040_v37 }
  0x26   :  { %535 = vmatprep.mubr.bf16.mxu0 %v1042_v39  ;;  %985 = vmatprep.subr.bf16.mxu1 %v1077_v34 }
  0x27   :  { %608 = vmatprep.mubr.bf16.mxu1 %v1044_v40 }
  0x28   :  { %951 = vmatpush3.bf16.msra.mxu0 %v1041_v38 }
  0x29   :  { %952 = vmatprep.subr.bf16.mxu0 %v1077_v34  ;;  %993 = vmatpush3.bf16.msra.mxu1 %v1041_v38 }
  0x2a   :  { %986 = vmatprep.subr.bf16.mxu1 %v1077_v34 }
  0x2b   :  { %536 = vmatmul.mubr.bf16.gmra.mrb[4].mxu0 %v1046_v41 }
  0x2c   :  { %609 = vmatmul.mubr.bf16.gmra.mrb[4].mxu1 %v1047_v42  ;;  %953 = vmatpush3.bf16.msra.mxu0 %v1048_v43 }
  0x2d   :  { %543 = vmatprep.mubr.bf16.mxu0 %v1049_v44  ;;  %616 = vmatprep.mubr.bf16.mxu1 %v1051_v45 }
  0x2e   :  { %954 = vmatprep.subr.bf16.mxu0 %v1077_v34  ;;  %994 = vmatpush3.bf16.msra.mxu1 %v1048_v43 }
  0x2f   :  { %987 = vmatprep.subr.bf16.mxu1 %v1077_v34 }
  0x30   :  { %955 = vmatpush3.bf16.msra.mxu0 %v1055_v46 }
  0x31   :  { %956 = vmatprep.subr.bf16.mxu0 %v1077_v34 }
  0x32   :  { %995 = vmatpush3.bf16.msra.mxu1 %v1055_v46 }
  0x33   :  { %544 = vmatmul.mubr.bf16.gmra.mrb[8].mxu0 %v1053_v47  ;;  %988 = vmatprep.subr.bf16.mxu1 %v1077_v34 }
  0x34   :  { %617 = vmatmul.mubr.bf16.gmra.mrb[8].mxu1 %v1054_v48  ;;  %957 = vmatpush3.bf16.msra.mxu0 %v1056_v49 }
  0x35   :  { %551 = vmatprep.mubr.bf16.mxu0 %v1057_v50  ;;  %624 = vmatprep.mubr.bf16.mxu1 %v1059_v51 }
  0x36   :  { %996 = vmatpush3.bf16.msra.mxu1 %v1056_v49  ;;  %958 = vmatprep.subr.bf16.mxu0 %v1077_v34 }
  0x37   :  { %989 = vmatprep.subr.bf16.mxu1 %v1077_v34 }
  0x38   :  { %959 = vmatpush3.bf16.msra.mxu0 %v1063_v52 }
  0x39   :  { %960 = vmatprep.subr.bf16.mxu0 %v1077_v34 }
  0x3a   :  { %997 = vmatpush3.bf16.msra.mxu1 %v1063_v52 }
  0x3b   :  { %552 = vmatmul.mubr.bf16.gmra.mrb[12].mxu0 %v1061_v53  ;;  %990 = vmatprep.subr.bf16.mxu1 %v1077_v34 }
  0x3c   :  { %625 = vmatmul.mubr.bf16.gmra.mrb[12].mxu1 %v1062_v54  ;;  %559 = vmatprep.mubr.bf16.mxu0 %v1064_v55 }
  0x3d   :  { %632 = vmatprep.mubr.bf16.mxu1 %v1066_v56  ;;  %961 = vmatpush3.bf16.msra.mxu0 %v1068_v57 }
  0x3e   :  { %998 = vmatpush3.bf16.msra.mxu1 %v1068_v57  ;;  %962 = vmatprep.subr.bf16.mxu0 %v1077_v34 }
  0x3f   :  { %991 = vmatprep.subr.bf16.mxu1 %v1077_v34 }
  0x41   :  { %963 = vmatpush3.bf16.msra.mxu0 %v1071_v58 }
  0x42   :  { %999 = vmatpush3.bf16.msra.mxu1 %v1071_v58 }
  0x43   :  { %560 = vmatmul.mubr.bf16.gmra.mrb[16].mxu0 %v1069_v59 }
  0x44   :  { %633 = vmatmul.mubr.bf16.gmra.mrb[16].mxu1 %v1070_v60  ;;  %964 = vmatprep.mubr.msk.bf16.mxu0 %vm1078_vm0, %v1077_v34 }
  0x45   :  { %976 = vmatprep.mubr.msk.bf16.mxu1 %vm1078_vm0, %v1077_v34 }
  0x4b   :  { %965 = vmatmul.mubr.bf16.vlgmr.msra.gmra.mrb[20].mxu0 %v1072_v61 }
  0x4c   :  { %977 = vmatmul.mubr.bf16.vlgmr.msra.gmra.mrb[20].mxu1 %v1073_v62  ;;  %968 = vmatprep.mubr.msk.bf16.mxu0 %vm1078_vm0, %v1077_v34 }
  0x4d   :  { %980 = vmatprep.mubr.msk.bf16.mxu1 %vm1078_vm0, %v1077_v34 }
  0x53   :  { %969 = vmatmul.mubr.bf16.gmra.mrb[24].mxu0 %v1074_v63 }
  0x54   :  { %981 = vmatmul.mubr.bf16.gmra.mrb[24].mxu1 %v1075_v0  ;;  %972 = vmatprep.mubr.msk.bf16.mxu0 %vm1078_vm0, %v1077_v34 }
  0x5b   :  { %973 = vmatmul.mubr.bf16.gmra.mrb[28].mxu0 %v1076_v1 }
  0xf6   :  { %v859_v2 = vpop.f32.mrb[0].mxu0 }
  0xf7   :  { %v905_v3 = vpop.f32.mrb[0].mxu1  ;;  %v860_v4 = vpop.f32.mrb[1].mxu0 }
  0xf8   :  { %v861_v5 = vadd.f32 %v860_v4, %v859_v2  ;;  %v906_v6 = vpop.f32.mrb[1].mxu1  ;;  %v862_v7 = vpop.f32.mrb[2].mxu0 }
  0xf9   :  { %v907_v8 = vadd.f32 %v906_v6, %v905_v3  ;;  %v908_v9 = vpop.f32.mrb[2].mxu1  ;;  %v863_v10 = vpop.f32.mrb[3].mxu0 }
  0xfa   :  { %v864_v11 = vadd.f32 %v863_v10, %v862_v7  ;;  %v909_v12 = vpop.f32.mrb[3].mxu1 }
  0xfb   :  { %v910_v13 = vadd.f32 %v909_v12, %v908_v9  ;;  %v603_v14 = vadd.f32 %v907_v8, %v861_v5 }
  0xfd   :  { %v1320_v15 = vadd.f32 %v910_v13, %v864_v11 }
  0xfe   :  { %v865_v16 = vpop.f32.mrb[4].mxu0 }
  0xff   :  { %v911_v17 = vpop.f32.mrb[4].mxu1  ;;  %v866_v18 = vpop.f32.mrb[5].mxu0 }
 0x100   :  { %v867_v19 = vadd.f32 %v866_v18, %v865_v16  ;;  %v912_v20 = vpop.f32.mrb[5].mxu1  ;;  %v868_v21 = vpop.f32.mrb[6].mxu0 }
 0x101   :  { %v913_v22 = vadd.f32 %v912_v20, %v911_v17  ;;  %v914_v23 = vpop.f32.mrb[6].mxu1  ;;  %v869_v24 = vpop.f32.mrb[7].mxu0 }
 0x102   :  { %v870_v25 = vadd.f32 %v869_v24, %v868_v21  ;;  %v915_v26 = vpop.f32.mrb[7].mxu1 }
 0x103   :  { %v916_v27 = vadd.f32 %v915_v26, %v914_v23  ;;  %v1322_v28 = vadd.f32 %v913_v22, %v867_v19 }
 0x105   :  { %v1324_v29 = vadd.f32 %v916_v27, %v870_v25 }
 0x106   :  { %v871_v30 = vpop.f32.mrb[8].mxu0 }
 0x107   :  { %v917_v31 = vpop.f32.mrb[8].mxu1  ;;  %v872_v32 = vpop.f32.mrb[9].mxu0 }
 0x108   :  { %v873_v33 = vadd.f32 %v872_v32, %v871_v30  ;;  %v918_v34 = vpop.f32.mrb[9].mxu1  ;;  %v874_v35 = vpop.f32.mrb[10].mxu0 }
 0x109   :  { %v919_v36 = vadd.f32 %v918_v34, %v917_v31  ;;  %v920_v37 = vpop.f32.mrb[10].mxu1  ;;  %v875_v38 = vpop.f32.mrb[11].mxu0 }
 0x10a   :  { %v876_v39 = vadd.f32 %v875_v38, %v874_v35  ;;  %v921_v40 = vpop.f32.mrb[11].mxu1 }
 0x10b   :  { %v922_v41 = vadd.f32 %v921_v40, %v920_v37  ;;  %v1326_v42 = vadd.f32 %v919_v36, %v873_v33 }
 0x10d   :  { %v1328_v43 = vadd.f32 %v922_v41, %v876_v39 }
 0x10e   :  { %v877_v44 = vpop.f32.mrb[12].mxu0 }
 0x10f   :  { %v923_v45 = vpop.f32.mrb[12].mxu1  ;;  %v878_v46 = vpop.f32.mrb[13].mxu0 }
 0x110   :  { %v879_v47 = vadd.f32 %v878_v46, %v877_v44  ;;  %v924_v48 = vpop.f32.mrb[13].mxu1  ;;  %v880_v49 = vpop.f32.mrb[14].mxu0 }
 0x111   :  { %v925_v50 = vadd.f32 %v924_v48, %v923_v45  ;;  %v926_v51 = vpop.f32.mrb[14].mxu1  ;;  %v881_v52 = vpop.f32.mrb[15].mxu0 }
 0x112   :  { %v882_v53 = vadd.f32 %v881_v52, %v880_v49  ;;  %v927_v54 = vpop.f32.mrb[15].mxu1 }
 0x113   :  { %v928_v55 = vadd.f32 %v927_v54, %v926_v51  ;;  %v627_v56 = vadd.f32 %v925_v50, %v879_v47 }
 0x115   :  { %v630_v57 = vadd.f32 %v928_v55, %v882_v53 }
 0x116   :  { %v883_v58 = vpop.f32.mrb[16].mxu0 }
 0x117   :  { %v929_v59 = vpop.f32.mrb[16].mxu1  ;;  %v884_v60 = vpop.f32.mrb[17].mxu0 }
 0x118   :  { %v885_v61 = vadd.f32 %v884_v60, %v883_v58  ;;  %v930_v62 = vpop.f32.mrb[17].mxu1  ;;  %v886_v63 = vpop.f32.mrb[18].mxu0 }
 0x119   :  { %v931_v0 = vadd.f32 %v930_v62, %v929_v59  ;;  %v932_v1 = vpop.f32.mrb[18].mxu1  ;;  %v887_v2 = vpop.f32.mrb[19].mxu0 }
 0x11a   :  { %v888_v3 = vadd.f32 %v887_v2, %v886_v63  ;;  %v933_v4 = vpop.f32.mrb[19].mxu1 }
 0x11b   :  { %v934_v5 = vadd.f32 %v933_v4, %v932_v1  ;;  %v635_v6 = vadd.f32 %v931_v0, %v885_v61 }
 0x11d   :  { %v638_v7 = vadd.f32 %v934_v5, %v888_v3 }
 0x11e   :  { %v675_v8 = vpop.f32.mrb[20].mxu0 }
 0x11f   :  { %v676_v9 = vadd.f32 %v675_v8, %v603_v14  ;;  %v699_v10 = vpop.f32.mrb[20].mxu1  ;;  %v966_v11 = vpop.f32.mrb[21].mxu0 }
 0x120   :  { %v700_v12 = vadd.f32 %v699_v10, %v627_v56  ;;  %v978_v13 = vpop.f32.mrb[21].mxu1  ;;  %v678_v16 = vpop.f32.mrb[22].mxu0 }
 0x121   :  { %714 = vst [vmem:[%s1373_s2] sm:$0xff] %v676_v9  ;;  %v679_v17 = vadd.f32 %v678_v16, %v1320_v15  ;;  %v702_v18 = vpop.f32.mrb[22].mxu1  ;;  %v967_v19 = vpop.f32.mrb[23].mxu0  ;;  %v740_v14 = vmul.f32 %v676_v9, %v676_v9 }
 0x122   :  { %720 = vst [vmem:[%s1373_s2 + $0x30] sm:$0xff] %v700_v12  ;;  %v703_v20 = vadd.f32 %v702_v18, %v630_v57  ;;  %v979_v21 = vpop.f32.mrb[23].mxu1  ;;  %v746_v55 = vmul.f32 %v700_v12, %v700_v12 }
 0x123   :  { %715 = vst [vmem:[%s1373_s2 + $0x8] sm:$0xff] %v679_v17  ;;  %v724_v22 = vadd.f32 %v679_v17, %v676_v9  ;;  %v741_v23 = vmul.f32 %v679_v17, %v679_v17 }
 0x124   :  { %721 = vst [vmem:[%s1373_s2 + $0x38] sm:$0xff] %v703_v20  ;;  %v747_v57 = vmul.f32 %v703_v20, %v703_v20 }
 0x125   :  { %v750_v15 = vadd.f32 %v741_v23, %v740_v14 }
 0x126   :  { %v683_v24 = vpop.f32.mrb[24].mxu0 }
 0x127   :  { %v684_v25 = vadd.f32 %v683_v24, %v1322_v28  ;;  %v707_v26 = vpop.f32.mrb[24].mxu1  ;;  %v970_v27 = vpop.f32.mrb[25].mxu0 }
 0x128   :  { %v708_v30 = vadd.f32 %v707_v26, %v635_v6  ;;  %v982_v31 = vpop.f32.mrb[25].mxu1  ;;  %v686_v32 = vpop.f32.mrb[26].mxu0 }
 0x129   :  { %716 = vst [vmem:[%s1373_s2 + $0x10] sm:$0xff] %v684_v25  ;;  %v725_v33 = vadd.f32 %v724_v22, %v684_v25  ;;  %v742_v34 = vmul.f32 %v684_v25, %v684_v25  ;;  %v687_v35 = vadd.f32 %v686_v32, %v1324_v29  ;;  %v710_v36 = vpop.f32.mrb[26].mxu1  ;;  %v971_v37 = vpop.f32.mrb[27].mxu0 }
 0x12a   :  { %722 = vst [vmem:[%s1373_s2 + $0x40] sm:$0xff] %v708_v30  ;;  %v711_v28 = vadd.f32 %v710_v36, %v638_v7  ;;  %v983_v38 = vpop.f32.mrb[27].mxu1  ;;  %v748_v60 = vmul.f32 %v708_v30, %v708_v30 }
 0x12b   :  { %v751_v39 = vadd.f32 %v750_v15, %v742_v34  ;;  %717 = vst [vmem:[%s1373_s2 + $0x18] sm:$0xff] %v687_v35  ;;  %v726_v40 = vadd.f32 %v725_v33, %v687_v35  ;;  %v743_v41 = vmul.f32 %v687_v35, %v687_v35 }
 0x12c   :  { %723 = vst [vmem:[%s1373_s2 + $0x48] sm:$0xff] %v711_v28  ;;  %v749_v63 = vmul.f32 %v711_v28, %v711_v28 }
 0x12d   :  { %v752_v29 = vadd.f32 %v751_v39, %v743_v41 }
 0x12e   :  { %v691_v44 = vpop.f32.mrb[28].mxu0 }
 0x12f   :  { %v692_v45 = vadd.f32 %v691_v44, %v1326_v42  ;;  %v974_v46 = vpop.f32.mrb[29].mxu0 }
 0x130   :  { %v694_v47 = vpop.f32.mrb[30].mxu0 }
 0x131   :  { %718 = vst [vmem:[%s1373_s2 + $0x20] sm:$0xff] %v692_v45  ;;  %v727_v48 = vadd.f32 %v726_v40, %v692_v45  ;;  %v744_v49 = vmul.f32 %v692_v45, %v692_v45  ;;  %v695_v50 = vadd.f32 %v694_v47, %v1328_v43  ;;  %v975_v51 = vpop.f32.mrb[31].mxu0 }
 0x133   :  { %v753_v52 = vadd.f32 %v752_v29, %v744_v49  ;;  %719 = vst [vmem:[%s1373_s2 + $0x28] sm:$0xff] %v695_v50  ;;  %v728_v53 = vadd.f32 %v727_v48, %v695_v50  ;;  %v745_v54 = vmul.f32 %v695_v50, %v695_v50 }
 0x135   :  { %v729_v42 = vadd.f32 %v728_v53, %v700_v12  ;;  %v754_v56 = vadd.f32 %v753_v52, %v745_v54 }
 0x137   :  { %v730_v58 = vadd.f32 %v729_v42, %v703_v20  ;;  %v755_v59 = vadd.f32 %v754_v56, %v746_v55 }
 0x139   :  { %v731_v61 = vadd.f32 %v730_v58, %v708_v30  ;;  %v756_v62 = vadd.f32 %v755_v59, %v747_v57 }
 0x13b   :  { %v732_v0 = vadd.f32 %v731_v61, %v711_v28  ;;  %v757_v43 = vadd.f32 %v756_v62, %v748_v60 }
 0x13d   :  { %v733_v1 = vrot.slane %v732_v0, 4  ;;  %v758_v2 = vadd.f32 %v757_v43, %v749_v63 }
 0x13f   :  { %v734_v3 = vadd.f32 %v733_v1, %v732_v0  ;;  %v759_v4 = vrot.slane %v758_v2, 4 }
 0x141   :  { %v735_v5 = vrot.slane %v734_v3, 2  ;;  %v760_v6 = vadd.f32 %v759_v4, %v758_v2 }
 0x143   :  { %v736_v7 = vadd.f32 %v735_v5, %v734_v3  ;;  %v761_v8 = vrot.slane %v760_v6, 2 }
 0x145   :  { %v737_v9 = vrot.slane %v736_v7, 1  ;;  %v762_v10 = vadd.f32 %v761_v8, %v760_v6 }
 0x147   :  { %v738_v11 = vadd.f32 %v737_v9, %v736_v7  ;;  %v763_v12 = vrot.slane %v762_v10, 1 }
 0x149   :  { %739 = vst [vmem:[%s1374_s3] sm:$0x1] %v738_v11  ;;  %v764_v13 = vadd.f32 %v763_v12, %v762_v10 }
 0x14b   :  { %765 = vst [vmem:[%s1375_s4] sm:$0x1] %v764_v13 }

// kernel: generator_forward.12
= control target key start
LH: loop header
LB: loop body
LE: loop exit
PB: predicated region body
PF: predicated region fallthrough
CT: control target
= control target key end

     0   :  { %s244_s0 = inlined_call_operand.vmem [shape: f32[80,128], index: 0, kind: input, shape index: {}]   ;;  %s245_s1 = inlined_call_operand.vmem [shape: f32[1,128], index: 1, kind: input, shape index: {}]   ;;  %s246_s2 = inlined_call_operand.vmem [shape: f32[1,128], index: 2, kind: input, shape index: {}]   ;;  %s247_s3 = inlined_call_operand.vmem [shape: bf16[80,128], index: 3, kind: output, shape index: {}]  }
   0x1   :  { %v14_v0 = vld [vmem:[%s244_s0] sm:$0xff]  ;;  %v15_v1 = vld [vmem:[%s244_s0 + $0x8] sm:$0xff]  ;;  %v16_v6 = vld [vmem:[%s244_s0 + $0x10] sm:$0xff] }
   0x2   :  { %v122_v2 = vld [vmem:[%s245_s1] ss:$0 sm:$0xff]  ;;  %v17_v7 = vld [vmem:[%s244_s0 + $0x18] sm:$0xff]  ;;  %v19_v11 = vld [vmem:[%s244_s0 + $0x28] sm:$0xff] }
   0x3   :  { %v31_v3 = vmul.f32 %v122_v2, %v14_v0  ;;  %v32_v4 = vmul.f32 %v122_v2, %v15_v1  ;;  %v123_v5 = vld [vmem:[%s246_s2] ss:$0 sm:$0xff]  ;;  %v33_v8 = vmul.f32 %v122_v2, %v16_v6  ;;  %v34_v9 = vmul.f32 %v122_v2, %v17_v7  ;;  %v20_v12 = vld [vmem:[%s244_s0 + $0x30] sm:$0xff]  ;;  %v21_v17 = vld [vmem:[%s244_s0 + $0x38] sm:$0xff] }
   0x4   :  { %v18_v10 = vld [vmem:[%s244_s0 + $0x20] sm:$0xff]  ;;  %v36_v16 = vmul.f32 %v122_v2, %v19_v11  ;;  %v37_v20 = vmul.f32 %v122_v2, %v20_v12  ;;  %v38_v21 = vmul.f32 %v122_v2, %v21_v17  ;;  %v23_v27 = vld [vmem:[%s244_s0 + $0x48] sm:$0xff] }
   0x5   :  { %v48_v13 = vadd.f32 %v123_v5, %v31_v3  ;;  %v49_v14 = vadd.f32 %v123_v5, %v32_v4  ;;  %v35_v15 = vmul.f32 %v122_v2, %v18_v10  ;;  %v50_v18 = vadd.f32 %v123_v5, %v33_v8  ;;  %v22_v22 = vld [vmem:[%s244_s0 + $0x40] sm:$0xff] }
   0x6   :  { %v51_v19 = vadd.f32 %v123_v5, %v34_v9  ;;  %v53_v26 = vadd.f32 %v123_v5, %v36_v16  ;;  %v54_v30 = vadd.f32 %v123_v5, %v37_v20  ;;  %v55_v31 = vadd.f32 %v123_v5, %v38_v21 }
   0x7   :  { %v58_v23 = vmax.f32 %v48_v13, 0.0  ;;  %v59_v24 = vmax.f32 %v49_v14, 0.0  ;;  %v52_v25 = vadd.f32 %v123_v5, %v35_v15  ;;  %v60_v28 = vmax.f32 %v50_v18, 0.0 }
   0x8   :  { %v61_v29 = vmax.f32 %v51_v19, 0.0  ;;  %v63_v34 = vmax.f32 %v53_v26, 0.0  ;;  %v39_v35 = vmul.f32 %v122_v2, %v22_v22  ;;  %v64_v37 = vmax.f32 %v54_v30, 0.0 }
   0x9   :  { %v147_v32 = vpack.c.bf16 %v59_v24, %v58_v23  ;;  %v62_v33 = vmax.f32 %v52_v25, 0.0  ;;  %v65_v38 = vmax.f32 %v55_v31, 0.0  ;;  %v40_v39 = vmul.f32 %v122_v2, %v23_v27 }
   0xa   :  { %v152_v36 = vpack.c.bf16 %v61_v29, %v60_v28  ;;  %v56_v41 = vadd.f32 %v123_v5, %v39_v35 }
   0xb   :  { %148 = vst [vmem:[%s247_s3] sm:$0xff] %v147_v32   ;;  %v157_v40 = vpack.c.bf16 %v63_v34, %v62_v33  ;;  %v162_v42 = vpack.c.bf16 %v65_v38, %v64_v37  ;;  %v57_v43 = vadd.f32 %v123_v5, %v40_v39 }
   0xc   :  { %169 = vst [vmem:[%s247_s3 + $0x8] sm:$0xff] %v152_v36   ;;  %v66_v44 = vmax.f32 %v56_v41, 0.0 }
   0xd   :  { %170 = vst [vmem:[%s247_s3 + $0x10] sm:$0xff] %v157_v40   ;;  %171 = vst [vmem:[%s247_s3 + $0x18] sm:$0xff] %v162_v42   ;;  %v67_v45 = vmax.f32 %v57_v43, 0.0 }
   0xf   :  { %v167_v46 = vpack.c.bf16 %v67_v45, %v66_v44 }
  0x11   :  { %172 = vst [vmem:[%s247_s3 + $0x20] sm:$0xff] %v167_v46  }

// kernel: tile.68
= control target key start
LH: loop header
LB: loop body
LE: loop exit
PB: predicated region body
PF: predicated region fallthrough
CT: control target
= control target key end

     0   :  { %s22_s0 = inlined_call_operand.vmem [shape: f32[3], index: 0, kind: input, shape index: {}]   ;;  %s23_s1 = inlined_call_operand.vmem [shape: f32[4,3], index: 1, kind: output, shape index: {}]  }
   0x1   :  { %v4_v0 = vld [vmem:[%s22_s0] ss:$0 sm:$0xff] }
   0x2   :  { %5 = vst [vmem:[%s23_s1] sm:$0xf] %v4_v0 }

// kernel: tile.69
= control target key start
LH: loop header
LB: loop body
LE: loop exit
PB: predicated region body
PF: predicated region fallthrough
CT: control target
= control target key end

     0   :  { %vm7_vm0 = vcmask 23552   ;;  %s37_s8 = smov 3   ;;  %s38_s9 = smov 6   ;;  %vm13_vm1 = vcmask 97352   ;;  %vm19_vm2 = vcmask 72752   ;;  %vm25_vm3 = vcmask 48152   ;;  %s55_s0 = inlined_call_operand.vmem [shape: f32[4,3], index: 0, kind: input, shape index: {}]   ;;  %s56_s1 = inlined_call_operand.vmem [shape: f32[12], index: 1, kind: output, shape index: {}]  }
   0x1   :  { %v4_v0 = vld [vmem:[%s55_s0] sm:$0xf]  ;;  %s36_s0 = smov 9  }
   0x2   :  { %5 = vst [vmem:[#allocation1] sm:$0xf] %v4_v0 }
   0x9   :  { %v10_v1 = vld [vmem:[#allocation1 + $0x3] sm:$0x1]   ;;  %v22_v2 = vld [vmem:[#allocation1 + $0x1] sm:$0x1]   ;;  %v6_v3 = vld [vmem:[#allocation1] sm:$0x1]  }
   0xa   :  { %11 = vrot.lane.b32.xlu0 %v10_v1, %s36_s0  ;;  %23 = vrot.lane.b32.xlu1 %v22_v2, %s37_s8  ;;  %v16_v4 = vld [vmem:[#allocation1 + $0x2] sm:$0x1]   ;;  %8 = vst.msk [vmem:[#allocation0] sm:$0x1] %vm7_vm0, %v6_v3  }
   0xe   :  { %17 = vrot.lane.b32.xlu0 %v16_v4, %s38_s9 }
  0x7c   :  { %v12_v5 = vpop.permute.xlu0 %11   ;;  %v24_v6 = vpop.permute.xlu1 %23  }
  0x7d   :  { %14 = vst.msk [vmem:[#allocation0] sm:$0x1] %vm13_vm1, %v12_v5  }
  0x80   :  { %v18_v7 = vpop.permute.xlu0 %17  }
  0x81   :  { %20 = vst.msk [vmem:[#allocation0] sm:$0x1] %vm19_vm2, %v18_v7  }
  0x82   :  { %26 = vst.msk [vmem:[#allocation0] sm:$0x1] %vm25_vm3, %v24_v6  }
  0x89   :  { %v30_v8 = vld [vmem:[#allocation0] sm:$0x1] }
  0x8a   :  { %32 = vst [vmem:[%s56_s1] sm:$0x1] %v30_v8 }

// kernel: generator_forward.13
= control target key start
LH: loop header
LB: loop body
LE: loop exit
PB: predicated region body
PF: predicated region fallthrough
CT: control target
= control target key end

     0   :  { %v1362_v0 = vmov 0   ;;  %s1828_s1 = inlined_call_operand.vmem [shape: bf16[384,128], index: 1, kind: input, shape index: {}]   ;;  %s1829_s0 = inlined_call_operand.vmem [shape: bf16[288,384], index: 0, kind: input, shape index: {}]   ;;  %s1830_s2 = inlined_call_operand.vmem [shape: f32[1,128], index: 2, kind: input, shape index: {}]   ;;  %s1831_s3 = inlined_call_operand.vmem [shape: f32[288,128], index: 3, kind: output, shape index: {}]  }
   0x1   :  { %574 = vmatprep.subr.bf16.mxu0 %v1362_v0  ;;  %1161 = vmatprep.subr.bf16.mxu1 %v1362_v0  ;;  %v1194_v1 = vld [vmem:[%s1828_s1] sm:$0xff]   ;;  %v1195_v2 = vld [vmem:[%s1828_s1 + $0x8] sm:$0xff]   ;;  %v1196_v3 = vld [vmem:[%s1828_s1 + $0x10] sm:$0xff]  }
   0x2   :  { %575 = vmatpush1.bf16.msra.mxu0 %v1194_v1  ;;  %1177 = vmatpush1.bf16.msra.mxu1 %v1194_v1  ;;  %v1197_v4 = vld [vmem:[%s1828_s1 + $0x18] sm:$0xff]   ;;  %v1198_v5 = vld [vmem:[%s1828_s1 + $0x20] sm:$0xff]   ;;  %v1199_v7 = vld [vmem:[%s1828_s1 + $0x28] sm:$0xff]  }
   0x3   :  { %576 = vmatprep.subr.bf16.mxu0 %v1362_v0  ;;  %1162 = vmatprep.subr.bf16.mxu1 %v1362_v0  ;;  %v1212_v6 = vld [vmem:[%s1829_s0 + $0x4] ss:$12 sps:$4 sm:$0xff]   ;;  %v1215_v8 = vld [vmem:[%s1829_s0 + $0x154] ss:$12 sps:$4 sm:$0xff]   ;;  %v1201_v10 = vld [vmem:[%s1828_s1 + $0x38] sm:$0xff]  }
   0x4   :  { %606 = vmatprep.mubr.bf16.mxu0 %v1212_v6  ;;  %718 = vmatprep.mubr.bf16.mxu1 %v1215_v8  ;;  %v1200_v9 = vld [vmem:[%s1828_s1 + $0x30] sm:$0xff]   ;;  %v1202_v11 = vld [vmem:[%s1828_s1 + $0x40] sm:$0xff]   ;;  %v1203_v12 = vld [vmem:[%s1828_s1 + $0x48] sm:$0xff]  }
   0x5   :  { %v1204_v13 = vld [vmem:[%s1828_s1 + $0x50] sm:$0xff]   ;;  %v1205_v14 = vld [vmem:[%s1828_s1 + $0x58] sm:$0xff]   ;;  %v1206_v15 = vld [vmem:[%s1828_s1 + $0x60] sm:$0xff]  }
   0x6   :  { %577 = vmatpush1.bf16.msra.mxu0 %v1195_v2  ;;  %1178 = vmatpush1.bf16.msra.mxu1 %v1195_v2  ;;  %v1207_v16 = vld [vmem:[%s1828_s1 + $0x68] sm:$0xff]   ;;  %v1208_v17 = vld [vmem:[%s1828_s1 + $0x70] sm:$0xff]   ;;  %v1209_v18 = vld [vmem:[%s1828_s1 + $0x78] sm:$0xff]  }
   0x7   :  { %578 = vmatprep.subr.bf16.mxu0 %v1362_v0  ;;  %1163 = vmatprep.subr.bf16.mxu1 %v1362_v0  ;;  %v1216_v19 = vld [vmem:[%s1828_s1 + $0x80] sm:$0xff]   ;;  %v1213_v21 = vld [vmem:[%s1829_s0 + $0x150] ss:$12 sps:$4 sm:$0xff]   ;;  %v1217_v23 = vld [vmem:[%s1828_s1 + $0x88] sm:$0xff]  }
   0x8   :  { %v1210_v20 = vld [vmem:[%s1829_s0] ss:$12 sps:$4 sm:$0xff]   ;;  %v1218_v22 = vld [vmem:[%s1829_s0 + $0x1c] ss:$12 sps:$4 sm:$0xff]   ;;  %v1224_v25 = vld [vmem:[%s1828_s1 + $0x90] sm:$0xff]  }
   0x9   :  { %v1220_v24 = vld [vmem:[%s1829_s0 + $0x16c] ss:$12 sps:$4 sm:$0xff]   ;;  %v1223_v27 = vld [vmem:[%s1829_s0 + $0x168] ss:$12 sps:$4 sm:$0xff]   ;;  %v1228_v30 = vld [vmem:[%s1829_s0 + $0x184] ss:$12 sps:$4 sm:$0xff]  }
   0xa   :  { %579 = vmatpush1.bf16.msra.mxu0 %v1196_v3  ;;  %1179 = vmatpush1.bf16.msra.mxu1 %v1196_v3  ;;  %v1222_v26 = vld [vmem:[%s1829_s0 + $0x18] ss:$12 sps:$4 sm:$0xff]   ;;  %v1226_v28 = vld [vmem:[%s1829_s0 + $0x34] ss:$12 sps:$4 sm:$0xff]   ;;  %v1230_v32 = vld [vmem:[%s1829_s0 + $0x30] ss:$12 sps:$4 sm:$0xff]  }
   0xb   :  { %580 = vmatprep.subr.bf16.mxu0 %v1362_v0  ;;  %1164 = vmatprep.subr.bf16.mxu1 %v1362_v0  ;;  %v1225_v29 = vld [vmem:[%s1828_s1 + $0x98] sm:$0xff]   ;;  %v1232_v31 = vld [vmem:[%s1828_s1 + $0xa0] sm:$0xff]   ;;  %v1233_v35 = vld [vmem:[%s1828_s1 + $0xa8] sm:$0xff]  }
   0xc   :  { %v1231_v33 = vld [vmem:[%s1829_s0 + $0x180] ss:$12 sps:$4 sm:$0xff]   ;;  %v1236_v36 = vld [vmem:[%s1829_s0 + $0x19c] ss:$12 sps:$4 sm:$0xff]   ;;  %v1240_v37 = vld [vmem:[%s1828_s1 + $0xb0] sm:$0xff]  }
   0xd   :  { %v1234_v34 = vld [vmem:[%s1829_s0 + $0x4c] ss:$12 sps:$4 sm:$0xff]   ;;  %v1238_v38 = vld [vmem:[%s1829_s0 + $0x48] ss:$12 sps:$4 sm:$0xff]   ;;  %v1242_v40 = vld [vmem:[%s1829_s0 + $0x64] ss:$12 sps:$4 sm:$0xff]  }
   0xe   :  { %581 = vmatpush1.bf16.msra.mxu0 %v1197_v4  ;;  %1180 = vmatpush1.bf16.msra.mxu1 %v1197_v4  ;;  %v1239_v39 = vld [vmem:[%s1829_s0 + $0x198] ss:$12 sps:$4 sm:$0xff]   ;;  %v1244_v42 = vld [vmem:[%s1829_s0 + $0x8] ss:$12 sps:$4 sm:$0xff]   ;;  %v1245_v43 = vld [vmem:[%s1829_s0 + $0x60] ss:$12 sps:$4 sm:$0xff]  }
   0xf   :  { %582 = vmatprep.subr.bf16.mxu0 %v1362_v0  ;;  %1165 = vmatprep.subr.bf16.mxu1 %v1362_v0  ;;  %v1241_v41 = vld [vmem:[%s1828_s1 + $0xb8] sm:$0xff]   ;;  %v1246_v44 = vld [vmem:[%s1829_s0 + $0x20] ss:$12 sps:$4 sm:$0xff]   ;;  %v1254_v50 = vld [vmem:[%s1829_s0 + $0x68] ss:$12 sps:$4 sm:$0xff]  }
  0x10   :  { %v1247_v45 = vld [vmem:[%s1829_s0 + $0x7c] ss:$12 sps:$4 sm:$0xff]   ;;  %v1249_v46 = vld [vmem:[%s1829_s0 + $0x38] ss:$12 sps:$4 sm:$0xff]   ;;  %v1252_v49 = vld [vmem:[%s1829_s0 + $0x94] ss:$12 sps:$4 sm:$0xff]  }
  0x11   :  { %v1250_v47 = vld [vmem:[%s1829_s0 + $0x78] ss:$12 sps:$4 sm:$0xff]   ;;  %v1251_v48 = vld [vmem:[%s1829_s0 + $0x50] ss:$12 sps:$4 sm:$0xff]   ;;  %v1256_v52 = vld [vmem:[%s1829_s0 + $0x80] ss:$12 sps:$4 sm:$0xff]  }
  0x12   :  { %583 = vmatpush1.bf16.msra.mxu0 %v1198_v5  ;;  %1181 = vmatpush1.bf16.msra.mxu1 %v1198_v5  ;;  %v1255_v51 = vld [vmem:[%s1829_s0 + $0x90] ss:$12 sps:$4 sm:$0xff]   ;;  %v1257_v53 = vld [vmem:[%s1829_s0 + $0xac] ss:$12 sps:$4 sm:$0xff]   ;;  %v1260_v55 = vld [vmem:[%s1829_s0 + $0xa8] ss:$12 sps:$4 sm:$0xff]  }
  0x13   :  { %584 = vmatprep.subr.bf16.mxu0 %v1362_v0  ;;  %1166 = vmatprep.subr.bf16.mxu1 %v1362_v0  ;;  %v1259_v54 = vld [vmem:[%s1829_s0 + $0x98] ss:$12 sps:$4 sm:$0xff]   ;;  %v1261_v56 = vld [vmem:[%s1829_s0 + $0xb0] ss:$12 sps:$4 sm:$0xff]   ;;  %v1264_v58 = vld [vmem:[%s1829_s0 + $0xc8] ss:$12 sps:$4 sm:$0xff]  }
  0x14   :  { %v1262_v57 = vld [vmem:[%s1829_s0 + $0xc4] ss:$12 sps:$4 sm:$0xff]   ;;  %v1265_v59 = vld [vmem:[%s1829_s0 + $0xc0] ss:$12 sps:$4 sm:$0xff]   ;;  %v1267_v61 = vld [vmem:[%s1829_s0 + $0xdc] ss:$12 sps:$4 sm:$0xff]  }
  0x15   :  { %v1266_v60 = vld [vmem:[%s1829_s0 + $0xe0] ss:$12 sps:$4 sm:$0xff]   ;;  %v1269_v62 = vld [vmem:[%s1829_s0 + $0xf8] ss:$12 sps:$4 sm:$0xff]   ;;  %v1274_v2 = vld [vmem:[%s1829_s0 + $0x128] ss:$12 sps:$4 sm:$0xff]  }
  0x16   :  { %585 = vmatpush1.bf16.msra.mxu0 %v1199_v7  ;;  %1182 = vmatpush1.bf16.msra.mxu1 %v1199_v7  ;;  %v1270_v63 = vld [vmem:[%s1829_s0 + $0xd8] ss:$12 sps:$4 sm:$0xff]   ;;  %v1272_v1 = vld [vmem:[%s1829_s0 + $0xf4] ss:$12 sps:$4 sm:$0xff]   ;;  %v1275_v3 = vld [vmem:[%s1829_s0 + $0xf0] ss:$12 sps:$4 sm:$0xff]  }
  0x17   :  { %586 = vmatprep.subr.bf16.mxu0 %v1362_v0  ;;  %1167 = vmatprep.subr.bf16.mxu1 %v1362_v0  ;;  %v1276_v4 = vld [vmem:[%s1829_s0 + $0x140] ss:$12 sps:$4 sm:$0xff]   ;;  %v1279_v6 = vld [vmem:[%s1829_s0 + $0x158] ss:$12 sps:$4 sm:$0xff]   ;;  %v1280_v7 = vld [vmem:[%s1829_s0 + $0x108] ss:$12 sps:$4 sm:$0xff]  }
  0x18   :  { %v1277_v5 = vld [vmem:[%s1829_s0 + $0x10c] ss:$12 sps:$4 sm:$0xff]   ;;  %v1281_v8 = vld [vmem:[%s1829_s0 + $0x170] ss:$12 sps:$4 sm:$0xff]  }
  0x1a   :  { %587 = vmatpush1.bf16.msra.mxu0 %v1200_v9  ;;  %1183 = vmatpush1.bf16.msra.mxu1 %v1200_v9  ;;  %v1282_v9 = vld [vmem:[%s1829_s0 + $0x124] ss:$12 sps:$4 sm:$0xff]  }
  0x1b   :  { %588 = vmatprep.subr.bf16.mxu0 %v1362_v0  ;;  %1168 = vmatprep.subr.bf16.mxu1 %v1362_v0 }
  0x1e   :  { %589 = vmatpush1.bf16.msra.mxu0 %v1201_v10  ;;  %1184 = vmatpush1.bf16.msra.mxu1 %v1201_v10  ;;  %v1284_v10 = vld [vmem:[%s1829_s0 + $0x188] ss:$12 sps:$4 sm:$0xff]  }
  0x1f   :  { %590 = vmatprep.subr.bf16.mxu0 %v1362_v0  ;;  %1169 = vmatprep.subr.bf16.mxu1 %v1362_v0 }
  0x22   :  { %591 = vmatpush1.bf16.msra.mxu0 %v1202_v11  ;;  %1185 = vmatpush1.bf16.msra.mxu1 %v1202_v11  ;;  %v1285_v11 = vld [vmem:[%s1829_s0 + $0x120] ss:$12 sps:$4 sm:$0xff]  }
  0x23   :  { %592 = vmatprep.subr.bf16.mxu0 %v1362_v0  ;;  %1170 = vmatprep.subr.bf16.mxu1 %v1362_v0 }
  0x26   :  { %593 = vmatpush1.bf16.msra.mxu0 %v1203_v12  ;;  %1186 = vmatpush1.bf16.msra.mxu1 %v1203_v12  ;;  %v1286_v12 = vld [vmem:[%s1829_s0 + $0x1a0] ss:$12 sps:$4 sm:$0xff]  }
  0x27   :  { %594 = vmatprep.subr.bf16.mxu0 %v1362_v0  ;;  %1171 = vmatprep.subr.bf16.mxu1 %v1362_v0 }
  0x2a   :  { %595 = vmatpush1.bf16.msra.mxu0 %v1204_v13  ;;  %1187 = vmatpush1.bf16.msra.mxu1 %v1204_v13  ;;  %v1287_v13 = vld [vmem:[%s1829_s0 + $0x13c] ss:$12 sps:$4 sm:$0xff]  }
  0x2b   :  { %596 = vmatprep.subr.bf16.mxu0 %v1362_v0  ;;  %1172 = vmatprep.subr.bf16.mxu1 %v1362_v0 }
  0x2e   :  { %597 = vmatpush1.bf16.msra.mxu0 %v1205_v14  ;;  %1188 = vmatpush1.bf16.msra.mxu1 %v1205_v14  ;;  %v1289_v14 = vld [vmem:[%s1829_s0 + $0x138] ss:$12 sps:$4 sm:$0xff]  }
  0x2f   :  { %598 = vmatprep.subr.bf16.mxu0 %v1362_v0  ;;  %1173 = vmatprep.subr.bf16.mxu1 %v1362_v0 }
  0x32   :  { %599 = vmatpush1.bf16.msra.mxu0 %v1206_v15  ;;  %1189 = vmatpush1.bf16.msra.mxu1 %v1206_v15 }
  0x33   :  { %600 = vmatprep.subr.bf16.mxu0 %v1362_v0  ;;  %1174 = vmatprep.subr.bf16.mxu1 %v1362_v0 }
  0x36   :  { %601 = vmatpush1.bf16.msra.mxu0 %v1207_v16  ;;  %1190 = vmatpush1.bf16.msra.mxu1 %v1207_v16 }
  0x37   :  { %602 = vmatprep.subr.bf16.mxu0 %v1362_v0  ;;  %1175 = vmatprep.subr.bf16.mxu1 %v1362_v0 }
  0x3a   :  { %603 = vmatpush1.bf16.msra.mxu0 %v1208_v17  ;;  %1191 = vmatpush1.bf16.msra.mxu1 %v1208_v17 }
  0x3b   :  { %604 = vmatprep.subr.bf16.mxu0 %v1362_v0  ;;  %1176 = vmatprep.subr.bf16.mxu1 %v1362_v0  ;;  %v1271_v0 = vld [vmem:[%s1829_s0 + $0x110] ss:$12 sps:$4 sm:$0xff]  }
  0x3e   :  { %605 = vmatpush1.bf16.msra.mxu0 %v1209_v18  ;;  %1192 = vmatpush1.bf16.msra.mxu1 %v1209_v18 }
  0x3f   :  { %1109 = vmatprep.subr.bf16.mxu1 %v1216_v19 }
  0x41   :  { %607 = vmatmul.mubr.bf16.vlgmr.msra.gmra.mrb[0].mxu0 %v1210_v20  ;;  %719 = vmatmul.mubr.bf16.vlgmr.msra.gmra.mrb[0].mxu1 %v1213_v21 }
  0x42   :  { %1110 = vmatpush3.bf16.msra.mxu1 %v1216_v19  ;;  %614 = vmatprep.mubr.bf16.mxu0 %v1218_v22 }
  0x43   :  { %1111 = vmatprep.subr.bf16.mxu1 %v1217_v23  ;;  %726 = vmatprep.mubr.bf16.mxu1 %v1220_v24 }
  0x46   :  { %1112 = vmatpush3.bf16.msra.mxu1 %v1217_v23 }
  0x47   :  { %1113 = vmatprep.subr.bf16.mxu1 %v1224_v25 }
  0x49   :  { %615 = vmatmul.mubr.bf16.gmra.mrb[4].mxu0 %v1222_v26  ;;  %727 = vmatmul.mubr.bf16.gmra.mrb[4].mxu1 %v1223_v27 }
  0x4a   :  { %1114 = vmatpush3.bf16.msra.mxu1 %v1224_v25  ;;  %622 = vmatprep.mubr.bf16.mxu0 %v1226_v28 }
  0x4b   :  { %1115 = vmatprep.subr.bf16.mxu1 %v1225_v29  ;;  %734 = vmatprep.mubr.bf16.mxu1 %v1228_v30 }
  0x4e   :  { %1116 = vmatpush3.bf16.msra.mxu1 %v1225_v29 }
  0x4f   :  { %1117 = vmatprep.subr.bf16.mxu1 %v1232_v31 }
  0x51   :  { %623 = vmatmul.mubr.bf16.gmra.mrb[8].mxu0 %v1230_v32  ;;  %735 = vmatmul.mubr.bf16.gmra.mrb[8].mxu1 %v1231_v33 }
  0x52   :  { %1118 = vmatpush3.bf16.msra.mxu1 %v1232_v31  ;;  %630 = vmatprep.mubr.bf16.mxu0 %v1234_v34 }
  0x53   :  { %1119 = vmatprep.subr.bf16.mxu1 %v1233_v35  ;;  %742 = vmatprep.mubr.bf16.mxu1 %v1236_v36 }
  0x56   :  { %1120 = vmatpush3.bf16.msra.mxu1 %v1233_v35 }
  0x57   :  { %1121 = vmatprep.subr.bf16.mxu1 %v1240_v37 }
  0x59   :  { %631 = vmatmul.mubr.bf16.gmra.mrb[12].mxu0 %v1238_v38  ;;  %743 = vmatmul.mubr.bf16.gmra.mrb[12].mxu1 %v1239_v39 }
  0x5a   :  { %1122 = vmatpush3.bf16.msra.mxu1 %v1240_v37  ;;  %638 = vmatprep.mubr.bf16.mxu0 %v1242_v40 }
  0x5b   :  { %1123 = vmatprep.subr.bf16.mxu1 %v1241_v41  ;;  %1125 = vmatprep.mubr.bf16.mxu1 %v1244_v42 }
  0x5e   :  { %1124 = vmatpush3.bf16.msra.mxu1 %v1241_v41 }
  0x61   :  { %639 = vmatmul.mubr.bf16.gmra.mrb[16].mxu0 %v1245_v43  ;;  %1126 = vmatmul.mubr.bf16.vlgmr.msra.gmra.mrb[16].mxu1 %v1246_v44 }
  0x62   :  { %646 = vmatprep.mubr.bf16.mxu0 %v1247_v45  ;;  %1129 = vmatprep.mubr.bf16.mxu1 %v1249_v46 }
  0x69   :  { %647 = vmatmul.mubr.bf16.gmra.mrb[20].mxu0 %v1250_v47  ;;  %1130 = vmatmul.mubr.bf16.gmra.mrb[20].mxu1 %v1251_v48  ;;  %v1668_v47 = vld [vmem:[%s1830_s2] ss:$0 sm:$0xff] }
  0x6a   :  { %654 = vmatprep.mubr.bf16.mxu0 %v1252_v49  ;;  %1133 = vmatprep.mubr.bf16.mxu1 %v1254_v50 }
  0x71   :  { %655 = vmatmul.mubr.bf16.gmra.mrb[24].mxu0 %v1255_v51  ;;  %1134 = vmatmul.mubr.bf16.gmra.mrb[24].mxu1 %v1256_v52 }
  0x72   :  { %662 = vmatprep.mubr.bf16.mxu0 %v1257_v53  ;;  %1137 = vmatprep.mubr.bf16.mxu1 %v1259_v54 }
  0x79   :  { %663 = vmatmul.mubr.bf16.gmra.mrb[28].mxu0 %v1260_v55  ;;  %1138 = vmatmul.mubr.bf16.gmra.mrb[28].mxu1 %v1261_v56 }
  0x7a   :  { %670 = vmatprep.mubr.bf16.mxu0 %v1262_v57  ;;  %1141 = vmatprep.mubr.bf16.mxu1 %v1264_v58 }
  0x81   :  { %671 = vmatmul.mubr.bf16.gmra.mrb[32].mxu0 %v1265_v59  ;;  %1142 = vmatmul.mubr.bf16.gmra.mrb[32].mxu1 %v1266_v60 }
  0x82   :  { %678 = vmatprep.mubr.bf16.mxu0 %v1267_v61  ;;  %1145 = vmatprep.mubr.bf16.mxu1 %v1269_v62 }
  0x89   :  { %679 = vmatmul.mubr.bf16.gmra.mrb[36].mxu0 %v1270_v63  ;;  %1146 = vmatmul.mubr.bf16.gmra.mrb[36].mxu1 %v1271_v0 }
  0x8a   :  { %686 = vmatprep.mubr.bf16.mxu0 %v1272_v1  ;;  %1149 = vmatprep.mubr.bf16.mxu1 %v1274_v2 }
  0x91   :  { %687 = vmatmul.mubr.bf16.gmra.mrb[40].mxu0 %v1275_v3  ;;  %1150 = vmatmul.mubr.bf16.gmra.mrb[40].mxu1 %v1276_v4 }
  0x92   :  { %694 = vmatprep.mubr.bf16.mxu0 %v1277_v5  ;;  %1153 = vmatprep.mubr.bf16.mxu1 %v1279_v6 }
  0x99   :  { %695 = vmatmul.mubr.bf16.gmra.mrb[44].mxu0 %v1280_v7  ;;  %1154 = vmatmul.mubr.bf16.gmra.mrb[44].mxu1 %v1281_v8 }
  0x9a   :  { %702 = vmatprep.mubr.bf16.mxu0 %v1282_v9  ;;  %1157 = vmatprep.mubr.bf16.mxu1 %v1284_v10 }
  0xa1   :  { %703 = vmatmul.mubr.bf16.gmra.mrb[48].mxu0 %v1285_v11  ;;  %1158 = vmatmul.mubr.bf16.gmra.mrb[48].mxu1 %v1286_v12 }
  0xa2   :  { %710 = vmatprep.mubr.bf16.mxu0 %v1287_v13 }
  0xa9   :  { %711 = vmatmul.mubr.bf16.gmra.mrb[52].mxu0 %v1289_v14 }
 0x114   :  { %v608_v15 = vpop.f32.mrb[0].mxu0  ;;  %v1649_v16 = vpop.f32.mrb[0].mxu1 }
 0x115   :  { %v610_v17 = vpop.f32.mrb[1].mxu0  ;;  %v722_v18 = vpop.f32.mrb[1].mxu1  ;;  %v609_v49 = vadd.f32 %v1668_v47, %v608_v15 }
 0x116   :  { %v611_v19 = vpop.f32.mrb[2].mxu0  ;;  %v1651_v20 = vpop.f32.mrb[2].mxu1 }
 0x117   :  { %v613_v21 = vpop.f32.mrb[3].mxu0  ;;  %v725_v22 = vpop.f32.mrb[3].mxu1  ;;  %v612_v56 = vadd.f32 %v1668_v47, %v611_v19 }
 0x11c   :  { %v616_v23 = vpop.f32.mrb[4].mxu0  ;;  %v1653_v24 = vpop.f32.mrb[4].mxu1 }
 0x11d   :  { %v618_v25 = vpop.f32.mrb[5].mxu0  ;;  %v730_v26 = vpop.f32.mrb[5].mxu1  ;;  %v617_v48 = vadd.f32 %v1668_v47, %v616_v23 }
 0x11e   :  { %v619_v27 = vpop.f32.mrb[6].mxu0  ;;  %v1655_v28 = vpop.f32.mrb[6].mxu1 }
 0x11f   :  { %v621_v29 = vpop.f32.mrb[7].mxu0  ;;  %v733_v30 = vpop.f32.mrb[7].mxu1  ;;  %v620_v52 = vadd.f32 %v1668_v47, %v619_v27 }
 0x124   :  { %v624_v31 = vpop.f32.mrb[8].mxu0  ;;  %v1657_v32 = vpop.f32.mrb[8].mxu1 }
 0x125   :  { %v626_v33 = vpop.f32.mrb[9].mxu0  ;;  %v738_v34 = vpop.f32.mrb[9].mxu1  ;;  %v625_v1 = vadd.f32 %v1668_v47, %v624_v31 }
 0x126   :  { %v627_v35 = vpop.f32.mrb[10].mxu0  ;;  %v1659_v36 = vpop.f32.mrb[10].mxu1 }
 0x127   :  { %v629_v37 = vpop.f32.mrb[11].mxu0  ;;  %v741_v38 = vpop.f32.mrb[11].mxu1  ;;  %v628_v8 = vadd.f32 %v1668_v47, %v627_v35 }
 0x12c   :  { %v632_v39 = vpop.f32.mrb[12].mxu0  ;;  %v1661_v40 = vpop.f32.mrb[12].mxu1 }
 0x12d   :  { %v634_v41 = vpop.f32.mrb[13].mxu0  ;;  %v746_v42 = vpop.f32.mrb[13].mxu1  ;;  %v633_v0 = vadd.f32 %v1668_v47, %v632_v39 }
 0x12e   :  { %v635_v43 = vpop.f32.mrb[14].mxu0  ;;  %v1663_v44 = vpop.f32.mrb[14].mxu1 }
 0x12f   :  { %v637_v45 = vpop.f32.mrb[15].mxu0  ;;  %v749_v46 = vpop.f32.mrb[15].mxu1  ;;  %v636_v4 = vadd.f32 %v1668_v47, %v635_v43 }
 0x134   :  { %v640_v50 = vpop.f32.mrb[16].mxu0  ;;  %v1127_v51 = vpop.f32.mrb[16].mxu1 }
 0x135   :  { %v794_v53 = vadd.f32 %v1127_v51, %v617_v48  ;;  %v642_v54 = vpop.f32.mrb[17].mxu0  ;;  %v785_v55 = vpop.f32.mrb[17].mxu1  ;;  %v641_v23 = vadd.f32 %v1668_v47, %v640_v50 }
 0x136   :  { %v786_v57 = vadd.f32 %v785_v55, %v609_v49  ;;  %v643_v58 = vpop.f32.mrb[18].mxu0  ;;  %v1128_v59 = vpop.f32.mrb[18].mxu1 }
 0x137   :  { %1290 = vtanh.f32 %v794_v53  ;;  %v797_v60 = vadd.f32 %v1128_v59, %v620_v52  ;;  %v645_v61 = vpop.f32.mrb[19].mxu0  ;;  %v788_v62 = vpop.f32.mrb[19].mxu1  ;;  %v644_v33 = vadd.f32 %v1668_v47, %v643_v58 }
 0x138   :  { %1292 = vtanh.f32 %v786_v57  ;;  %v789_v63 = vadd.f32 %v788_v62, %v612_v56 }
 0x139   :  { %1294 = vtanh.f32 %v797_v60 }
 0x13a   :  { %1296 = vtanh.f32 %v789_v63 }
 0x13c   :  { %v648_v2 = vpop.f32.mrb[20].mxu0  ;;  %v1131_v3 = vpop.f32.mrb[20].mxu1 }
 0x13d   :  { %v810_v5 = vadd.f32 %v1131_v3, %v633_v0  ;;  %v650_v6 = vpop.f32.mrb[21].mxu0  ;;  %v801_v7 = vpop.f32.mrb[21].mxu1  ;;  %v649_v21 = vadd.f32 %v1668_v47, %v648_v2 }
 0x13e   :  { %v802_v9 = vadd.f32 %v801_v7, %v625_v1  ;;  %v651_v10 = vpop.f32.mrb[22].mxu0  ;;  %v1132_v11 = vpop.f32.mrb[22].mxu1 }
 0x13f   :  { %1298 = vtanh.f32 %v810_v5  ;;  %v813_v12 = vadd.f32 %v1132_v11, %v636_v4  ;;  %v653_v13 = vpop.f32.mrb[23].mxu0  ;;  %v804_v14 = vpop.f32.mrb[23].mxu1  ;;  %v652_v27 = vadd.f32 %v1668_v47, %v651_v10 }
 0x140   :  { %1300 = vtanh.f32 %v802_v9  ;;  %v805_v15 = vadd.f32 %v804_v14, %v628_v8 }
 0x141   :  { %v1291_v17 = vpop.eup %1290  ;;  %1302 = vtanh.f32 %v813_v12 }
 0x142   :  { %v1293_v18 = vpop.eup %1292  ;;  %966 = vst [vmem:[%s1831_s3 + $0x10] sm:$0xff] %v1291_v17  ;;  %1304 = vtanh.f32 %v805_v15 }
 0x143   :  { %v1295_v19 = vpop.eup %1294  ;;  %964 = vst [vmem:[%s1831_s3] sm:$0xff] %v1293_v18 }
 0x144   :  { %v1297_v22 = vpop.eup %1296  ;;  %967 = vst [vmem:[%s1831_s3 + $0x18] sm:$0xff] %v1295_v19  ;;  %v656_v25 = vpop.f32.mrb[24].mxu0 }
 0x145   :  { %v1135_v26 = vpop.f32.mrb[24].mxu1  ;;  %965 = vst [vmem:[%s1831_s3 + $0x8] sm:$0xff] %v1297_v22  ;;  %v658_v30 = vpop.f32.mrb[25].mxu0  ;;  %v657_v49 = vadd.f32 %v1668_v47, %v656_v25 }
 0x146   :  { %v826_v29 = vadd.f32 %v1135_v26, %v649_v21  ;;  %v817_v31 = vpop.f32.mrb[25].mxu1  ;;  %v659_v35 = vpop.f32.mrb[26].mxu0 }
 0x147   :  { %v818_v34 = vadd.f32 %v817_v31, %v641_v23  ;;  %v1136_v37 = vpop.f32.mrb[26].mxu1  ;;  %v661_v39 = vpop.f32.mrb[27].mxu0  ;;  %v660_v55 = vadd.f32 %v1668_v47, %v659_v35 }
 0x148   :  { %1306 = vtanh.f32 %v826_v29  ;;  %v829_v38 = vadd.f32 %v1136_v37, %v652_v27  ;;  %v820_v41 = vpop.f32.mrb[27].mxu1 }
 0x149   :  { %1308 = vtanh.f32 %v818_v34  ;;  %v821_v42 = vadd.f32 %v820_v41, %v644_v33  ;;  %v1299_v43 = vpop.eup %1298 }
 0x14a   :  { %1310 = vtanh.f32 %v829_v38  ;;  %v1301_v45 = vpop.eup %1300  ;;  %970 = vst [vmem:[%s1831_s3 + $0x30] sm:$0xff] %v1299_v43 }
 0x14b   :  { %1312 = vtanh.f32 %v821_v42  ;;  %v1303_v46 = vpop.eup %1302  ;;  %968 = vst [vmem:[%s1831_s3 + $0x20] sm:$0xff] %v1301_v45 }
 0x14c   :  { %v1305_v48 = vpop.eup %1304  ;;  %971 = vst [vmem:[%s1831_s3 + $0x38] sm:$0xff] %v1303_v46  ;;  %v664_v50 = vpop.f32.mrb[28].mxu0 }
 0x14d   :  { %v1139_v51 = vpop.f32.mrb[28].mxu1  ;;  %969 = vst [vmem:[%s1831_s3 + $0x28] sm:$0xff] %v1305_v48  ;;  %v665_v52 = vadd.f32 %v1668_v47, %v664_v50  ;;  %v666_v53 = vpop.f32.mrb[29].mxu0 }
 0x14e   :  { %v833_v54 = vpop.f32.mrb[29].mxu1  ;;  %v667_v57 = vpop.f32.mrb[30].mxu0 }
 0x14f   :  { %v834_v56 = vadd.f32 %v833_v54, %v657_v49  ;;  %v1140_v58 = vpop.f32.mrb[30].mxu1  ;;  %v842_v59 = vadd.f32 %v1139_v51, %v665_v52  ;;  %v668_v60 = vadd.f32 %v1668_v47, %v667_v57  ;;  %v669_v61 = vpop.f32.mrb[31].mxu0  ;;  %v729_v57 = vadd.f32 %v1668_v47, %v1653_v24 }
 0x150   :  { %v836_v62 = vpop.f32.mrb[31].mxu1  ;;  %v724_v24 = vadd.f32 %v1668_v47, %v1651_v20 }
 0x151   :  { %1314 = vtanh.f32 %v834_v56  ;;  %v837_v63 = vadd.f32 %v836_v62, %v660_v55  ;;  %v845_v1 = vadd.f32 %v1140_v58, %v668_v60  ;;  %v721_v58 = vadd.f32 %v1668_v47, %v1649_v16 }
 0x152   :  { %v1307_v0 = vpop.eup %1306  ;;  %1316 = vtanh.f32 %v842_v59  ;;  %v732_v62 = vadd.f32 %v1668_v47, %v1655_v28 }
 0x153   :  { %v1309_v2 = vpop.eup %1308  ;;  %974 = vst [vmem:[%s1831_s3 + $0x50] sm:$0xff] %v1307_v0  ;;  %1318 = vtanh.f32 %v837_v63 }
 0x154   :  { %v1311_v3 = vpop.eup %1310  ;;  %972 = vst [vmem:[%s1831_s3 + $0x40] sm:$0xff] %v1309_v2  ;;  %1320 = vtanh.f32 %v845_v1  ;;  %v672_v5 = vpop.f32.mrb[32].mxu0 }
 0x155   :  { %v1313_v4 = vpop.eup %1312  ;;  %975 = vst [vmem:[%s1831_s3 + $0x58] sm:$0xff] %v1311_v3  ;;  %v1143_v6 = vpop.f32.mrb[32].mxu1  ;;  %v673_v7 = vadd.f32 %v1668_v47, %v672_v5 }
 0x156   :  { %973 = vst [vmem:[%s1831_s3 + $0x48] sm:$0xff] %v1313_v4  ;;  %v674_v8 = vpop.f32.mrb[33].mxu0  ;;  %v849_v9 = vpop.f32.mrb[33].mxu1 }
 0x157   :  { %v675_v10 = vpop.f32.mrb[34].mxu0  ;;  %v1144_v11 = vpop.f32.mrb[34].mxu1  ;;  %v850_v13 = vadd.f32 %v849_v9, %v673_v7 }
 0x158   :  { %v676_v12 = vadd.f32 %v1668_v47, %v675_v10  ;;  %v677_v14 = vpop.f32.mrb[35].mxu0  ;;  %v852_v15 = vpop.f32.mrb[35].mxu1 }
 0x159   :  { %1322 = vtanh.f32 %v850_v13 }
 0x15a   :  { %v853_v17 = vadd.f32 %v852_v15, %v676_v12  ;;  %v737_v12 = vadd.f32 %v1668_v47, %v1657_v32 }
 0x15b   :  { %v1315_v18 = vpop.eup %1314 }
 0x15c   :  { %v1317_v19 = vpop.eup %1316  ;;  %976 = vst [vmem:[%s1831_s3 + $0x60] sm:$0xff] %v1315_v18  ;;  %1324 = vtanh.f32 %v853_v17  ;;  %v680_v22 = vpop.f32.mrb[36].mxu0  ;;  %v748_v17 = vadd.f32 %v1668_v47, %v1663_v44 }
 0x15d   :  { %v1319_v21 = vpop.eup %1318  ;;  %978 = vst [vmem:[%s1831_s3 + $0x70] sm:$0xff] %v1317_v19  ;;  %v1147_v23 = vpop.f32.mrb[36].mxu1  ;;  %v681_v26 = vadd.f32 %v1668_v47, %v680_v22  ;;  %v740_v22 = vadd.f32 %v1668_v47, %v1659_v36 }
 0x15e   :  { %v1321_v25 = vpop.eup %1320  ;;  %977 = vst [vmem:[%s1831_s3 + $0x68] sm:$0xff] %v1319_v21  ;;  %v682_v27 = vpop.f32.mrb[37].mxu0 }
 0x15f   :  { %v865_v29 = vpop.f32.mrb[37].mxu1  ;;  %979 = vst [vmem:[%s1831_s3 + $0x78] sm:$0xff] %v1321_v25  ;;  %v683_v30 = vpop.f32.mrb[38].mxu0  ;;  %v858_v33 = vadd.f32 %v1143_v6, %v681_v26 }
 0x160   :  { %v1148_v31 = vpop.f32.mrb[38].mxu1  ;;  %v684_v34 = vadd.f32 %v1668_v47, %v683_v30  ;;  %v685_v35 = vpop.f32.mrb[39].mxu0 }
 0x161   :  { %v868_v37 = vpop.f32.mrb[39].mxu1  ;;  %1326 = vtanh.f32 %v858_v33 }
 0x162   :  { %v861_v38 = vadd.f32 %v1144_v11, %v684_v34  ;;  %v745_v11 = vadd.f32 %v1668_v47, %v1661_v40 }
 0x163   :  { %v1323_v39 = vpop.eup %1322 }
 0x164   :  { %1328 = vtanh.f32 %v861_v38  ;;  %980 = vst [vmem:[%s1831_s3 + $0x80] sm:$0xff] %v1323_v39  ;;  %v688_v41 = vpop.f32.mrb[40].mxu0  ;;  %v1741_v42 = vpop.f32.mrb[40].mxu1 }
 0x165   :  { %v689_v45 = vadd.f32 %v1668_v47, %v688_v41  ;;  %v690_v46 = vpop.f32.mrb[41].mxu0  ;;  %v881_v48 = vpop.f32.mrb[41].mxu1 }
 0x166   :  { %v1325_v43 = vpop.eup %1324  ;;  %v691_v49 = vpop.f32.mrb[42].mxu0 }
 0x167   :  { %981 = vst [vmem:[%s1831_s3 + $0x88] sm:$0xff] %v1325_v43  ;;  %v1747_v50 = vpop.f32.mrb[42].mxu1  ;;  %v866_v51 = vadd.f32 %v865_v29, %v689_v45  ;;  %v692_v52 = vadd.f32 %v1668_v47, %v691_v49  ;;  %v693_v53 = vpop.f32.mrb[43].mxu0 }
 0x168   :  { %v884_v54 = vpop.f32.mrb[43].mxu1 }
 0x169   :  { %1330 = vtanh.f32 %v866_v51  ;;  %v869_v55 = vadd.f32 %v868_v37, %v692_v52 }
 0x16b   :  { %v1327_v56 = vpop.eup %1326  ;;  %1332 = vtanh.f32 %v869_v55 }
 0x16c   :  { %982 = vst [vmem:[%s1831_s3 + $0x90] sm:$0xff] %v1327_v56  ;;  %v696_v59 = vpop.f32.mrb[44].mxu0  ;;  %v1155_v60 = vpop.f32.mrb[44].mxu1 }
 0x16d   :  { %v697_v63 = vadd.f32 %v1668_v47, %v696_v59  ;;  %v906_v0 = vadd.f32 %v1155_v60, %v729_v57  ;;  %v698_v1 = vpop.f32.mrb[45].mxu0  ;;  %v897_v2 = vpop.f32.mrb[45].mxu1 }
 0x16e   :  { %v1329_v61 = vpop.eup %1328  ;;  %v898_v16 = vadd.f32 %v897_v2, %v721_v58  ;;  %v699_v3 = vpop.f32.mrb[46].mxu0 }
 0x16f   :  { %983 = vst [vmem:[%s1831_s3 + $0x98] sm:$0xff] %v1329_v61  ;;  %v1156_v4 = vpop.f32.mrb[46].mxu1  ;;  %v874_v5 = vadd.f32 %v1147_v23, %v697_v63  ;;  %1334 = vtanh.f32 %v906_v0  ;;  %v700_v6 = vadd.f32 %v1668_v47, %v699_v3  ;;  %v701_v7 = vpop.f32.mrb[47].mxu0 }
 0x170   :  { %v909_v28 = vadd.f32 %v1156_v4, %v732_v62  ;;  %v900_v8 = vpop.f32.mrb[47].mxu1  ;;  %1336 = vtanh.f32 %v898_v16 }
 0x171   :  { %v901_v9 = vadd.f32 %v900_v8, %v724_v24  ;;  %1338 = vtanh.f32 %v874_v5  ;;  %v877_v10 = vadd.f32 %v1148_v31, %v700_v6 }
 0x172   :  { %1340 = vtanh.f32 %v909_v28 }
 0x173   :  { %v1331_v20 = vpop.eup %1330  ;;  %1342 = vtanh.f32 %v877_v10 }
 0x174   :  { %984 = vst [vmem:[%s1831_s3 + $0xa0] sm:$0xff] %v1331_v20  ;;  %1344 = vtanh.f32 %v901_v9  ;;  %v704_v13 = vpop.f32.mrb[48].mxu0  ;;  %v1159_v14 = vpop.f32.mrb[48].mxu1 }
 0x175   :  { %v1333_v15 = vpop.eup %1332  ;;  %v705_v18 = vadd.f32 %v1668_v47, %v704_v13  ;;  %v922_v19 = vadd.f32 %v1159_v14, %v745_v11  ;;  %v706_v21 = vpop.f32.mrb[49].mxu0 }
 0x176   :  { %v913_v40 = vpop.f32.mrb[49].mxu1  ;;  %985 = vst [vmem:[%s1831_s3 + $0xa8] sm:$0xff] %v1333_v15  ;;  %v707_v23 = vpop.f32.mrb[50].mxu0 }
 0x177   :  { %v914_v32 = vadd.f32 %v913_v40, %v737_v12  ;;  %v1160_v25 = vpop.f32.mrb[50].mxu1  ;;  %v882_v26 = vadd.f32 %v881_v48, %v705_v18  ;;  %1346 = vtanh.f32 %v922_v19  ;;  %v708_v27 = vadd.f32 %v1668_v47, %v707_v23  ;;  %v709_v29 = vpop.f32.mrb[51].mxu0 }
 0x178   :  { %v925_v44 = vadd.f32 %v1160_v25, %v748_v17  ;;  %v916_v30 = vpop.f32.mrb[51].mxu1 }
 0x179   :  { %1348 = vtanh.f32 %v914_v32  ;;  %v917_v31 = vadd.f32 %v916_v30, %v740_v22  ;;  %v1335_v33 = vpop.eup %1334  ;;  %v885_v34 = vadd.f32 %v884_v54, %v708_v27 }
 0x17a   :  { %1350 = vtanh.f32 %v882_v26  ;;  %v1337_v36 = vpop.eup %1336  ;;  %994 = vst [vmem:[%s1831_s3 + $0xf0] sm:$0xff] %v1335_v33 }
 0x17b   :  { %1352 = vtanh.f32 %v925_v44  ;;  %v1339_v35 = vpop.eup %1338  ;;  %992 = vst [vmem:[%s1831_s3 + $0xe0] sm:$0xff] %v1337_v36 }
 0x17c   :  { %1354 = vtanh.f32 %v885_v34  ;;  %v1341_v37 = vpop.eup %1340  ;;  %986 = vst [vmem:[%s1831_s3 + $0xb0] sm:$0xff] %v1339_v35  ;;  %v712_v38 = vpop.f32.mrb[52].mxu0 }
 0x17d   :  { %1356 = vtanh.f32 %v917_v31  ;;  %v1343_v39 = vpop.eup %1342  ;;  %995 = vst [vmem:[%s1831_s3 + $0xf8] sm:$0xff] %v1341_v37  ;;  %v713_v41 = vadd.f32 %v1668_v47, %v712_v38  ;;  %v714_v43 = vpop.f32.mrb[53].mxu0 }
 0x17e   :  { %v1345_v45 = vpop.eup %1344  ;;  %987 = vst [vmem:[%s1831_s3 + $0xb8] sm:$0xff] %v1343_v39  ;;  %v715_v46 = vpop.f32.mrb[54].mxu0 }
 0x17f   :  { %993 = vst [vmem:[%s1831_s3 + $0xe8] sm:$0xff] %v1345_v45  ;;  %v890_v48 = vadd.f32 %v1741_v42, %v713_v41  ;;  %v716_v49 = vadd.f32 %v1668_v47, %v715_v46  ;;  %v717_v51 = vpop.f32.mrb[55].mxu0 }
 0x181   :  { %v1347_v52 = vpop.eup %1346  ;;  %1358 = vtanh.f32 %v890_v48  ;;  %v893_v53 = vadd.f32 %v1747_v50, %v716_v49 }
 0x182   :  { %998 = vst [vmem:[%s1831_s3 + $0x110] sm:$0xff] %v1347_v52 }
 0x183   :  { %v1349_v54 = vpop.eup %1348  ;;  %1360 = vtanh.f32 %v893_v53 }
 0x184   :  { %v1351_v55 = vpop.eup %1350  ;;  %996 = vst [vmem:[%s1831_s3 + $0x100] sm:$0xff] %v1349_v54 }
 0x185   :  { %v1353_v56 = vpop.eup %1352  ;;  %988 = vst [vmem:[%s1831_s3 + $0xc0] sm:$0xff] %v1351_v55 }
 0x186   :  { %v1355_v47 = vpop.eup %1354  ;;  %999 = vst [vmem:[%s1831_s3 + $0x118] sm:$0xff] %v1353_v56 }
 0x187   :  { %v1357_v42 = vpop.eup %1356  ;;  %989 = vst [vmem:[%s1831_s3 + $0xc8] sm:$0xff] %v1355_v47 }
 0x188   :  { %997 = vst [vmem:[%s1831_s3 + $0x108] sm:$0xff] %v1357_v42 }
 0x18b   :  { %v1359_v50 = vpop.eup %1358 }
 0x18c   :  { %990 = vst [vmem:[%s1831_s3 + $0xd0] sm:$0xff] %v1359_v50 }
 0x18d   :  { %v1361_v57 = vpop.eup %1360 }
 0x18e   :  { %991 = vst [vmem:[%s1831_s3 + $0xd8] sm:$0xff] %v1361_v57 }

</bundles_post_ra>
